<compile_context>
chip_gen: v7x
topology: tpu7x:2x2x1
jax: 0.10.0
libtpu: 0.0.40
codegen_flags: <defaults>
</compile_context>

<pallas_src>
import functools

import jax
import jax.numpy as jnp
import numpy as np
from jax import lax
from jax.experimental import pallas as pl
from jax.experimental.pallas import tpu as pltpu

_N1, _P1 = 960, 904      # conv1 / pool1 output lane widths (row stride 32 / 64)
_N2, _P2 = 640, 544      # conv2 / pool2 output lane widths (row stride 64 / 128)
_PW = 648                # kh-stacked pool1 buffer width  (>= 640 + 2*4)
_KF = 512                # padded flattened-feature width (real 400 = 16*5*5)
_NP = 128                # padded MLP width               (real 120 / 84 / 10)


# ----------------------------------------------------------------------------
# fused kernel: conv1 -> relu -> pool -> conv2 -> relu -> pool -> fc1/2/3
# ----------------------------------------------------------------------------
def _lenet_kernel(x_ref, w1_ref, b1_ref, w2_ref, b2_ref, sel_ref, cm_ref,
                  fw1_ref, fb1_ref, fw2_ref, fb2_ref, fw3_ref, fb3_ref,
                  o_ref, xs_ref, p1s_ref, feat_ref, *, tb):
    # Hoisted (small) conv weight/bias reads -- resident in vregs across the
    # image loop.  sel/cm are read at their use sites to keep vreg pressure low.
    w1 = w1_ref[...]                       # (6, 75)    col = 15*kw + 3*kh + cin
    b1 = b1_ref[...]                       # (6, 1)
    w2 = w2_ref[...]                       # (16, 150)  col = 30*kw + 6*kh + cin
    b2 = b2_ref[...]                       # (16, 1)

    # Zero the image staging buffer once per grid step.  The per-image stores
    # below never touch the zero tails again, so garbage / NaN VMEM can never
    # leak into the gather matmuls through the unused (pad) lanes.
    xs_ref[...] = jnp.zeros_like(xs_ref)

    def image_body(b, carry):
        # ---- stage image b into the kh-stacked layout (15, 1024) ----------
        xb = x_ref[b]                                         # (3, 1024)
        for kh in range(5):
            xs_ref[3 * kh:3 * kh + 3, 0:1024 - 32 * kh] = xb[:, 32 * kh:]

        # ---- conv1 (5x5 valid): 5 dots with K=15, + bias + ReLU -----------
        acc1 = jnp.dot(w1[:, 0:15], xs_ref[:, 0:_N1],
                       preferred_element_type=jnp.float32)
        for kw in range(1, 5):
            acc1 = acc1 + jnp.dot(w1[:, 15 * kw:15 * kw + 15],
                                  xs_ref[:, kw:kw + _N1],
                                  preferred_element_type=jnp.float32)
        y1 = jnp.maximum(acc1 + b1, 0.0)                      # (6, 960)

        # ---- 2x2/2 max-pool (pure VPU); results land at lanes 64*i + 2*j --
        p1 = jnp.maximum(
            jnp.maximum(y1[:, 0:_P1], y1[:, 1:_P1 + 1]),
            jnp.maximum(y1[:, 32:_P1 + 32], y1[:, 33:_P1 + 33]))  # (6, 904)

        # ---- stage p1 into the kh-stacked layout (30, 648) ----------------
        for kh in range(5):
            p1s_ref[6 * kh:6 * kh + 6, :] = p1[:, 64 * kh:64 * kh + _PW]

        # ---- conv2 (5x5 valid, dilated grid): 5 dots with K=30 ------------
        acc2 = jnp.dot(w2[:, 0:30], p1s_ref[:, 0:_N2],
                       preferred_element_type=jnp.float32)
        for kw in range(1, 5):
            acc2 = acc2 + jnp.dot(w2[:, 30 * kw:30 * kw + 30],
                                  p1s_ref[:, 2 * kw:2 * kw + _N2],
                                  preferred_element_type=jnp.float32)
        y2 = jnp.maximum(acc2 + b2, 0.0)                      # (16, 640)

        # ---- second 2x2/2 max-pool; results at lanes 128*i + 4*j ----------
        p2 = jnp.maximum(
            jnp.maximum(y2[:, 0:_P2], y2[:, 2:_P2 + 2]),
            jnp.maximum(y2[:, 64:_P2 + 64], y2[:, 66:_P2 + 66]))  # (16, 544)

        # ---- flatten to torch (c, h, w) order: 5 small K=32 gather dots ---
        v = jnp.dot(p2[:, 0:32], sel_ref[0],
                    preferred_element_type=jnp.float32)
        for i in range(1, 5):
            v = v + jnp.dot(p2[:, 128 * i:128 * i + 32], sel_ref[i],
                            preferred_element_type=jnp.float32)
        feat_ref[pl.ds(b, 1), :] = jnp.sum(v * cm_ref[...], axis=0,
                                           keepdims=True)     # (1, 512)
        return carry

    lax.fori_loop(0, tb, image_body, 0)

    # ---- MLP on the whole batch tile (lane-dense, padded to 128) ----------
    feats = feat_ref[...]                                     # (tb, 512)
    h = jnp.maximum(jnp.dot(feats, fw1_ref[...],
                            preferred_element_type=jnp.float32) + fb1_ref[...],
                    0.0)
    h = jnp.maximum(jnp.dot(h, fw2_ref[...],
                            preferred_element_type=jnp.float32) + fb2_ref[...],
                    0.0)
    o_ref[...] = jnp.dot(h, fw3_ref[...],
                         preferred_element_type=jnp.float32) + fb3_ref[...]


# ----------------------------------------------------------------------------
# host-side constant / weight preparation (run ONCE, outside the jitted call)
# ----------------------------------------------------------------------------
def _flatten_consts():
    """sel[i, 4*j, k]=1 picks pooled lane 128*i+4*j; cm[c, k]=1 picks channel."""
    sel = np.zeros((5, 32, _KF), np.float32)
    cm = np.zeros((16, _KF), np.float32)
    for c in range(16):
        for i in range(5):
            for j in range(5):
                k = c * 25 + i * 5 + j               # torch flatten order
                sel[i, 4 * j, k] = 1.0
                cm[c, k] = 1.0
    return sel, cm


def _pad2(a, shape):
    out = jnp.zeros(shape, jnp.float32)
    return out.at[:a.shape[0], :a.shape[1]].set(a.astype(jnp.float32))


def prepare_params(c1w, c1b, c2w, c2b, f1w, f1b, f2w, f2b, f3w, f3b):
    """PyTorch-layout parameters -> kernel-layout parameters (call once)."""
    f32 = jnp.float32
    # conv weights OIHW -> (Cout, kw, kh, Cin) -> (Cout, 25*Cin):
    #   column index = 15*kw + 3*kh + cin (matches the kh-stacked activations)
    w1 = jnp.transpose(c1w.astype(f32), (0, 3, 2, 1)).reshape(6, 75)
    w2 = jnp.transpose(c2w.astype(f32), (0, 3, 2, 1)).reshape(16, 150)
    b1 = c1b.astype(f32).reshape(6, 1)
    b2 = c2b.astype(f32).reshape(16, 1)

    sel_np, cm_np = _flatten_consts()
    sel = jnp.asarray(sel_np)
    cm = jnp.asarray(cm_np)

    # fc weights transposed + zero-padded to lane-dense 128-wide blocks.
    fw1 = _pad2(f1w.T, (_KF, _NP))
    fb1 = _pad2(f1b.reshape(1, -1), (1, _NP))
    fw2 = _pad2(f2w.T, (_NP, _NP))
    fb2 = _pad2(f2b.reshape(1, -1), (1, _NP))
    fw3 = _pad2(f3w.T, (_NP, _NP))
    fb3 = _pad2(f3b.reshape(1, -1), (1, _NP))
    return (w1, b1, w2, b2, sel, cm, fw1, fb1, fw2, fb2, fw3, fb3)


# ----------------------------------------------------------------------------
# pallas_call wrapper
# ----------------------------------------------------------------------------
@jax.jit
def lenet_forward(x_nchw, prepped):
    (w1, b1, w2, b2, sel, cm, fw1, fb1, fw2, fb2, fw3, fb3) = prepped
    B = x_nchw.shape[0]

    # Batch-tile policy: tb even; >= 2 grid steps once B > 8 (v7x megacore
    # via "parallel"); larger tiles for big batches to amortize step overhead
    # and give the fc layers a real M dimension.
    if B > 64:
        tb = 32
    elif B > 16:
        tb = 16
    elif B > 8:
        tb = 8
    else:
        tb = B + (B % 2)
    bp = ((B + tb - 1) // tb) * tb

    x = x_nchw.astype(jnp.float32).reshape(B, 3, 1024)
    if bp != B:
        x = jnp.pad(x, ((0, bp - B), (0, 0), (0, 0)))

    kernel = functools.partial(_lenet_kernel, tb=tb)
    out = pl.pallas_call(
        kernel,
        out_shape=jax.ShapeDtypeStruct((bp, _NP), jnp.float32),
        grid_spec=pltpu.PrefetchScalarGridSpec(
            num_scalar_prefetch=0,
            grid=(bp // tb,),
            in_specs=[
                pl.BlockSpec((tb, 3, 1024), lambda i: (i, 0, 0)),   # x
                pl.BlockSpec((6, 75), lambda i: (0, 0)),            # w1
                pl.BlockSpec((6, 1), lambda i: (0, 0)),             # b1
                pl.BlockSpec((16, 150), lambda i: (0, 0)),          # w2
                pl.BlockSpec((16, 1), lambda i: (0, 0)),            # b2
                pl.BlockSpec((5, 32, _KF), lambda i: (0, 0, 0)),    # sel
                pl.BlockSpec((16, _KF), lambda i: (0, 0)),          # cm
                pl.BlockSpec((_KF, _NP), lambda i: (0, 0)),         # fw1
                pl.BlockSpec((1, _NP), lambda i: (0, 0)),           # fb1
                pl.BlockSpec((_NP, _NP), lambda i: (0, 0)),         # fw2
                pl.BlockSpec((1, _NP), lambda i: (0, 0)),           # fb2
                pl.BlockSpec((_NP, _NP), lambda i: (0, 0)),         # fw3
                pl.BlockSpec((1, _NP), lambda i: (0, 0)),           # fb3
            ],
            out_specs=pl.BlockSpec((tb, _NP), lambda i: (i, 0)),
            scratch_shapes=[
                pltpu.VMEM((15, 1024), jnp.float32),   # kh-stacked image
                pltpu.VMEM((30, _PW), jnp.float32),    # kh-stacked pool1
                pltpu.VMEM((tb, _KF), jnp.float32),    # flattened features
            ],
        ),
        compiler_params=pltpu.CompilerParams(
            dimension_semantics=("parallel",)),
    )(x, w1, b1, w2, b2, sel, cm, fw1, fb1, fw2, fb2, fw3, fb3)

    return out[:B, :10]


# ----------------------------------------------------------------------------
# pure-JAX reference (PyTorch semantics) for the correctness check
# ----------------------------------------------------------------------------
def ref_forward(x, c1w, c1b, c2w, c2b, f1w, f1b, f2w, f2b, f3w, f3b):
    dn = ("NCHW", "OIHW", "NCHW")
    hp = lax.Precision.HIGHEST
    y = lax.conv_general_dilated(x, c1w, (1, 1), "VALID",
                                 dimension_numbers=dn, precision=hp)
    y = jnp.maximum(y + c1b[None, :, None, None], 0.0)
    y = lax.reduce_window(y, -jnp.inf, lax.max, (1, 1, 2, 2), (1, 1, 2, 2), "VALID")
    y = lax.conv_general_dilated(y, c2w, (1, 1), "VALID",
                                 dimension_numbers=dn, precision=hp)
    y = jnp.maximum(y + c2b[None, :, None, None], 0.0)
    y = lax.reduce_window(y, -jnp.inf, lax.max, (1, 1, 2, 2), (1, 1, 2, 2), "VALID")
    y = y.reshape(y.shape[0], -1)                      # (B, 16*5*5) torch order
    y = jnp.maximum(jnp.dot(y, f1w.T, precision=hp) + f1b, 0.0)
    y = jnp.maximum(jnp.dot(y, f2w.T, precision=hp) + f2b, 0.0)
    return jnp.dot(y, f3w.T, precision=hp) + f3b


if __name__ == "__main__":
    key = jax.random.PRNGKey(0)
    ks = jax.random.split(key, 11)
    B = 2
    # CIFAR-10 shaped input (required by the 16*5*5 flatten): (B, 3, 32, 32)
    x = jax.random.normal(ks[0], (B, 3, 32, 32), jnp.float32)

    # deterministic synthetic parameters in PyTorch layouts
    c1w = 0.1 * jax.random.normal(ks[1], (6, 3, 5, 5), jnp.float32)
    c1b = 0.1 * jax.random.normal(ks[2], (6,), jnp.float32)
    c2w = 0.1 * jax.random.normal(ks[3], (16, 6, 5, 5), jnp.float32)
    c2b = 0.1 * jax.random.normal(ks[4], (16,), jnp.float32)
    f1w = 0.1 * jax.random.normal(ks[5], (120, 400), jnp.float32)
    f1b = 0.1 * jax.random.normal(ks[6], (120,), jnp.float32)
    f2w = 0.1 * jax.random.normal(ks[7], (84, 120), jnp.float32)
    f2b = 0.1 * jax.random.normal(ks[8], (84,), jnp.float32)
    f3w = 0.1 * jax.random.normal(ks[9], (10, 84), jnp.float32)
    f3b = 0.1 * jax.random.normal(ks[10], (10,), jnp.float32)

    params = (c1w, c1b, c2w, c2b, f1w, f1b, f2w, f2b, f3w, f3b)
    prepped = prepare_params(*params)          # one-time weight-layout prep

    out = lenet_forward(x, prepped)
    jax.block_until_ready(out)
    assert out.shape == (B, 10) and out.dtype == jnp.float32

    # Tolerance kept at 2e-2: the reference runs at HIGHEST precision while the
    # kernel uses the MXU's default f32 path; 2e-2 is the empirically verified
    # passing bound for this all-f32 pipeline.
    ref = ref_forward(x, *params)
    np.testing.assert_allclose(np.asarray(out), np.asarray(ref),
                               rtol=2e-2, atol=2e-2)
    print("KERNEL_OK")
</pallas_src>

<mosaic_0001>
module attributes {stable_mosaic.version = 11 : i64} {
  func.func @_lenet_kernel(%arg0: i32, %arg1: memref<2x3x1024xf32, #tpu.memory_space<vmem>>, %arg2: memref<6x75xf32, #tpu.memory_space<vmem>>, %arg3: memref<6x1xf32, #tpu.memory_space<vmem>>, %arg4: memref<16x150xf32, #tpu.memory_space<vmem>>, %arg5: memref<16x1xf32, #tpu.memory_space<vmem>>, %arg6: memref<5x32x512xf32, #tpu.memory_space<vmem>>, %arg7: memref<16x512xf32, #tpu.memory_space<vmem>>, %arg8: memref<512x128xf32, #tpu.memory_space<vmem>>, %arg9: memref<1x128xf32, #tpu.memory_space<vmem>>, %arg10: memref<128x128xf32, #tpu.memory_space<vmem>>, %arg11: memref<1x128xf32, #tpu.memory_space<vmem>>, %arg12: memref<128x128xf32, #tpu.memory_space<vmem>>, %arg13: memref<1x128xf32, #tpu.memory_space<vmem>>, %arg14: memref<2x128xf32, #tpu.memory_space<vmem>>, %arg15: memref<15x1024xf32, #tpu.memory_space<vmem>>, %arg16: memref<30x648xf32, #tpu.memory_space<vmem>>, %arg17: memref<2x512xf32, #tpu.memory_space<vmem>>) attributes {dimension_semantics = [#tpu.dimension_semantics<parallel>], iteration_bounds = array<i64: 1>, scalar_prefetch = 0 : i64, scratch_operands = 3 : i64, tpu.core_type = #tpu.core_type<tc>, window_params = [{transform_indices = @transform_0, window_bounds = array<i64: 2, 3, 1024>}, {pipeline_mode = #tpu.pipeline_mode<synchronous>, transform_indices = @transform_1, window_bounds = array<i64: 6, 75>}, {pipeline_mode = #tpu.pipeline_mode<synchronous>, transform_indices = @transform_2, window_bounds = array<i64: 6, 1>}, {pipeline_mode = #tpu.pipeline_mode<synchronous>, transform_indices = @transform_3, window_bounds = array<i64: 16, 150>}, {pipeline_mode = #tpu.pipeline_mode<synchronous>, transform_indices = @transform_4, window_bounds = array<i64: 16, 1>}, {pipeline_mode = #tpu.pipeline_mode<synchronous>, transform_indices = @transform_5, window_bounds = array<i64: 5, 32, 512>}, {pipeline_mode = #tpu.pipeline_mode<synchronous>, transform_indices = @transform_6, window_bounds = array<i64: 16, 512>}, {pipeline_mode = #tpu.pipeline_mode<synchronous>, transform_indices = @transform_7, window_bounds = array<i64: 512, 128>}, {pipeline_mode = #tpu.pipeline_mode<synchronous>, transform_indices = @transform_8, window_bounds = array<i64: 1, 128>}, {pipeline_mode = #tpu.pipeline_mode<synchronous>, transform_indices = @transform_9, window_bounds = array<i64: 128, 128>}, {pipeline_mode = #tpu.pipeline_mode<synchronous>, transform_indices = @transform_10, window_bounds = array<i64: 1, 128>}, {pipeline_mode = #tpu.pipeline_mode<synchronous>, transform_indices = @transform_11, window_bounds = array<i64: 128, 128>}, {pipeline_mode = #tpu.pipeline_mode<synchronous>, transform_indices = @transform_12, window_bounds = array<i64: 1, 128>}, {transform_indices = @transform_13, window_bounds = array<i64: 2, 128>}]} {
    %c0 = arith.constant 0 : index
    %c0_0 = arith.constant 0 : index
    %0 = vector.load %arg2[%c0, %c0_0] : memref<6x75xf32, #tpu.memory_space<vmem>>, vector<6x75xf32>
    %c0_1 = arith.constant 0 : index
    %c0_2 = arith.constant 0 : index
    %1 = vector.load %arg3[%c0_1, %c0_2] : memref<6x1xf32, #tpu.memory_space<vmem>>, vector<6x1xf32>
    %c0_3 = arith.constant 0 : index
    %c0_4 = arith.constant 0 : index
    %2 = vector.load %arg4[%c0_3, %c0_4] : memref<16x150xf32, #tpu.memory_space<vmem>>, vector<16x150xf32>
    %c0_5 = arith.constant 0 : index
    %c0_6 = arith.constant 0 : index
    %3 = vector.load %arg5[%c0_5, %c0_6] : memref<16x1xf32, #tpu.memory_space<vmem>>, vector<16x1xf32>
    %cst = arith.constant 0.000000e+00 : f32
    %4 = vector.broadcast %cst : f32 to vector<15x1024xf32>
    %c0_7 = arith.constant 0 : index
    %c0_8 = arith.constant 0 : index
    %5 = vector.load %arg15[%c0_7, %c0_8] : memref<15x1024xf32, #tpu.memory_space<vmem>>, vector<15x1024xf32>
    tpu.vector_store %arg15[%c0_7, %c0_8], %4 {strides = array<i32>} : memref<15x1024xf32, #tpu.memory_space<vmem>>, vector<15x1024xf32>,
    %c0_i32 = arith.constant 0 : i32
    %c2_i32 = arith.constant 2 : i32
    %6 = arith.addi %c0_i32, %c2_i32 : i32
    %c1_i32 = arith.constant 1 : i32
    scf.for %arg18 = %c0_i32 to %6 step %c1_i32  : i32 {
      %28 = arith.index_cast %arg18 : i32 to index
      %c0_31 = arith.constant 0 : index
      %c0_32 = arith.constant 0 : index
      %29 = vector.load %arg1[%28, %c0_31, %c0_32] : memref<2x3x1024xf32, #tpu.memory_space<vmem>>, vector<1x3x1024xf32>
      %30 = vector.shape_cast %29 : vector<1x3x1024xf32> to vector<3x1024xf32>
      %c0_33 = arith.constant 0 : index
      %c0_34 = arith.constant 0 : index
      %31 = vector.load %arg15[%c0_33, %c0_34] : memref<15x1024xf32, #tpu.memory_space<vmem>>, vector<3x1024xf32>
      tpu.vector_store %arg15[%c0_33, %c0_34], %30 {strides = array<i32>} : memref<15x1024xf32, #tpu.memory_space<vmem>>, vector<3x1024xf32>,
      %32 = vector.extract_strided_slice %30 {offsets = [0, 32], sizes = [3, 992], strides = [1, 1]} : vector<3x1024xf32> to vector<3x992xf32>
      %c3 = arith.constant 3 : index
      %c0_35 = arith.constant 0 : index
      %33 = vector.load %arg15[%c3, %c0_35] : memref<15x1024xf32, #tpu.memory_space<vmem>>, vector<3x992xf32>
      tpu.vector_store %arg15[%c3, %c0_35], %32 {strides = array<i32>} : memref<15x1024xf32, #tpu.memory_space<vmem>>, vector<3x992xf32>,
      %34 = vector.extract_strided_slice %30 {offsets = [0, 64], sizes = [3, 960], strides = [1, 1]} : vector<3x1024xf32> to vector<3x960xf32>
      %c6 = arith.constant 6 : index
      %c0_36 = arith.constant 0 : index
      %35 = vector.load %arg15[%c6, %c0_36] : memref<15x1024xf32, #tpu.memory_space<vmem>>, vector<3x960xf32>
      tpu.vector_store %arg15[%c6, %c0_36], %34 {strides = array<i32>} : memref<15x1024xf32, #tpu.memory_space<vmem>>, vector<3x960xf32>,
      %36 = vector.extract_strided_slice %30 {offsets = [0, 96], sizes = [3, 928], strides = [1, 1]} : vector<3x1024xf32> to vector<3x928xf32>
      %c9 = arith.constant 9 : index
      %c0_37 = arith.constant 0 : index
      %37 = vector.load %arg15[%c9, %c0_37] : memref<15x1024xf32, #tpu.memory_space<vmem>>, vector<3x928xf32>
      tpu.vector_store %arg15[%c9, %c0_37], %36 {strides = array<i32>} : memref<15x1024xf32, #tpu.memory_space<vmem>>, vector<3x928xf32>,
      %38 = vector.extract_strided_slice %30 {offsets = [0, 128], sizes = [3, 896], strides = [1, 1]} : vector<3x1024xf32> to vector<3x896xf32>
      %c12 = arith.constant 12 : index
      %c0_38 = arith.constant 0 : index
      %39 = vector.load %arg15[%c12, %c0_38] : memref<15x1024xf32, #tpu.memory_space<vmem>>, vector<3x896xf32>
      tpu.vector_store %arg15[%c12, %c0_38], %38 {strides = array<i32>} : memref<15x1024xf32, #tpu.memory_space<vmem>>, vector<3x896xf32>,
      %40 = vector.extract_strided_slice %0 {offsets = [0, 0], sizes = [6, 15], strides = [1, 1]} : vector<6x75xf32> to vector<6x15xf32>
      %c0_39 = arith.constant 0 : index
      %c0_40 = arith.constant 0 : index
      %41 = vector.load %arg15[%c0_39, %c0_40] : memref<15x1024xf32, #tpu.memory_space<vmem>>, vector<15x960xf32>
      %cst_41 = arith.constant dense<0.000000e+00> : vector<6x960xf32>
      %42 = tpu.matmul %40, %41, %cst_41 {dimension_numbers = #tpu.dot_dimension_numbers<[1], [0], [0], [1], [0, 0, 1, 1], [], []>} : vector<6x15xf32>, vector<15x960xf32>, vector<6x960xf32> -> vector<6x960xf32>
      %43 = vector.extract_strided_slice %0 {offsets = [0, 15], sizes = [6, 15], strides = [1, 1]} : vector<6x75xf32> to vector<6x15xf32>
      %c0_42 = arith.constant 0 : index
      %c1 = arith.constant 1 : index
      %44 = vector.load %arg15[%c0_42, %c1] : memref<15x1024xf32, #tpu.memory_space<vmem>>, vector<15x960xf32>
      %cst_43 = arith.constant dense<0.000000e+00> : vector<6x960xf32>
      %45 = tpu.matmul %43, %44, %cst_43 {dimension_numbers = #tpu.dot_dimension_numbers<[1], [0], [0], [1], [0, 0, 1, 1], [], []>} : vector<6x15xf32>, vector<15x960xf32>, vector<6x960xf32> -> vector<6x960xf32>
      %46 = arith.addf %42, %45 : vector<6x960xf32>
      %47 = vector.extract_strided_slice %0 {offsets = [0, 30], sizes = [6, 15], strides = [1, 1]} : vector<6x75xf32> to vector<6x15xf32>
      %c0_44 = arith.constant 0 : index
      %c2 = arith.constant 2 : index
      %48 = vector.load %arg15[%c0_44, %c2] : memref<15x1024xf32, #tpu.memory_space<vmem>>, vector<15x960xf32>
      %cst_45 = arith.constant dense<0.000000e+00> : vector<6x960xf32>
      %49 = tpu.matmul %47, %48, %cst_45 {dimension_numbers = #tpu.dot_dimension_numbers<[1], [0], [0], [1], [0, 0, 1, 1], [], []>} : vector<6x15xf32>, vector<15x960xf32>, vector<6x960xf32> -> vector<6x960xf32>
      %50 = arith.addf %46, %49 : vector<6x960xf32>
      %51 = vector.extract_strided_slice %0 {offsets = [0, 45], sizes = [6, 15], strides = [1, 1]} : vector<6x75xf32> to vector<6x15xf32>
      %c0_46 = arith.constant 0 : index
      %c3_47 = arith.constant 3 : index
      %52 = vector.load %arg15[%c0_46, %c3_47] : memref<15x1024xf32, #tpu.memory_space<vmem>>, vector<15x960xf32>
      %cst_48 = arith.constant dense<0.000000e+00> : vector<6x960xf32>
      %53 = tpu.matmul %51, %52, %cst_48 {dimension_numbers = #tpu.dot_dimension_numbers<[1], [0], [0], [1], [0, 0, 1, 1], [], []>} : vector<6x15xf32>, vector<15x960xf32>, vector<6x960xf32> -> vector<6x960xf32>
      %54 = arith.addf %50, %53 : vector<6x960xf32>
      %55 = vector.extract_strided_slice %0 {offsets = [0, 60], sizes = [6, 15], strides = [1, 1]} : vector<6x75xf32> to vector<6x15xf32>
      %c0_49 = arith.constant 0 : index
      %c4 = arith.constant 4 : index
      %56 = vector.load %arg15[%c0_49, %c4] : memref<15x1024xf32, #tpu.memory_space<vmem>>, vector<15x960xf32>
      %cst_50 = arith.constant dense<0.000000e+00> : vector<6x960xf32>
      %57 = tpu.matmul %55, %56, %cst_50 {dimension_numbers = #tpu.dot_dimension_numbers<[1], [0], [0], [1], [0, 0, 1, 1], [], []>} : vector<6x15xf32>, vector<15x960xf32>, vector<6x960xf32> -> vector<6x960xf32>
      %58 = arith.addf %54, %57 : vector<6x960xf32>
      %59 = vector.broadcast %1 : vector<6x1xf32> to vector<6x960xf32>
      %60 = arith.addf %58, %59 : vector<6x960xf32>
      %cst_51 = arith.constant 0.000000e+00 : f32
      %61 = vector.broadcast %cst_51 : f32 to vector<6x960xf32>
      %62 = arith.maximumf %60, %61 : vector<6x960xf32>
      %63 = vector.extract_strided_slice %62 {offsets = [0, 0], sizes = [6, 904], strides = [1, 1]} : vector<6x960xf32> to vector<6x904xf32>
      %64 = vector.extract_strided_slice %62 {offsets = [0, 1], sizes = [6, 904], strides = [1, 1]} : vector<6x960xf32> to vector<6x904xf32>
      %65 = arith.maximumf %63, %64 : vector<6x904xf32>
      %66 = vector.extract_strided_slice %62 {offsets = [0, 32], sizes = [6, 904], strides = [1, 1]} : vector<6x960xf32> to vector<6x904xf32>
      %67 = vector.extract_strided_slice %62 {offsets = [0, 33], sizes = [6, 904], strides = [1, 1]} : vector<6x960xf32> to vector<6x904xf32>
      %68 = arith.maximumf %66, %67 : vector<6x904xf32>
      %69 = arith.maximumf %65, %68 : vector<6x904xf32>
      %70 = vector.extract_strided_slice %69 {offsets = [0, 0], sizes = [6, 648], strides = [1, 1]} : vector<6x904xf32> to vector<6x648xf32>
      %c0_52 = arith.constant 0 : index
      %c0_53 = arith.constant 0 : index
      %71 = vector.load %arg16[%c0_52, %c0_53] : memref<30x648xf32, #tpu.memory_space<vmem>>, vector<6x648xf32>
      tpu.vector_store %arg16[%c0_52, %c0_53], %70 {strides = array<i32>} : memref<30x648xf32, #tpu.memory_space<vmem>>, vector<6x648xf32>,
      %72 = vector.extract_strided_slice %69 {offsets = [0, 64], sizes = [6, 648], strides = [1, 1]} : vector<6x904xf32> to vector<6x648xf32>
      %c6_54 = arith.constant 6 : index
      %c0_55 = arith.constant 0 : index
      %73 = vector.load %arg16[%c6_54, %c0_55] : memref<30x648xf32, #tpu.memory_space<vmem>>, vector<6x648xf32>
      tpu.vector_store %arg16[%c6_54, %c0_55], %72 {strides = array<i32>} : memref<30x648xf32, #tpu.memory_space<vmem>>, vector<6x648xf32>,
      %74 = vector.extract_strided_slice %69 {offsets = [0, 128], sizes = [6, 648], strides = [1, 1]} : vector<6x904xf32> to vector<6x648xf32>
      %c12_56 = arith.constant 12 : index
      %c0_57 = arith.constant 0 : index
      %75 = vector.load %arg16[%c12_56, %c0_57] : memref<30x648xf32, #tpu.memory_space<vmem>>, vector<6x648xf32>
      tpu.vector_store %arg16[%c12_56, %c0_57], %74 {strides = array<i32>} : memref<30x648xf32, #tpu.memory_space<vmem>>, vector<6x648xf32>,
      %76 = vector.extract_strided_slice %69 {offsets = [0, 192], sizes = [6, 648], strides = [1, 1]} : vector<6x904xf32> to vector<6x648xf32>
      %c18 = arith.constant 18 : index
      %c0_58 = arith.constant 0 : index
      %77 = vector.load %arg16[%c18, %c0_58] : memref<30x648xf32, #tpu.memory_space<vmem>>, vector<6x648xf32>
      tpu.vector_store %arg16[%c18, %c0_58], %76 {strides = array<i32>} : memref<30x648xf32, #tpu.memory_space<vmem>>, vector<6x648xf32>,
      %78 = vector.extract_strided_slice %69 {offsets = [0, 256], sizes = [6, 648], strides = [1, 1]} : vector<6x904xf32> to vector<6x648xf32>
      %c24 = arith.constant 24 : index
      %c0_59 = arith.constant 0 : index
      %79 = vector.load %arg16[%c24, %c0_59] : memref<30x648xf32, #tpu.memory_space<vmem>>, vector<6x648xf32>
      tpu.vector_store %arg16[%c24, %c0_59], %78 {strides = array<i32>} : memref<30x648xf32, #tpu.memory_space<vmem>>, vector<6x648xf32>,
      %80 = vector.extract_strided_slice %2 {offsets = [0, 0], sizes = [16, 30], strides = [1, 1]} : vector<16x150xf32> to vector<16x30xf32>
      %c0_60 = arith.constant 0 : index
      %c0_61 = arith.constant 0 : index
      %81 = vector.load %arg16[%c0_60, %c0_61] : memref<30x648xf32, #tpu.memory_space<vmem>>, vector<30x640xf32>
      %cst_62 = arith.constant dense<0.000000e+00> : vector<16x640xf32>
      %82 = tpu.matmul %80, %81, %cst_62 {dimension_numbers = #tpu.dot_dimension_numbers<[1], [0], [0], [1], [0, 0, 1, 1], [], []>} : vector<16x30xf32>, vector<30x640xf32>, vector<16x640xf32> -> vector<16x640xf32>
      %83 = vector.extract_strided_slice %2 {offsets = [0, 30], sizes = [16, 30], strides = [1, 1]} : vector<16x150xf32> to vector<16x30xf32>
      %c0_63 = arith.constant 0 : index
      %c2_64 = arith.constant 2 : index
      %84 = vector.load %arg16[%c0_63, %c2_64] : memref<30x648xf32, #tpu.memory_space<vmem>>, vector<30x640xf32>
      %cst_65 = arith.constant dense<0.000000e+00> : vector<16x640xf32>
      %85 = tpu.matmul %83, %84, %cst_65 {dimension_numbers = #tpu.dot_dimension_numbers<[1], [0], [0], [1], [0, 0, 1, 1], [], []>} : vector<16x30xf32>, vector<30x640xf32>, vector<16x640xf32> -> vector<16x640xf32>
      %86 = arith.addf %82, %85 : vector<16x640xf32>
      %87 = vector.extract_strided_slice %2 {offsets = [0, 60], sizes = [16, 30], strides = [1, 1]} : vector<16x150xf32> to vector<16x30xf32>
      %c0_66 = arith.constant 0 : index
      %c4_67 = arith.constant 4 : index
      %88 = vector.load %arg16[%c0_66, %c4_67] : memref<30x648xf32, #tpu.memory_space<vmem>>, vector<30x640xf32>
      %cst_68 = arith.constant dense<0.000000e+00> : vector<16x640xf32>
      %89 = tpu.matmul %87, %88, %cst_68 {dimension_numbers = #tpu.dot_dimension_numbers<[1], [0], [0], [1], [0, 0, 1, 1], [], []>} : vector<16x30xf32>, vector<30x640xf32>, vector<16x640xf32> -> vector<16x640xf32>
      %90 = arith.addf %86, %89 : vector<16x640xf32>
      %91 = vector.extract_strided_slice %2 {offsets = [0, 90], sizes = [16, 30], strides = [1, 1]} : vector<16x150xf32> to vector<16x30xf32>
      %c0_69 = arith.constant 0 : index
      %c6_70 = arith.constant 6 : index
      %92 = vector.load %arg16[%c0_69, %c6_70] : memref<30x648xf32, #tpu.memory_space<vmem>>, vector<30x640xf32>
      %cst_71 = arith.constant dense<0.000000e+00> : vector<16x640xf32>
      %93 = tpu.matmul %91, %92, %cst_71 {dimension_numbers = #tpu.dot_dimension_numbers<[1], [0], [0], [1], [0, 0, 1, 1], [], []>} : vector<16x30xf32>, vector<30x640xf32>, vector<16x640xf32> -> vector<16x640xf32>
      %94 = arith.addf %90, %93 : vector<16x640xf32>
      %95 = vector.extract_strided_slice %2 {offsets = [0, 120], sizes = [16, 30], strides = [1, 1]} : vector<16x150xf32> to vector<16x30xf32>
      %c0_72 = arith.constant 0 : index
      %c8 = arith.constant 8 : index
      %96 = vector.load %arg16[%c0_72, %c8] : memref<30x648xf32, #tpu.memory_space<vmem>>, vector<30x640xf32>
      %cst_73 = arith.constant dense<0.000000e+00> : vector<16x640xf32>
      %97 = tpu.matmul %95, %96, %cst_73 {dimension_numbers = #tpu.dot_dimension_numbers<[1], [0], [0], [1], [0, 0, 1, 1], [], []>} : vector<16x30xf32>, vector<30x640xf32>, vector<16x640xf32> -> vector<16x640xf32>
      %98 = arith.addf %94, %97 : vector<16x640xf32>
      %99 = vector.broadcast %3 : vector<16x1xf32> to vector<16x640xf32>
      %100 = arith.addf %98, %99 : vector<16x640xf32>
      %cst_74 = arith.constant 0.000000e+00 : f32
      %101 = vector.broadcast %cst_74 : f32 to vector<16x640xf32>
      %102 = arith.maximumf %100, %101 : vector<16x640xf32>
      %103 = vector.extract_strided_slice %102 {offsets = [0, 0], sizes = [16, 544], strides = [1, 1]} : vector<16x640xf32> to vector<16x544xf32>
      %104 = vector.extract_strided_slice %102 {offsets = [0, 2], sizes = [16, 544], strides = [1, 1]} : vector<16x640xf32> to vector<16x544xf32>
      %105 = arith.maximumf %103, %104 : vector<16x544xf32>
      %106 = vector.extract_strided_slice %102 {offsets = [0, 64], sizes = [16, 544], strides = [1, 1]} : vector<16x640xf32> to vector<16x544xf32>
      %107 = vector.extract_strided_slice %102 {offsets = [0, 66], sizes = [16, 544], strides = [1, 1]} : vector<16x640xf32> to vector<16x544xf32>
      %108 = arith.maximumf %106, %107 : vector<16x544xf32>
      %109 = arith.maximumf %105, %108 : vector<16x544xf32>
      %110 = vector.extract_strided_slice %109 {offsets = [0, 0], sizes = [16, 32], strides = [1, 1]} : vector<16x544xf32> to vector<16x32xf32>
      %c0_75 = arith.constant 0 : index
      %c0_76 = arith.constant 0 : index
      %c0_77 = arith.constant 0 : index
      %111 = vector.load %arg6[%c0_75, %c0_76, %c0_77] : memref<5x32x512xf32, #tpu.memory_space<vmem>>, vector<1x32x512xf32>
      %112 = vector.shape_cast %111 : vector<1x32x512xf32> to vector<32x512xf32>
      %cst_78 = arith.constant dense<0.000000e+00> : vector<16x512xf32>
      %113 = tpu.matmul %110, %112, %cst_78 {dimension_numbers = #tpu.dot_dimension_numbers<[1], [0], [0], [1], [0, 0, 1, 1], [], []>} : vector<16x32xf32>, vector<32x512xf32>, vector<16x512xf32> -> vector<16x512xf32>
      %114 = vector.extract_strided_slice %109 {offsets = [0, 128], sizes = [16, 32], strides = [1, 1]} : vector<16x544xf32> to vector<16x32xf32>
      %c1_79 = arith.constant 1 : index
      %c0_80 = arith.constant 0 : index
      %c0_81 = arith.constant 0 : index
      %115 = vector.load %arg6[%c1_79, %c0_80, %c0_81] : memref<5x32x512xf32, #tpu.memory_space<vmem>>, vector<1x32x512xf32>
      %116 = vector.shape_cast %115 : vector<1x32x512xf32> to vector<32x512xf32>
      %cst_82 = arith.constant dense<0.000000e+00> : vector<16x512xf32>
      %117 = tpu.matmul %114, %116, %cst_82 {dimension_numbers = #tpu.dot_dimension_numbers<[1], [0], [0], [1], [0, 0, 1, 1], [], []>} : vector<16x32xf32>, vector<32x512xf32>, vector<16x512xf32> -> vector<16x512xf32>
      %118 = arith.addf %113, %117 : vector<16x512xf32>
      %119 = vector.extract_strided_slice %109 {offsets = [0, 256], sizes = [16, 32], strides = [1, 1]} : vector<16x544xf32> to vector<16x32xf32>
      %c2_83 = arith.constant 2 : index
      %c0_84 = arith.constant 0 : index
      %c0_85 = arith.constant 0 : index
      %120 = vector.load %arg6[%c2_83, %c0_84, %c0_85] : memref<5x32x512xf32, #tpu.memory_space<vmem>>, vector<1x32x512xf32>
      %121 = vector.shape_cast %120 : vector<1x32x512xf32> to vector<32x512xf32>
      %cst_86 = arith.constant dense<0.000000e+00> : vector<16x512xf32>
      %122 = tpu.matmul %119, %121, %cst_86 {dimension_numbers = #tpu.dot_dimension_numbers<[1], [0], [0], [1], [0, 0, 1, 1], [], []>} : vector<16x32xf32>, vector<32x512xf32>, vector<16x512xf32> -> vector<16x512xf32>
      %123 = arith.addf %118, %122 : vector<16x512xf32>
      %124 = vector.extract_strided_slice %109 {offsets = [0, 384], sizes = [16, 32], strides = [1, 1]} : vector<16x544xf32> to vector<16x32xf32>
      %c3_87 = arith.constant 3 : index
      %c0_88 = arith.constant 0 : index
      %c0_89 = arith.constant 0 : index
      %125 = vector.load %arg6[%c3_87, %c0_88, %c0_89] : memref<5x32x512xf32, #tpu.memory_space<vmem>>, vector<1x32x512xf32>
      %126 = vector.shape_cast %125 : vector<1x32x512xf32> to vector<32x512xf32>
      %cst_90 = arith.constant dense<0.000000e+00> : vector<16x512xf32>
      %127 = tpu.matmul %124, %126, %cst_90 {dimension_numbers = #tpu.dot_dimension_numbers<[1], [0], [0], [1], [0, 0, 1, 1], [], []>} : vector<16x32xf32>, vector<32x512xf32>, vector<16x512xf32> -> vector<16x512xf32>
      %128 = arith.addf %123, %127 : vector<16x512xf32>
      %129 = vector.extract_strided_slice %109 {offsets = [0, 512], sizes = [16, 32], strides = [1, 1]} : vector<16x544xf32> to vector<16x32xf32>
      %c4_91 = arith.constant 4 : index
      %c0_92 = arith.constant 0 : index
      %c0_93 = arith.constant 0 : index
      %130 = vector.load %arg6[%c4_91, %c0_92, %c0_93] : memref<5x32x512xf32, #tpu.memory_space<vmem>>, vector<1x32x512xf32>
      %131 = vector.shape_cast %130 : vector<1x32x512xf32> to vector<32x512xf32>
      %cst_94 = arith.constant dense<0.000000e+00> : vector<16x512xf32>
      %132 = tpu.matmul %129, %131, %cst_94 {dimension_numbers = #tpu.dot_dimension_numbers<[1], [0], [0], [1], [0, 0, 1, 1], [], []>} : vector<16x32xf32>, vector<32x512xf32>, vector<16x512xf32> -> vector<16x512xf32>
      %133 = arith.addf %128, %132 : vector<16x512xf32>
      %c0_95 = arith.constant 0 : index
      %c0_96 = arith.constant 0 : index
      %134 = vector.load %arg7[%c0_95, %c0_96] : memref<16x512xf32, #tpu.memory_space<vmem>>, vector<16x512xf32>
      %135 = arith.mulf %133, %134 : vector<16x512xf32>
      %cst_97 = arith.constant dense<0.000000e+00> : vector<512xf32>
      %136 = vector.multi_reduction <add>, %135, %cst_97 [0] : vector<16x512xf32> to vector<512xf32>
      %137 = vector.shape_cast %136 : vector<512xf32> to vector<1x512xf32>
      %138 = arith.index_cast %arg18 : i32 to index
      %c0_98 = arith.constant 0 : index
      %139 = vector.load %arg17[%138, %c0_98] : memref<2x512xf32, #tpu.memory_space<vmem>>, vector<1x512xf32>
      tpu.vector_store %arg17[%138, %c0_98], %137 {strides = array<i32>} : memref<2x512xf32, #tpu.memory_space<vmem>>, vector<1x512xf32>,
    }
    %c2_i32_9 = arith.constant 2 : i32
    %c0_10 = arith.constant 0 : index
    %c0_11 = arith.constant 0 : index
    %7 = vector.load %arg17[%c0_10, %c0_11] : memref<2x512xf32, #tpu.memory_space<vmem>>, vector<2x512xf32>
    %c0_12 = arith.constant 0 : index
    %c0_13 = arith.constant 0 : index
    %8 = vector.load %arg8[%c0_12, %c0_13] : memref<512x128xf32, #tpu.memory_space<vmem>>, vector<512x128xf32>
    %cst_14 = arith.constant dense<0.000000e+00> : vector<2x128xf32>
    %9 = tpu.matmul %7, %8, %cst_14 {dimension_numbers = #tpu.dot_dimension_numbers<[1], [0], [0], [1], [0, 0, 1, 1], [], []>} : vector<2x512xf32>, vector<512x128xf32>, vector<2x128xf32> -> vector<2x128xf32>
    %c0_15 = arith.constant 0 : index
    %c0_16 = arith.constant 0 : index
    %10 = vector.load %arg9[%c0_15, %c0_16] : memref<1x128xf32, #tpu.memory_space<vmem>>, vector<1x128xf32>
    %11 = vector.broadcast %10 : vector<1x128xf32> to vector<2x128xf32>
    %12 = arith.addf %9, %11 : vector<2x128xf32>
    %cst_17 = arith.constant 0.000000e+00 : f32
    %13 = vector.broadcast %cst_17 : f32 to vector<2x128xf32>
    %14 = arith.maximumf %12, %13 : vector<2x128xf32>
    %c0_18 = arith.constant 0 : index
    %c0_19 = arith.constant 0 : index
    %15 = vector.load %arg10[%c0_18, %c0_19] : memref<128x128xf32, #tpu.memory_space<vmem>>, vector<128x128xf32>
    %cst_20 = arith.constant dense<0.000000e+00> : vector<2x128xf32>
    %16 = tpu.matmul %14, %15, %cst_20 {dimension_numbers = #tpu.dot_dimension_numbers<[1], [0], [0], [1], [0, 0, 1, 1], [], []>} : vector<2x128xf32>, vector<128x128xf32>, vector<2x128xf32> -> vector<2x128xf32>
    %c0_21 = arith.constant 0 : index
    %c0_22 = arith.constant 0 : index
    %17 = vector.load %arg11[%c0_21, %c0_22] : memref<1x128xf32, #tpu.memory_space<vmem>>, vector<1x128xf32>
    %18 = vector.broadcast %17 : vector<1x128xf32> to vector<2x128xf32>
    %19 = arith.addf %16, %18 : vector<2x128xf32>
    %cst_23 = arith.constant 0.000000e+00 : f32
    %20 = vector.broadcast %cst_23 : f32 to vector<2x128xf32>
    %21 = arith.maximumf %19, %20 : vector<2x128xf32>
    %c0_24 = arith.constant 0 : index
    %c0_25 = arith.constant 0 : index
    %22 = vector.load %arg12[%c0_24, %c0_25] : memref<128x128xf32, #tpu.memory_space<vmem>>, vector<128x128xf32>
    %cst_26 = arith.constant dense<0.000000e+00> : vector<2x128xf32>
    %23 = tpu.matmul %21, %22, %cst_26 {dimension_numbers = #tpu.dot_dimension_numbers<[1], [0], [0], [1], [0, 0, 1, 1], [], []>} : vector<2x128xf32>, vector<128x128xf32>, vector<2x128xf32> -> vector<2x128xf32>
    %c0_27 = arith.constant 0 : index
    %c0_28 = arith.constant 0 : index
    %24 = vector.load %arg13[%c0_27, %c0_28] : memref<1x128xf32, #tpu.memory_space<vmem>>, vector<1x128xf32>
    %25 = vector.broadcast %24 : vector<1x128xf32> to vector<2x128xf32>
    %26 = arith.addf %23, %25 : vector<2x128xf32>
    %c0_29 = arith.constant 0 : index
    %c0_30 = arith.constant 0 : index
    %27 = vector.load %arg14[%c0_29, %c0_30] : memref<2x128xf32, #tpu.memory_space<vmem>>, vector<2x128xf32>
    tpu.vector_store %arg14[%c0_29, %c0_30], %26 {strides = array<i32>} : memref<2x128xf32, #tpu.memory_space<vmem>>, vector<2x128xf32>,
    return
  }
  func.func @transform_0(%arg0: i32) -> (i32, i32, i32) {
    %c0_i32 = arith.constant 0 : i32
    %c0_i32_0 = arith.constant 0 : i32
    %c0_i32_1 = arith.constant 0 : i32
    return %arg0, %c0_i32, %c0_i32_0 : i32, i32, i32
  }
  func.func @transform_1(%arg0: i32) -> (i32, i32) {
    %c0_i32 = arith.constant 0 : i32
    %c0_i32_0 = arith.constant 0 : i32
    %c0_i32_1 = arith.constant 0 : i32
    return %c0_i32, %c0_i32_0 : i32, i32
  }
  func.func @transform_2(%arg0: i32) -> (i32, i32) {
    %c0_i32 = arith.constant 0 : i32
    %c0_i32_0 = arith.constant 0 : i32
    %c0_i32_1 = arith.constant 0 : i32
    return %c0_i32, %c0_i32_0 : i32, i32
  }
  func.func @transform_3(%arg0: i32) -> (i32, i32) {
    %c0_i32 = arith.constant 0 : i32
    %c0_i32_0 = arith.constant 0 : i32
    %c0_i32_1 = arith.constant 0 : i32
    return %c0_i32, %c0_i32_0 : i32, i32
  }
  func.func @transform_4(%arg0: i32) -> (i32, i32) {
    %c0_i32 = arith.constant 0 : i32
    %c0_i32_0 = arith.constant 0 : i32
    %c0_i32_1 = arith.constant 0 : i32
    return %c0_i32, %c0_i32_0 : i32, i32
  }
  func.func @transform_5(%arg0: i32) -> (i32, i32, i32) {
    %c0_i32 = arith.constant 0 : i32
    %c0_i32_0 = arith.constant 0 : i32
    %c0_i32_1 = arith.constant 0 : i32
    %c0_i32_2 = arith.constant 0 : i32
    return %c0_i32, %c0_i32_0, %c0_i32_1 : i32, i32, i32
  }
  func.func @transform_6(%arg0: i32) -> (i32, i32) {
    %c0_i32 = arith.constant 0 : i32
    %c0_i32_0 = arith.constant 0 : i32
    %c0_i32_1 = arith.constant 0 : i32
    return %c0_i32, %c0_i32_0 : i32, i32
  }
  func.func @transform_7(%arg0: i32) -> (i32, i32) {
    %c0_i32 = arith.constant 0 : i32
    %c0_i32_0 = arith.constant 0 : i32
    %c0_i32_1 = arith.constant 0 : i32
    return %c0_i32, %c0_i32_0 : i32, i32
  }
  func.func @transform_8(%arg0: i32) -> (i32, i32) {
    %c0_i32 = arith.constant 0 : i32
    %c0_i32_0 = arith.constant 0 : i32
    %c0_i32_1 = arith.constant 0 : i32
    return %c0_i32, %c0_i32_0 : i32, i32
  }
  func.func @transform_9(%arg0: i32) -> (i32, i32) {
    %c0_i32 = arith.constant 0 : i32
    %c0_i32_0 = arith.constant 0 : i32
    %c0_i32_1 = arith.constant 0 : i32
    return %c0_i32, %c0_i32_0 : i32, i32
  }
  func.func @transform_10(%arg0: i32) -> (i32, i32) {
    %c0_i32 = arith.constant 0 : i32
    %c0_i32_0 = arith.constant 0 : i32
    %c0_i32_1 = arith.constant 0 : i32
    return %c0_i32, %c0_i32_0 : i32, i32
  }
  func.func @transform_11(%arg0: i32) -> (i32, i32) {
    %c0_i32 = arith.constant 0 : i32
    %c0_i32_0 = arith.constant 0 : i32
    %c0_i32_1 = arith.constant 0 : i32
    return %c0_i32, %c0_i32_0 : i32, i32
  }
  func.func @transform_12(%arg0: i32) -> (i32, i32) {
    %c0_i32 = arith.constant 0 : i32
    %c0_i32_0 = arith.constant 0 : i32
    %c0_i32_1 = arith.constant 0 : i32
    return %c0_i32, %c0_i32_0 : i32, i32
  }
  func.func @transform_13(%arg0: i32) -> (i32, i32) {
    %c0_i32 = arith.constant 0 : i32
    %c0_i32_0 = arith.constant 0 : i32
    return %arg0, %c0_i32 : i32, i32
  }
}

</mosaic_0001>

<bundles_post_ra>
// kernel: lenet_forward.1
= control target key start
LH: loop header
LB: loop body
LE: loop exit
PB: predicated region body
PF: predicated region fallthrough
CT: control target
= control target key end

     0   :  { %18 = vsyncpa [#allocation6], 0  ;;  %s8756_s0 = inlined_call_operand.vmem [shape: f32[2,3,1024], index: 0, kind: input, shape index: {}]   ;;  %s8757_s1 = inlined_call_operand.hbm [shape: f32[6,75], index: 1, kind: input, shape index: {}]   ;;  %s8758_s2 = inlined_call_operand.vmem [shape: f32[6,1], index: 2, kind: input, shape index: {}]   ;;  %s8759_s3 = inlined_call_operand.vmem [shape: f32[16,150], index: 3, kind: input, shape index: {}]   ;;  %s8760_s4 = inlined_call_operand.vmem [shape: f32[16,1], index: 4, kind: input, shape index: {}]   ;;  %s8761_s5 = inlined_call_operand.hbm [shape: f32[5,32,512], index: 5, kind: input, shape index: {}]   ;;  %s8762_s6 = inlined_call_operand.hbm [shape: f32[16,512], index: 6, kind: input, shape index: {}]   ;;  %s8763_s7 = inlined_call_operand.hbm [shape: f32[512,128], index: 7, kind: input, shape index: {}]   ;;  %s8764_s8 = inlined_call_operand.vmem [shape: f32[1,128], index: 8, kind: input, shape index: {}]   ;;  %s8765_s9 = inlined_call_operand.vmem [shape: f32[128,128], index: 9, kind: input, shape index: {}]   ;;  %s8766_s10 = inlined_call_operand.vmem [shape: f32[1,128], index: 10, kind: input, shape index: {}]   ;;  %s8767_s11 = inlined_call_operand.vmem [shape: f32[128,128], index: 11, kind: input, shape index: {}]   ;;  %s8768_s12 = inlined_call_operand.vmem [shape: f32[1,128], index: 12, kind: input, shape index: {}]   ;;  %s8769_s13 = inlined_call_operand.hbm [shape: f32[2,128], index: 13, kind: output, shape index: {}]  }
   0x1   :  { %19 = vsyncpa [#allocation9], 0 }
   0x2   :  { %20 = vsyncpa [#allocation12], 0 }
   0x3   :  { %21 = vsyncpa [#allocation7], 0  ;;  %s7152_s25 = smov [#allocation8]   ;;  %s7026_s29 = scalar_lea.hbm %s8761_s5, 10240 }
   0x4   :  { %s45_s26 = sshll.u32 %s7152_s25, 4  ;;  %p7027_p0 = scmp.ne.s32.totalorder %s8761_s5, %s7026_s29  ;;  %s46_s26 = int_to_ptr.vmem [resolvable:$true] %s45_s26 }
   0x5   :  { %p7030_p1 = scmp.lt.u32.totalorder %s7026_s29, %s8761_s5 }
   0x7   :  { %p7032_p2 = pnand %p7030_p1, %p7027_p0 }
   0x9   :  { %7035 = shalt.err (!%p7032_p2)
}
   0xa   :  { %s7036_s17 = scalar_lea.vmem %s46_s26, 10240  ;;  %p7041_p4 = scmp.lt.s32.totalorder %s46_s26, %s46_s26 }
   0xb   :  { %p7037_p3 = scmp.ne.s32.totalorder %s46_s26, %s7036_s17  ;;  %p7042_p5 = scmp.lt.s32.totalorder %s7036_s17, %s7036_s17 }
   0xd   :  { %p7043_p6 = por %p7042_p5, %p7041_p4 }
   0xf   :  { %p7044_p7 = pnand %p7043_p6, %p7037_p3 }
  0x11   :  { %7047 = shalt.err (!%p7044_p7)
}
  0x12   :  { %s7153_s18 = smov 512   ;;  %s7154_s19 = smov 32  }
  0x13   :  { %51 = dma.hbm_to_vmem [thread:$0]  %s8761_s5, 10240, %s46_s26, [#allocation9], %s7153_s18, %s7153_s18, %s7154_s19  }
  0x14   :  { %s7155_s22 = smov [#allocation5]   ;;  %s7156_s24 = smov [#allocation10]  }
  0x15   :  { %s30_s23 = sshll.u32 %s7155_s22, 4  ;;  %s57_s25 = sshll.u32 %s7156_s24, 4  ;;  %s31_s23 = int_to_ptr.vmem [resolvable:$true] %s30_s23  ;;  %s58_s25 = int_to_ptr.vmem [resolvable:$true] %s57_s25 }
  0x16   :  { %s7048_s29 = scalar_lea.hbm %s8757_s1, 128 }
  0x17   :  { %p7049_p8 = scmp.ne.s32.totalorder %s8757_s1, %s7048_s29  ;;  %p7052_p9 = scmp.lt.u32.totalorder %s7048_s29, %s8757_s1 }
  0x19   :  { %p7054_p10 = pnand %p7052_p9, %p7049_p8 }
  0x1b   :  { %7057 = shalt.err (!%p7054_p10)
}
  0x1c   :  { %s7058_s5 = scalar_lea.vmem %s31_s23, 128  ;;  %p7063_p12 = scmp.lt.s32.totalorder %s31_s23, %s31_s23 }
  0x1d   :  { %p7059_p11 = scmp.ne.s32.totalorder %s31_s23, %s7058_s5  ;;  %p7064_p13 = scmp.lt.s32.totalorder %s7058_s5, %s7058_s5 }
  0x1f   :  { %p7065_p0 = por %p7064_p13, %p7063_p12 }
  0x21   :  { %p7066_p1 = pnand %p7065_p0, %p7059_p11 }
  0x23   :  { %7069 = shalt.err (!%p7066_p1)
}
  0x24   :  { %33 = dma.hbm_to_vmem [thread:$0]  %s8757_s1, 128, %s31_s23, [#allocation6]  }
  0x25   :  { %s7070_s22 = scalar_lea.hbm %s8762_s6, 1024 }
  0x26   :  { %p7071_p2 = scmp.ne.s32.totalorder %s8762_s6, %s7070_s22  ;;  %p7074_p3 = scmp.lt.u32.totalorder %s7070_s22, %s8762_s6 }
  0x28   :  { %p7076_p4 = pnand %p7074_p3, %p7071_p2 }
  0x2a   :  { %7079 = shalt.err (!%p7076_p4)
}
  0x2b   :  { %s7080_s30 = scalar_lea.vmem %s58_s25, 1024  ;;  %p7085_p6 = scmp.lt.s32.totalorder %s58_s25, %s58_s25 }
  0x2c   :  { %p7081_p5 = scmp.ne.s32.totalorder %s58_s25, %s7080_s30  ;;  %p7086_p7 = scmp.lt.s32.totalorder %s7080_s30, %s7080_s30 }
  0x2e   :  { %p7087_p8 = por %p7086_p7, %p7085_p6 }
  0x30   :  { %p7088_p9 = pnand %p7087_p8, %p7081_p5 }
  0x32   :  { %7091 = shalt.err (!%p7088_p9)
}
  0x33   :  { %63 = dma.hbm_to_vmem [thread:$0]  %s8762_s6, 1024, %s58_s25, [#allocation9], %s7153_s18, %s7153_s18, %s7154_s19  }
  0x34   :  { %s7157_s14 = smov [#allocation11]   ;;  %s7092_s26 = scalar_lea.hbm %s8763_s7, 8192 }
  0x35   :  { %s69_s15 = sshll.u32 %s7157_s14, 4  ;;  %p7093_p10 = scmp.ne.s32.totalorder %s8763_s7, %s7092_s26  ;;  %s70_s15 = int_to_ptr.vmem [resolvable:$true] %s69_s15 }
  0x36   :  { %p7096_p11 = scmp.lt.u32.totalorder %s7092_s26, %s8763_s7 }
  0x38   :  { %p7098_p12 = pnand %p7096_p11, %p7093_p10 }
  0x3a   :  { %7101 = shalt.err (!%p7098_p12)
}
  0x3b   :  { %s7102_s24 = scalar_lea.vmem %s70_s15, 8192  ;;  %p7107_p0 = scmp.lt.s32.totalorder %s70_s15, %s70_s15 }
  0x3c   :  { %p7103_p13 = scmp.ne.s32.totalorder %s70_s15, %s7102_s24  ;;  %p7108_p1 = scmp.lt.s32.totalorder %s7102_s24, %s7102_s24 }
  0x3e   :  { %p7109_p2 = por %p7108_p1, %p7107_p0 }
  0x40   :  { %p7110_p3 = pnand %p7109_p2, %p7103_p13 }
  0x42   :  { %7113 = shalt.err (!%p7110_p3)
}
  0x43   :  { %s7158_s6 = smov 128   ;;  %s7159_s18 = smov 8  }
  0x44   :  { %75 = dma.hbm_to_vmem [thread:$0]  %s8763_s7, 8192, %s70_s15, [#allocation12], %s7158_s6, %s7158_s6, %s7159_s18  }
  0x45   :  { %7140 = dma.done.wait [#allocation6], 128  }
  0x46   :  { %7141 = vsyncadd [#allocation6], 4294967168 }
  0x47   :  { %7142 = dma.done.wait [#allocation9], 11264  }
  0x48   :  { %7143 = vsyncadd [#allocation9], 4294956032 }
  0x49   :  { %7144 = dma.done.wait [#allocation12], 8192  }
  0x4a   :  { %7145 = vsyncadd [#allocation12], 4294959104  ;;  %v8770_v0 = vmov 0.0   ;;  %v7324_v1 = vld [vmem:[#allocation5] sm:$0x3f]  ;;  %v7334_v3 = vld [vmem:[%s8759_s3] sm:$0xff] }
  0x4b   :  { %106 = vst [vmem:[#allocation2] sm:$0xff] %v8770_v0  ;;  %107 = vst [vmem:[#allocation2 + $0x8] sm:$0xff] %v8770_v0  ;;  %v7329_v2 = vld [vmem:[%s8758_s2] sm:$0x3f]  ;;  %v7339_v4 = vld [vmem:[%s8759_s3 + $0x8] sm:$0xff]  ;;  %s7361_s20 = smov 0  }
  0x4c   :  { %108 = vst [vmem:[#allocation2 + $0x10] sm:$0xff] %v8770_v0  ;;  %109 = vst [vmem:[#allocation2 + $0x18] sm:$0xff] %v8770_v0  ;;  %v7344_v5 = vld [vmem:[%s8759_s3 + $0x10] sm:$0xff]  ;;  %v7349_v6 = vld [vmem:[%s8759_s3 + $0x18] sm:$0xff] }
  0x4d   :  { %110 = vst [vmem:[#allocation2 + $0x20] sm:$0xff] %v8770_v0  ;;  %111 = vst [vmem:[#allocation2 + $0x28] sm:$0xff] %v8770_v0  ;;  %v7354_v7 = vld [vmem:[%s8760_s4] sm:$0xff]  ;;  %v7359_v8 = vld [vmem:[%s8760_s4 + $0x8] sm:$0xff] }
  0x4e   :  { %112 = vst [vmem:[#allocation2 + $0x30] sm:$0xff] %v8770_v0  ;;  %113 = vst [vmem:[#allocation2 + $0x38] sm:$0xff] %v8770_v0 }
  0x4f   :  { %114 = vst [vmem:[#allocation2 + $0x40] sm:$0x7f] %v8770_v0  ;;  %115 = vst [vmem:[#allocation2 + $0x48] sm:$0x7f] %v8770_v0 }
  0x50   :  { %116 = vst [vmem:[#allocation2 + $0x50] sm:$0x7f] %v8770_v0  ;;  %117 = vst [vmem:[#allocation2 + $0x58] sm:$0x7f] %v8770_v0 }
  0x51   :  { %118 = vst [vmem:[#allocation2 + $0x60] sm:$0x7f] %v8770_v0  ;;  %119 = vst [vmem:[#allocation2 + $0x68] sm:$0x7f] %v8770_v0 }
  0x52   :  { %120 = vst [vmem:[#allocation2 + $0x70] sm:$0x7f] %v8770_v0  ;;  %121 = vst [vmem:[#allocation2 + $0x78] sm:$0x7f] %v8770_v0 }
  0x53 LB: > { %s5749_s3 = sshll.u32 %s7150_s20, 5  ;;  %s7161_s4 = smov 96   ;;  %vm179_vm0 = vcmask 785408   ;;  %vm228_vm1 = vcmask 523264   ;;  %vm286_vm2 = vcmask 261120   ;;  %vm202_vm3 = vcmask 783363   ;;  %s7150_s20 = sphi %s7361_s20, %s127_s20  }
  0x54   : > { %s130_s24 = scalar_lea.vmem %s8756_s0, %s5749_s3  ;;  %s7162_s6 = smov 64   ;;  %vm251_vm4 = vcmask 523270   ;;  %vm260_vm5 = vcmask 516096   ;;  %vm309_vm6 = vcmask 257025   ;;  %vm417_vm7 = vcmask 1046528  }
  0x55   : > { %v132_v9 = vld [vmem:[%s130_s24 + $0x8] sm:$0x77]  ;;  %v131_v10 = vld [vmem:[%s130_s24] sm:$0x77]  ;;  %v133_v14 = vld [vmem:[%s130_s24 + $0x10] sm:$0x77] }
  0x56   : > { %v157_v11 = vrot.slane %v132_v9, 5  ;;  %v311_v12 = vcombine.low %v132_v9, %v132_v9  ;;  %319 = vst [vmem:[#allocation2 + $0x50] sm:$0x70] %v132_v9  ;;  %149 = vst [vmem:[#allocation2 + $0x10] sm:$0x7] %v132_v9  ;;  %v140_v13 = vcombine.high %v132_v9, %v132_v9  ;;  %v139_v16 = vcombine.high %v131_v10, %v131_v10  ;;  %s7163_s18 = smov 32  }
  0x57   : > { %147 = vst [vmem:[#allocation2] sm:$0x7] %v131_v10  ;;  %317 = vst [vmem:[#allocation2 + $0x40] sm:$0x70] %v131_v10  ;;  %v7370_v15 = vld [vmem:[%s130_s24 + $0x18] sm:$0x77]  ;;  %v312_v20 = vcombine.low %v133_v14, %v133_v14  ;;  %v141_v21 = vcombine.high %v133_v14, %v133_v14 }
  0x58   : > { %151 = vst [vmem:[#allocation2 + $0x20] sm:$0x7] %v133_v14  ;;  %321 = vst [vmem:[#allocation2 + $0x60] sm:$0x70] %v133_v14  ;;  %167 = vrot.lane.b32.xlu0 %v157_v11, %s7161_s4  ;;  %v158_v17 = vrot.slane %v140_v13, 5  ;;  %v206_v18 = vrot.slane %v132_v9, 2  ;;  %v313_v22 = vcombine.low %v7370_v15, %v7370_v15  ;;  %v142_v23 = vcombine.high %v7370_v15, %v7370_v15 }
  0x59   : > { %153 = vst [vmem:[#allocation2 + $0x30] sm:$0x7] %v7370_v15  ;;  %323 = vst [vmem:[#allocation2 + $0x70] sm:$0x70] %v7370_v15  ;;  %v205_v19 = vrot.slane %v139_v16, 2  ;;  %v156_v24 = vrot.slane %v139_v16, 5 }
  0x5a   : > { %318 = vst [vmem:[#allocation2 + $0x48] sm:$0x70] %v311_v12  ;;  %150 = vst [vmem:[#allocation2 + $0x18] sm:$0x7] %v140_v13  ;;  %169 = vrot.lane.b32.xlu1 %v158_v17, %s7161_s4  ;;  %v207_v25 = vrot.slane %v140_v13, 2  ;;  %v263_v26 = vrot.slane %v139_v16, 7 }
  0x5b   : > { %148 = vst [vmem:[#allocation2 + $0x8] sm:$0x7] %v139_v16  ;;  %320 = vst [vmem:[#allocation2 + $0x58] sm:$0x70] %v312_v20  ;;  %v264_v27 = vrot.slane %v132_v9, 7  ;;  %v265_v28 = vrot.slane %v140_v13, 7 }
  0x5c   : > { %216 = vrot.lane.b32.xlu0 %v206_v18, %s7162_s6  ;;  %152 = vst [vmem:[#allocation2 + $0x28] sm:$0x7] %v141_v21  ;;  %322 = vst [vmem:[#allocation2 + $0x68] sm:$0x70] %v313_v22  ;;  %v155_v29 = vrot.slane %v131_v10, 5  ;;  %v204_v30 = vrot.slane %v131_v10, 2 }
  0x5d   : > { %154 = vst [vmem:[#allocation2 + $0x38] sm:$0x7] %v142_v23  ;;  %v262_v31 = vrot.slane %v131_v10, 7  ;;  %v159_v32 = vrot.slane %v133_v14, 5  ;;  %v160_v33 = vrot.slane %v141_v21, 5  ;;  %v208_v34 = vrot.slane %v133_v14, 2 }
  0x5e   : > { %214 = vrot.lane.b32.xlu1 %v205_v19, %s7162_s6  ;;  %v209_v35 = vrot.slane %v141_v21, 2  ;;  %v266_v36 = vrot.slane %v133_v14, 7  ;;  %v267_v37 = vrot.slane %v141_v21, 7  ;;  %v161_v38 = vrot.slane %v7370_v15, 5  ;;  %s7164_s19 = smov 98   ;;  %s7165_s25 = smov 113  }
  0x5f   : > { %v162_v39 = vrot.slane %v142_v23, 5  ;;  %v210_v40 = vrot.slane %v7370_v15, 2  ;;  %v211_v41 = vrot.slane %v142_v23, 2  ;;  %v268_v42 = vrot.slane %v7370_v15, 7  ;;  %s7166_s7 = smov 83   ;;  %s7167_s27 = smov 126  }
  0x60   : > { %165 = vrot.lane.b32.xlu0 %v156_v24, %s7161_s4  ;;  %v269_v43 = vrot.slane %v142_v23, 7  ;;  %s7168_s28 = smov 127   ;;  %s7169_s29 = smov 125   ;;  %vm7174_vm8 = vmmov 1   ;;  %vm391_vm10 = vcmask 1039360   ;;  %vm414_vm11 = vcmask 121856  }
  0x61   : > { %s7171_s30 = smov 124   ;;  %s7173_s1 = smov 68   ;;  %vm7540_vm9 = vmpackc.low %vm417_vm7, %vm7174_vm8  ;;  %vm1054_vm12 = vcmask 1031168   ;;  %vm1421_vm13 = vcmask 1022976   ;;  %vm1788_vm14 = vcmask 1014784   ;;  %vm2241_vm15 = vcmask 62464  }
  0x62   : > { %218 = vrot.lane.b32.xlu1 %v207_v25, %s7162_s6  ;;  %s7175_s23 = smov 122   ;;  %s7176_s14 = smov 38   ;;  %vm2503_vm7 = vcmask 1045504  }
  0x63   : > { %s7177_s15 = smov 120   ;;  %s7178_s16 = smov 8  }
  0x64   : > { %272 = vrot.lane.b32.xlu0 %v263_v26, %s7163_s18  ;;  %s5148_s2 = sshra.s32 %s7150_s20, 1  ;;  %s5151_s5 = sand.u32 1, %s7150_s20 }
  0x65   : > { %s5750_s26 = sshll.u32 %s5148_s2, 3  ;;  %s127_s20 = sadd.s32 1, %s7150_s20  }
  0x66   : > { %274 = vrot.lane.b32.xlu1 %v264_v27, %s7163_s18  ;;  %s5154_s17 = sadd.s32 %s5750_s26, %s5151_s5  ;;  %p124_p4 = scmp.ge.s32.totalorder %s127_s20, 2  }
  0x67   : > { %s5155_s3 = scalar_lea.vmem [#allocation4], %s5154_s17 }
  0x68   : > { %276 = vrot.lane.b32.xlu0 %v265_v28, %s7163_s18 }
  0x6a   : > { %163 = vrot.lane.b32.xlu1 %v155_v29, %s7161_s4 }
  0x6c   : > { %212 = vrot.lane.b32.xlu0 %v204_v30, %s7162_s6 }
  0x6e   : > { %270 = vrot.lane.b32.xlu1 %v262_v31, %s7163_s18 }
  0x70   : > { %171 = vrot.lane.b32.xlu0 %v159_v32, %s7161_s4 }
  0x72   : > { %173 = vrot.lane.b32.xlu1 %v160_v33, %s7161_s4 }
  0x74   : > { %220 = vrot.lane.b32.xlu0 %v208_v34, %s7162_s6 }
  0x76   : > { %222 = vrot.lane.b32.xlu1 %v209_v35, %s7162_s6 }
  0x78   : > { %278 = vrot.lane.b32.xlu0 %v266_v36, %s7163_s18 }
  0x7a   : > { %280 = vrot.lane.b32.xlu1 %v267_v37, %s7163_s18 }
  0x7c   : > { %175 = vrot.lane.b32.xlu0 %v161_v38, %s7161_s4 }
  0x7e   : > { %177 = vrot.lane.b32.xlu1 %v162_v39, %s7161_s4 }
  0x80   : > { %224 = vrot.lane.b32.xlu0 %v210_v40, %s7162_s6 }
  0x82   : > { %226 = vrot.lane.b32.xlu1 %v211_v41, %s7162_s6 }
  0x84   : > { %282 = vrot.lane.b32.xlu0 %v268_v42, %s7163_s18 }
  0x86   : > { %284 = vrot.lane.b32.xlu1 %v269_v43, %s7163_s18 }
  0x88   : > { %1020 = vrot.lane.b32.xlu0 %v7324_v1, %s7164_s19 }
  0x8a   : > { %341 = vrot.lane.b32.xlu1 %v7324_v1, %s7165_s25 }
  0x8e   : > { %1387 = vrot.lane.b32.xlu1 %v7324_v1, %s7166_s7 }
  0xca   : > { %v168_v44 = vpop.permute.xlu0 %167 }
  0xcc   : > { %v170_v45 = vpop.permute.xlu1 %169 }
  0xcd   : > { %v182_v46 = vsel %vm179_vm0, %v168_v44, %v170_v45 }
  0xce   : > { %197 = vst [vmem:[#allocation2 + $0x10] sm:$0x38] %v182_v46  ;;  %v217_v47 = vpop.permute.xlu0 %216 }
  0xd0   : > { %v215_v48 = vpop.permute.xlu1 %214 }
  0xd1   : > { %v230_v49 = vsel %vm228_vm1, %v215_v48, %v217_v47 }
  0xd2   : > { %245 = vst [vmem:[#allocation2 + $0x48] ss:$-60 sps:$4 sm:$0xc1] %v230_v49   ;;  %v166_v50 = vpop.permute.xlu0 %165 }
  0xd3   : > { %v181_v51 = vsel %vm179_vm0, %v166_v50, %v168_v44 }
  0xd4   : > { %196 = vst [vmem:[#allocation2 + $0x8] sm:$0x38] %v181_v51  ;;  %v219_v52 = vpop.permute.xlu1 %218 }
  0xd5   : > { %v231_v53 = vsel %vm228_vm1, %v217_v47, %v219_v52 }
  0xd6   : > { %246 = vst [vmem:[#allocation2 + $0x50] ss:$-60 sps:$4 sm:$0xc1] %v231_v53   ;;  %v273_v54 = vpop.permute.xlu0 %272 }
  0xd8   : > { %v275_v55 = vpop.permute.xlu1 %274 }
  0xd9   : > { %v288_v56 = vsel %vm286_vm2, %v273_v54, %v275_v55 }
  0xda   : > { %303 = vst [vmem:[#allocation2 + $0x48] sm:$0xe] %v288_v56  ;;  %v277_v57 = vpop.permute.xlu0 %276 }
  0xdb   : > { %v289_v58 = vsel %vm286_vm2, %v275_v55, %v277_v57  ;;  %v7420_v11 = vld [vmem:[#allocation2 + $0x8] sm:$0xff] }
  0xdc   : > { %304 = vst [vmem:[#allocation2 + $0x50] sm:$0xe] %v289_v58  ;;  %v164_v59 = vpop.permute.xlu1 %163 }
  0xdd   : > { %v180_v60 = vsel %vm179_vm0, %v164_v59, %v166_v50  ;;  %v7427_v17 = vld [vmem:[#allocation2 + $0x10] sm:$0xff] }
  0xde   : > { %195 = vst [vmem:[#allocation2] sm:$0x38] %v180_v60  ;;  %v213_v61 = vpop.permute.xlu0 %212 }
  0xdf   : > { %v229_v62 = vsel %vm228_vm1, %v213_v61, %v215_v48  ;;  %v6631_v61 = vpack.i.bf16 %v7427_v17, %v7420_v11 }
  0xe0   : > { %244 = vst [vmem:[#allocation2 + $0x40] ss:$-60 sps:$4 sm:$0xc1] %v229_v62   ;;  %v271_v63 = vpop.permute.xlu1 %270  ;;  %v7170_v62 = vmov 0.0  }
  0xe1   : > { %v287_v9 = vsel %vm286_vm2, %v271_v63, %v273_v54  ;;  %v7418_v10 = vld [vmem:[#allocation2 + $0x48] sm:$0x7f]  ;;  %498 = vmatprep.mubr.f32.mxu0 %v7170_v62  ;;  %711 = vmatprep.mubr.f32.mxu1 %v7170_v62 }
  0xe2   : > { %302 = vst [vmem:[#allocation2 + $0x40] sm:$0xe] %v287_v9  ;;  %v172_v12 = vpop.permute.xlu0 %171  ;;  %v6034_v13 = vpack.c.bf16 %v7418_v10, %v7420_v11 }
  0xe3   : > { %v183_v14 = vsel %vm179_vm0, %v170_v45, %v172_v12  ;;  %v7425_v15 = vld [vmem:[#allocation2 + $0x50] sm:$0x7f] }
  0xe4   : > { %198 = vst [vmem:[#allocation2 + $0x18] sm:$0x38] %v183_v14  ;;  %v174_v16 = vpop.permute.xlu1 %173  ;;  %v6043_v19 = vpack.c.bf16 %v7425_v15, %v7427_v17  ;;  %v6636_v59 = vpack.i.bf16 %v7425_v15, %v7418_v10 }
  0xe5   : > { %v184_v18 = vsel %vm179_vm0, %v172_v12, %v174_v16 }
  0xe6   : > { %199 = vst [vmem:[#allocation2 + $0x20] sm:$0x38] %v184_v18  ;;  %v221_v20 = vpop.permute.xlu0 %220 }
  0xe7   : > { %v232_v21 = vsel %vm228_vm1, %v219_v52, %v221_v20  ;;  %v7436_v26 = vld [vmem:[#allocation2] sm:$0xff] }
  0xe8   : > { %247 = vst [vmem:[#allocation2 + $0x58] ss:$-60 sps:$4 sm:$0xc1] %v232_v21   ;;  %v223_v22 = vpop.permute.xlu1 %222 }
  0xe9   : > { %v233_v23 = vsel %vm228_vm1, %v221_v20, %v223_v22  ;;  %v7434_v24 = vld [vmem:[#allocation2 + $0x40] sm:$0x7f] }
  0xea   : > { %248 = vst [vmem:[#allocation2 + $0x60] ss:$-60 sps:$4 sm:$0xc1] %v233_v23   ;;  %v279_v25 = vpop.permute.xlu0 %278  ;;  %v6037_v28 = vpack.c.bf16 %v7434_v24, %v7436_v26  ;;  %v6641_v9 = vpack.i.bf16 %v7434_v24, %v7436_v26 }
  0xeb   : > { %v290_v27 = vsel %vm286_vm2, %v277_v57, %v279_v25 }
  0xec   : > { %305 = vst [vmem:[#allocation2 + $0x58] sm:$0xe] %v290_v27  ;;  %v281_v29 = vpop.permute.xlu1 %280 }
  0xed   : > { %v291_v30 = vsel %vm286_vm2, %v279_v25, %v281_v29 }
  0xee   : > { %306 = vst [vmem:[#allocation2 + $0x60] sm:$0xe] %v291_v30  ;;  %v176_v31 = vpop.permute.xlu0 %175 }
  0xef   : > { %v185_v32 = vsel %vm179_vm0, %v174_v16, %v176_v31  ;;  %v7445_v37 = vld [vmem:[#allocation2 + $0x18] sm:$0xff]  ;;  %v7172_v16 = vmov 0  }
  0xf0   : > { %200 = vst [vmem:[#allocation2 + $0x28] sm:$0x38] %v185_v32  ;;  %v178_v33 = vpop.permute.xlu1 %177  ;;  %6776 = vset.pattern.permute.xlu0 %v7172_v16  ;;  %7017 = vset.pattern.permute.xlu1 %v7172_v16 }
  0xf1   : > { %v186_v34 = vsel %vm179_vm0, %v176_v31, %v178_v33  ;;  %203 = vst.msk [vmem:[#allocation2 + $0x38] sm:$0x38] %vm202_vm3, %v178_v33  ;;  %v7454_v44 = vld [vmem:[#allocation2 + $0x20] sm:$0xff]  ;;  %vm2310_vm3 = vcmask 64516  }
  0xf2   : > { %201 = vst [vmem:[#allocation2 + $0x30] sm:$0x38] %v186_v34  ;;  %v225_v35 = vpop.permute.xlu0 %224  ;;  %v6646_v60 = vpack.i.bf16 %v7454_v44, %v7445_v37 }
  0xf3   : > { %v234_v36 = vsel %vm228_vm1, %v223_v22, %v225_v35  ;;  %v7447_v38 = vld [vmem:[#allocation2 + $0x58] sm:$0x7f] }
  0xf4   : > { %249 = vst [vmem:[#allocation2 + $0x68] ss:$-60 sps:$4 sm:$0xc1] %v234_v36   ;;  %v227_v39 = vpop.permute.xlu1 %226  ;;  %v6040_v40 = vpack.c.bf16 %v7447_v38, %v7445_v37 }
  0xf5   : > { %v235_v41 = vsel %vm228_vm1, %v225_v35, %v227_v39  ;;  %252 = vst.msk [vmem:[#allocation2 + $0x38] sm:$0xc0] %vm251_vm4, %v227_v39  ;;  %v7452_v42 = vld [vmem:[#allocation2 + $0x60] sm:$0x7f]  ;;  %vm2317_vm4 = vcmask 58368  }
  0xf6   : > { %261 = vst.msk [vmem:[#allocation2 + $0x78] sm:$0x1] %vm260_vm5, %v227_v39  ;;  %250 = vst [vmem:[#allocation2 + $0x70] ss:$-60 sps:$4 sm:$0xc1] %v235_v41   ;;  %v283_v43 = vpop.permute.xlu0 %282  ;;  %v6049_v46 = vpack.c.bf16 %v7452_v42, %v7454_v44  ;;  %v6651_v12 = vpack.i.bf16 %v7452_v42, %v7447_v38  ;;  %vm2290_vm5 = vcmask 60416  }
  0xf7   : > { %v292_v45 = vsel %vm286_vm2, %v281_v29, %v283_v43 }
  0xf8   : > { %307 = vst [vmem:[#allocation2 + $0x68] sm:$0xe] %v292_v45  ;;  %v285_v47 = vpop.permute.xlu1 %284 }
  0xf9   : > { %v293_v48 = vsel %vm286_vm2, %v283_v43, %v285_v47  ;;  %310 = vst.msk [vmem:[#allocation2 + $0x78] sm:$0xe] %vm309_vm6, %v285_v47  ;;  %vm2353_vm6 = vcmask 64514  }
  0xfa   : > { %308 = vst [vmem:[#allocation2 + $0x70] sm:$0xe] %v293_v48  ;;  %v7535_v21 = vpop.permute.xlu0 %1020 }
  0xfb   : > { %v7462_v50 = vld [vmem:[#allocation2 + $0x28] sm:$0xff] }
  0xfc   : > { %v7464_v51 = vld [vmem:[#allocation2 + $0x38] sm:$0xff]  ;;  %v7531_v18 = vpop.permute.xlu1 %341 }
  0xfd   : > { %v7474_v56 = vld [vmem:[#allocation2 + $0x30] sm:$0xff] }
  0xfe   : > { %v6656_v14 = vpack.i.bf16 %v7474_v56, %v7462_v50 }
  0xff   : > { %v7460_v49 = vld [vmem:[#allocation2 + $0x68] sm:$0x7f] }
 0x100   : > { %v7466_v52 = vld [vmem:[#allocation2 + $0x78] sm:$0x7f]  ;;  %v6046_v53 = vpack.c.bf16 %v7460_v49, %v7462_v50  ;;  %v7533_v20 = vpop.permute.xlu1 %1387 }
 0x101   : > { %v6621_v54 = vpack.i.bf16 %v7466_v52, %v7464_v51  ;;  %v7472_v55 = vld [vmem:[#allocation2 + $0x70] sm:$0x7f]  ;;  %v6052_v57 = vpack.c.bf16 %v7466_v52, %v7464_v51 }
 0x102   : > { %v6055_v58 = vpack.c.bf16 %v7472_v55, %v7474_v56  ;;  %v6661_v63 = vpack.i.bf16 %v7472_v55, %v7460_v49 }
 0x103   : > { %6622 = vrot.lane.b32.xlu1 %v6621_v54, %s7167_s27  ;;  %6617 = vrot.lane.b32.xlu0 %v6621_v54, %s7168_s28 }
 0x107   : > { %6627 = vrot.lane.b32.xlu0 %v6621_v54, %s7169_s29  ;;  %6637 = vrot.lane.b32.xlu1 %v6636_v59, %s7168_s28 }
 0x10b   : > { %6647 = vrot.lane.b32.xlu1 %v6646_v60, %s7168_s28  ;;  %6632 = vrot.lane.b32.xlu0 %v6631_v61, %s7168_s28 }
 0x10f   : > { %6662 = vrot.lane.b32.xlu1 %v6661_v63, %s7168_s28  ;;  %6642 = vrot.lane.b32.xlu0 %v6641_v9, %s7168_s28 }
 0x113   : > { %6667 = vrot.lane.b32.xlu1 %v6631_v61, %s7167_s27  ;;  %6652 = vrot.lane.b32.xlu0 %v6651_v12, %s7168_s28 }
 0x117   : > { %6677 = vrot.lane.b32.xlu1 %v6641_v9, %s7167_s27  ;;  %6657 = vrot.lane.b32.xlu0 %v6656_v14, %s7168_s28 }
 0x11b   : > { %6687 = vrot.lane.b32.xlu1 %v6651_v12, %s7167_s27  ;;  %6672 = vrot.lane.b32.xlu0 %v6636_v59, %s7167_s27 }
 0x11f   : > { %6697 = vrot.lane.b32.xlu1 %v6661_v63, %s7167_s27  ;;  %6682 = vrot.lane.b32.xlu0 %v6646_v60, %s7167_s27 }
 0x123   : > { %6707 = vrot.lane.b32.xlu1 %v6636_v59, %s7169_s29  ;;  %6692 = vrot.lane.b32.xlu0 %v6656_v14, %s7167_s27 }
 0x127   : > { %6717 = vrot.lane.b32.xlu1 %v6646_v60, %s7169_s29  ;;  %6702 = vrot.lane.b32.xlu0 %v6631_v61, %s7169_s29 }
 0x12b   : > { %6727 = vrot.lane.b32.xlu1 %v6656_v14, %s7169_s29  ;;  %6712 = vrot.lane.b32.xlu0 %v6641_v9, %s7169_s29 }
 0x12f   : > { %6737 = vrot.lane.b32.xlu1 %v6631_v61, %s7171_s30  ;;  %6722 = vrot.lane.b32.xlu0 %v6651_v12, %s7169_s29 }
 0x133   : > { %6747 = vrot.lane.b32.xlu1 %v6641_v9, %s7171_s30  ;;  %6732 = vrot.lane.b32.xlu0 %v6661_v63, %s7169_s29 }
 0x137   : > { %6757 = vrot.lane.b32.xlu1 %v6651_v12, %s7171_s30  ;;  %6742 = vrot.lane.b32.xlu0 %v6636_v59, %s7171_s30 }
 0x13b   : > { %6767 = vrot.lane.b32.xlu1 %v6661_v63, %s7171_s30  ;;  %6752 = vrot.lane.b32.xlu0 %v6646_v60, %s7171_s30 }
 0x13f   : > { %6772 = vrot.lane.b32.xlu1 %v6621_v54, %s7171_s30  ;;  %6762 = vrot.lane.b32.xlu0 %v6656_v14, %s7171_s30 }
 0x143   : > { %1754 = vrot.lane.b32.xlu0 %v7324_v1, %s7173_s1 }
 0x147   : > { %2123 = vperm.xlu0 %6776, %v7329_v2   ;;  %v5208_v2 = vld [vmem:[#allocation11 + $0x190] sm:$0xff] (%p124_p4) }
 0x175   : > { %v7537_v22 = vpop.permute.xlu1 %6622  ;;  %v6618_v23 = vpop.permute.xlu0 %6617 }
 0x176   : > { %v6620_v25 = vunpack.i.h.bf16 %v6618_v23  ;;  %v6619_v27 = vunpack.i.l.bf16 %v6618_v23 }
 0x178   : > { %v6028_v30 = vpack.c.bf16 %v6620_v25, %v6619_v27 }
 0x179   : > { %v6638_v31 = vpop.permute.xlu1 %6637  ;;  %v7544_v32 = vpop.permute.xlu0 %6627 }
 0x17a   : > { %6030 = vmatprep.subr.msk.bf16.mxu1 %vm7540_vm9, %v6028_v30  ;;  %v6640_v33 = vunpack.i.h.bf16 %v6638_v31  ;;  %v6639_v34 = vunpack.i.l.bf16 %v6638_v31 }
 0x17c   : > { %v400_v45 = vsel %vm391_vm10, %v6639_v34, %v6640_v33 }
 0x17d   : > { %v6648_v35 = vpop.permute.xlu1 %6647  ;;  %v6633_v36 = vpop.permute.xlu0 %6632 }
 0x17e   : > { %v6635_v39 = vunpack.i.h.bf16 %v6633_v36  ;;  %v6634_v41 = vunpack.i.l.bf16 %v6633_v36  ;;  %v6650_v61 = vunpack.i.h.bf16 %v6648_v35  ;;  %v6649_v63 = vunpack.i.l.bf16 %v6648_v35 }
 0x180   : > { %v393_v43 = vsel %vm391_vm10, %v6634_v41, %v6635_v39  ;;  %v394_v35 = vsel %vm391_vm10, %v6635_v39, %v6649_v63 }
 0x181   : > { %v6663_v47 = vpop.permute.xlu1 %6662  ;;  %v6643_v48 = vpop.permute.xlu0 %6642  ;;  %v6010_v54 = vpack.c.bf16 %v400_v45, %v393_v43  ;;  %v395_v43 = vsel %vm391_vm10, %v6649_v63, %v6650_v61 }
 0x182   : > { %v6645_v59 = vunpack.i.h.bf16 %v6643_v48  ;;  %v6644_v60 = vunpack.i.l.bf16 %v6643_v48  ;;  %v6665_v36 = vunpack.i.h.bf16 %v6663_v47  ;;  %v6664_v0 = vunpack.i.l.bf16 %v6663_v47 }
 0x183   : > { %6012 = vmatprep.subr.msk.bf16.mxu0 %vm7540_vm9, %v6010_v54 }
 0x184   : > { %v392_v9 = vsel %vm391_vm10, %v6644_v60, %v6634_v41  ;;  %v399_v12 = vsel %vm391_vm10, %v6645_v59, %v6639_v34  ;;  %v404_v47 = vsel %vm391_vm10, %v6664_v0, %v6665_v36 }
 0x185   : > { %v7554_v14 = vpop.permute.xlu1 %6667  ;;  %v6653_v16 = vpop.permute.xlu0 %6652  ;;  %v6013_v23 = vpack.c.bf16 %v399_v12, %v392_v9 }
 0x186   : > { %v6655_v30 = vunpack.i.h.bf16 %v6653_v16  ;;  %v6654_v31 = vunpack.i.l.bf16 %v6653_v16  ;;  %v6670_v37 = vunpack.i.h.bf16 %v7554_v14  ;;  %v6669_v38 = vunpack.i.l.bf16 %v7554_v14 }
 0x187   : > { %6015 = vmatpush1.bf16.msk.msra.mxu0 %vm7540_vm9, %v6013_v23 }
 0x188   : > { %v401_v41 = vsel %vm391_vm10, %v6640_v33, %v6654_v31  ;;  %v402_v34 = vsel %vm391_vm10, %v6654_v31, %v6655_v30  ;;  %v405_v33 = vsel %vm391_vm10, %v6665_v36, %v6620_v25  ;;  %v403_v39 = vsel %vm391_vm10, %v6655_v30, %v6664_v0 }
 0x189   : > { %v6019_v45 = vpack.c.bf16 %v401_v41, %v394_v35  ;;  %v7562_v48 = vpop.permute.xlu1 %6677  ;;  %v6658_v54 = vpop.permute.xlu0 %6657  ;;  %v6016_v59 = vpack.c.bf16 %v402_v34, %v395_v43  ;;  %v1056_v51 = vsel %vm1054_vm12, %v6669_v38, %v6670_v37 }
 0x18a   : > { %v6660_v60 = vunpack.i.h.bf16 %v6658_v54  ;;  %v6659_v9 = vunpack.i.l.bf16 %v6658_v54  ;;  %5611 = vmatmul.mubr.msk.f32.vlgmr.msra.gmra.mrb[0].mxu0 %vm414_vm11, %v7531_v18  ;;  %v6680_v24 = vunpack.i.h.bf16 %v7562_v48  ;;  %v6679_v26 = vunpack.i.l.bf16 %v7562_v48 }
 0x18b   : > { %6018 = vmatprep.subr.msk.bf16.mxu0 %vm7540_vm9, %v6016_v59  ;;  %569 = vmatprep.mubr.f32.mxu0 %v7170_v62 }
 0x18c   : > { %v396_v63 = vsel %vm391_vm10, %v6650_v61, %v6659_v9  ;;  %v397_v12 = vsel %vm391_vm10, %v6659_v9, %v6660_v60  ;;  %6021 = vmatpush1.bf16.msk.msra.mxu0 %vm7540_vm9, %v6019_v45  ;;  %v398_v16 = vsel %vm391_vm10, %v6660_v60, %v6619_v27  ;;  %v1055_v60 = vsel %vm1054_vm12, %v6679_v26, %v6669_v38 }
 0x18d   : > { %v6025_v23 = vpack.c.bf16 %v403_v39, %v396_v63  ;;  %v7577_v31 = vpop.permute.xlu1 %6687  ;;  %v6673_v43 = vpop.permute.xlu0 %6672  ;;  %v6022_v35 = vpack.c.bf16 %v404_v47, %v397_v12  ;;  %v6031_v41 = vpack.c.bf16 %v405_v33, %v398_v16 }
 0x18e   : > { %v6690_v0 = vunpack.i.h.bf16 %v7577_v31  ;;  %v6689_v25 = vunpack.i.l.bf16 %v7577_v31  ;;  %v6675_v30 = vunpack.i.h.bf16 %v6673_v43  ;;  %v6674_v36 = vunpack.i.l.bf16 %v6673_v43 }
 0x18f   : > { %5614 = vmatmul.mubr.msk.f32.vlgmr.msra.gmra.mrb[2].mxu0 %vm414_vm11, %v7531_v18  ;;  %6024 = vmatprep.subr.msk.bf16.mxu0 %vm7540_vm9, %v6022_v35 }
 0x190   : > { %6033 = vmatpush1.bf16.msk.msra.mxu1 %vm7540_vm9, %v6031_v41  ;;  %6027 = vmatpush1.bf16.msk.msra.mxu0 %vm7540_vm9, %v6025_v23  ;;  %v1063_v14 = vsel %vm1054_vm12, %v6674_v36, %v6675_v30  ;;  %v1062_v48 = vsel %vm1054_vm12, %v6680_v24, %v6674_v36  ;;  %v1064_v54 = vsel %vm1054_vm12, %v6675_v30, %v6689_v25 }
 0x191   : > { %6042 = vmatprep.subr.msk.bf16.mxu1 %vm7540_vm9, %v6040_v40  ;;  %v7594_v27 = vpop.permute.xlu1 %6697  ;;  %v6683_v61 = vpop.permute.xlu0 %6682  ;;  %6036 = vmatprep.subr.msk.bf16.mxu0 %vm7540_vm9, %v6034_v13  ;;  %v6625_v40 = vunpack.i.h.bf16 %v7537_v22  ;;  %v6061_v42 = vpack.c.bf16 %v1062_v48, %v1055_v60 }
 0x192   : > { %v6685_v34 = vunpack.i.h.bf16 %v6683_v61  ;;  %v6684_v45 = vunpack.i.l.bf16 %v6683_v61  ;;  %640 = vmatprep.mubr.f32.mxu0 %v7170_v62  ;;  %v6700_v52 = vunpack.i.h.bf16 %v7594_v27 }
 0x193   : > { %5620 = vmatmul.mubr.msk.f32.vlgmr.msra.gmra.mrb[0].mxu1 %vm414_vm11, %v7531_v18  ;;  %5617 = vmatmul.mubr.msk.f32.vlgmr.msra.gmra.mrb[4].mxu0 %vm414_vm11, %v7531_v18  ;;  %v1065_v18 = vsel %vm1054_vm12, %v6689_v25, %v6690_v0 }
 0x194   : > { %v1058_v10 = vsel %vm1054_vm12, %v6684_v45, %v6685_v34  ;;  %6045 = vmatpush1.bf16.msk.msra.mxu1 %vm7540_vm9, %v6043_v19  ;;  %6039 = vmatpush1.bf16.msk.msra.mxu0 %vm7540_vm9, %v6037_v28  ;;  %v6624_v19 = vunpack.i.l.bf16 %v7537_v22  ;;  %v1057_v22 = vsel %vm1054_vm12, %v6670_v37, %v6684_v45  ;;  %v1068_v41 = vsel %vm1054_vm12, %v6700_v52, %v6625_v40 }
 0x195   : > { %v7620_v11 = vpop.permute.xlu1 %6707  ;;  %v6693_v13 = vpop.permute.xlu0 %6692  ;;  %6054 = vmatprep.subr.msk.bf16.mxu1 %vm7540_vm9, %v6052_v57  ;;  %871 = vmatprep.mubr.f32.mxu1 %v7170_v62  ;;  %v6064_v28 = vpack.c.bf16 %v1065_v18, %v1058_v10  ;;  %v6699_v57 = vunpack.i.l.bf16 %v7594_v27  ;;  %v6067_v9 = vpack.c.bf16 %v1064_v54, %v1057_v22 }
 0x196   : > { %v6695_v15 = vunpack.i.h.bf16 %v6693_v13  ;;  %v6694_v17 = vunpack.i.l.bf16 %v6693_v13  ;;  %6048 = vmatprep.subr.msk.bf16.mxu0 %vm7540_vm9, %v6046_v53  ;;  %800 = vmatprep.mubr.f32.mxu0 %v7170_v62  ;;  %v6058_v53 = vpack.c.bf16 %v1063_v14, %v1056_v51  ;;  %v6709_v47 = vunpack.i.l.bf16 %v7620_v11 }
 0x197   : > { %5626 = vmatmul.mubr.msk.f32.vlgmr.msra.gmra.mrb[2].mxu1 %vm414_vm11, %v7324_v1  ;;  %5623 = vmatmul.mubr.msk.f32.vlgmr.msra.gmra.mrb[0].mxu0 %vm414_vm11, %v7324_v1  ;;  %v1067_v44 = vsel %vm1054_vm12, %v6699_v57, %v6700_v52  ;;  %v1066_v25 = vsel %vm1054_vm12, %v6690_v0, %v6699_v57  ;;  %v6629_v13 = vunpack.i.l.bf16 %v7544_v32 }
 0x198   : > { %6057 = vmatpush1.bf16.msk.msra.mxu1 %vm7540_vm9, %v6055_v58  ;;  %v1060_v59 = vsel %vm1054_vm12, %v6694_v17, %v6695_v15  ;;  %6051 = vmatpush1.bf16.msk.msra.mxu0 %vm7540_vm9, %v6049_v46  ;;  %v6076_v58 = vpack.c.bf16 %v6625_v40, %v6624_v19  ;;  %v6710_v46 = vunpack.i.h.bf16 %v7620_v11  ;;  %v1061_v33 = vsel %vm1054_vm12, %v6695_v15, %v6624_v19 }
 0x199   : > { %v7655_v49 = vpop.permute.xlu1 %6717  ;;  %v7657_v50 = vpop.permute.xlu0 %6702  ;;  %6066 = vmatprep.subr.msk.bf16.mxu1 %vm7540_vm9, %v6064_v28  ;;  %1013 = vmatprep.mubr.f32.mxu1 %v7170_v62  ;;  %v1059_v39 = vsel %vm1054_vm12, %v6685_v34, %v6694_v17  ;;  %v6070_v16 = vpack.c.bf16 %v1067_v44, %v1060_v59  ;;  %v6079_v61 = vpack.c.bf16 %v1068_v41, %v1061_v33  ;;  %v6630_v11 = vunpack.i.h.bf16 %v7544_v32 }
 0x19a   : > { %v6705_v55 = vunpack.i.h.bf16 %v7657_v50  ;;  %v6704_v56 = vunpack.i.l.bf16 %v7657_v50  ;;  %6060 = vmatprep.subr.msk.bf16.mxu0 %vm7540_vm9, %v6058_v53  ;;  %942 = vmatprep.mubr.f32.mxu0 %v7170_v62  ;;  %v1430_v27 = vsel %vm1421_vm13, %v6709_v47, %v6710_v46  ;;  %v6073_v30 = vpack.c.bf16 %v1066_v25, %v1059_v39 }
 0x19b   : > { %5632 = vmatmul.mubr.msk.f32.vlgmr.msra.gmra.mrb[0].mxu1 %vm414_vm11, %v7324_v1  ;;  %5629 = vmatmul.mubr.msk.f32.vlgmr.msra.gmra.mrb[4].mxu0 %vm414_vm11, %v7324_v1  ;;  %v6719_v34 = vunpack.i.l.bf16 %v7655_v49  ;;  %v6720_v38 = vunpack.i.h.bf16 %v7655_v49  ;;  %v6100_v57 = vpack.c.bf16 %v6630_v11, %v6629_v13 }
 0x19c   : > { %6069 = vmatpush1.bf16.msk.msra.mxu1 %vm7540_vm9, %v6067_v9  ;;  %v1423_v23 = vsel %vm1421_vm13, %v6704_v56, %v6705_v55  ;;  %6063 = vmatpush1.bf16.msk.msra.mxu0 %vm7540_vm9, %v6061_v42 }
 0x19d   : > { %v6728_v63 = vpop.permute.xlu1 %6727  ;;  %v6713_v12 = vpop.permute.xlu0 %6712  ;;  %6078 = vmatprep.subr.msk.bf16.mxu1 %vm7540_vm9, %v6076_v58  ;;  %1230 = vmatprep.mubr.f32.mxu1 %v7170_v62  ;;  %v6082_v37 = vpack.c.bf16 %v1430_v27, %v1423_v23  ;;  %v1424_v17 = vsel %vm1421_vm13, %v6705_v55, %v6719_v34  ;;  %v1425_v28 = vsel %vm1421_vm13, %v6719_v34, %v6720_v38 }
 0x19e   : > { %v6715_v43 = vunpack.i.h.bf16 %v6713_v12  ;;  %v6714_v35 = vunpack.i.l.bf16 %v6713_v12  ;;  %6072 = vmatprep.subr.msk.bf16.mxu0 %vm7540_vm9, %v6070_v16  ;;  %1159 = vmatprep.mubr.f32.mxu0 %v7170_v62  ;;  %v6730_v14 = vunpack.i.h.bf16 %v6728_v63  ;;  %v6729_v15 = vunpack.i.l.bf16 %v6728_v63 }
 0x19f   : > { %5638 = vmatmul.mubr.msk.f32.vlgmr.msra.gmra.mrb[2].mxu1 %vm414_vm11, %v7535_v21  ;;  %5635 = vmatmul.mubr.msk.f32.vlgmr.msra.gmra.mrb[0].mxu0 %vm414_vm11, %v7535_v21 }
 0x1a0   : > { %v1429_v36 = vsel %vm1421_vm13, %v6715_v43, %v6709_v47  ;;  %v1422_v45 = vsel %vm1421_vm13, %v6714_v35, %v6704_v56  ;;  %6081 = vmatpush1.bf16.msk.msra.mxu1 %vm7540_vm9, %v6079_v61  ;;  %6075 = vmatpush1.bf16.msk.msra.mxu0 %vm7540_vm9, %v6073_v30  ;;  %v1428_v49 = vsel %vm1421_vm13, %v6730_v14, %v6629_v13 }
 0x1a1   : > { %v7707_v31 = vpop.permute.xlu1 %6737  ;;  %v6723_v0 = vpop.permute.xlu0 %6722  ;;  %v6085_v40 = vpack.c.bf16 %v1429_v36, %v1422_v45  ;;  %1372 = vmatprep.mubr.f32.mxu1 %v7170_v62  ;;  %6084 = vmatprep.subr.msk.bf16.mxu0 %vm7540_vm9, %v6082_v37  ;;  %v1427_v50 = vsel %vm1421_vm13, %v6729_v15, %v6730_v14 }
 0x1a2   : > { %v6725_v10 = vunpack.i.h.bf16 %v6723_v0  ;;  %v6724_v18 = vunpack.i.l.bf16 %v6723_v0  ;;  %1301 = vmatprep.mubr.f32.mxu0 %v7170_v62  ;;  %v6740_v54 = vunpack.i.h.bf16 %v7707_v31  ;;  %v6739_v59 = vunpack.i.l.bf16 %v7707_v31 }
 0x1a3   : > { %5644 = vmatmul.mubr.msk.f32.vlgmr.msra.gmra.mrb[0].mxu1 %vm414_vm11, %v7535_v21  ;;  %5641 = vmatmul.mubr.msk.f32.vlgmr.msra.gmra.mrb[4].mxu0 %vm414_vm11, %v7535_v21  ;;  %v1426_v21 = vsel %vm1421_vm13, %v6720_v38, %v6729_v15 }
 0x1a4   : > { %v1431_v19 = vsel %vm1421_vm13, %v6710_v46, %v6724_v18  ;;  %v1432_v24 = vsel %vm1421_vm13, %v6724_v18, %v6725_v10  ;;  %6087 = vmatpush1.bf16.msk.msra.mxu0 %vm7540_vm9, %v6085_v40  ;;  %1526 = vmatprep.mubr.f32.mxu0 %v7170_v62  ;;  %v1790_v41 = vsel %vm1788_vm14, %v6739_v59, %v6740_v54 }
 0x1a5   : > { %v6748_v32 = vpop.permute.xlu1 %6747  ;;  %v6733_v26 = vpop.permute.xlu0 %6732  ;;  %v6091_v51 = vpack.c.bf16 %v1431_v19, %v1424_v17  ;;  %v6088_v48 = vpack.c.bf16 %v1432_v24, %v1425_v28  ;;  %1597 = vmatprep.mubr.f32.mxu1 %v7170_v62 }
 0x1a6   : > { %v6735_v52 = vunpack.i.h.bf16 %v6733_v26  ;;  %v6734_v22 = vunpack.i.l.bf16 %v6733_v26  ;;  %v6749_v9 = vunpack.i.l.bf16 %v6748_v32  ;;  %v6750_v47 = vunpack.i.h.bf16 %v6748_v32 }
 0x1a7   : > { %5647 = vmatmul.mubr.msk.f32.vlgmr.msra.gmra.mrb[0].mxu0 %vm414_vm11, %v7533_v20  ;;  %6090 = vmatprep.subr.msk.bf16.mxu1 %vm7540_vm9, %v6088_v48 }
 0x1a8   : > { %v1435_v53 = vsel %vm1421_vm13, %v6735_v52, %v6630_v11  ;;  %v1433_v55 = vsel %vm1421_vm13, %v6725_v10, %v6734_v22  ;;  %v1434_v56 = vsel %vm1421_vm13, %v6734_v22, %v6735_v52  ;;  %6093 = vmatpush1.bf16.msk.msra.mxu1 %vm7540_vm9, %v6091_v51  ;;  %1668 = vmatprep.mubr.f32.mxu0 %v7170_v62  ;;  %vm3677_vm13 = vcmask 64512  }
 0x1a9   : > { %v6758_v58 = vpop.permute.xlu1 %6757  ;;  %v6743_v60 = vpop.permute.xlu0 %6742  ;;  %v6103_v42 = vpack.c.bf16 %v1435_v53, %v1428_v49  ;;  %v6097_v44 = vpack.c.bf16 %v1433_v55, %v1426_v21  ;;  %6102 = vmatprep.subr.msk.bf16.mxu1 %vm7540_vm9, %v6100_v57  ;;  %v6094_v39 = vpack.c.bf16 %v1434_v56, %v1427_v50  ;;  %v1789_v25 = vsel %vm1788_vm14, %v6749_v9, %v6739_v59 }
 0x1aa   : > { %v6745_v46 = vunpack.i.h.bf16 %v6743_v60  ;;  %v6744_v33 = vunpack.i.l.bf16 %v6743_v60  ;;  %v6760_v63 = vunpack.i.h.bf16 %v6758_v58  ;;  %v6759_v12 = vunpack.i.l.bf16 %v6758_v58 }
 0x1ab   : > { %5650 = vmatmul.mubr.msk.f32.vlgmr.msra.gmra.mrb[2].mxu1 %vm414_vm11, %v7533_v20  ;;  %6096 = vmatprep.subr.msk.bf16.mxu0 %vm7540_vm9, %v6094_v39 }
 0x1ac   : > { %v1796_v16 = vsel %vm1788_vm14, %v6750_v47, %v6744_v33  ;;  %v1797_v23 = vsel %vm1788_vm14, %v6744_v33, %v6745_v46  ;;  %6099 = vmatpush1.bf16.msk.msra.mxu0 %vm7540_vm9, %v6097_v44  ;;  %6105 = vmatpush1.bf16.msk.msra.mxu1 %vm7540_vm9, %v6103_v42  ;;  %v1799_v34 = vsel %vm1788_vm14, %v6759_v12, %v6760_v63 }
 0x1ad   : > { %v6768_v43 = vpop.permute.xlu1 %6767  ;;  %v6753_v35 = vpop.permute.xlu0 %6752  ;;  %v6109_v61 = vpack.c.bf16 %v1796_v16, %v1789_v25  ;;  %1739 = vmatprep.mubr.f32.mxu1 %v7170_v62  ;;  %v6106_v36 = vpack.c.bf16 %v1797_v23, %v1790_v41  ;;  %v1798_v45 = vsel %vm1788_vm14, %v6745_v46, %v6759_v12 }
 0x1ae   : > { %v6755_v27 = vunpack.i.h.bf16 %v6753_v35  ;;  %v6754_v30 = vunpack.i.l.bf16 %v6753_v35  ;;  %v6770_v31 = vunpack.i.h.bf16 %v6768_v43  ;;  %v6769_v0 = vunpack.i.l.bf16 %v6768_v43 }
 0x1af   : > { %5653 = vmatmul.mubr.msk.f32.vlgmr.msra.gmra.mrb[4].mxu0 %vm414_vm11, %v7533_v20  ;;  %5656 = vmatmul.mubr.msk.f32.vlgmr.msra.gmra.mrb[0].mxu1 %vm414_vm11, %v7533_v20 }
 0x1b0   : > { %v1791_v37 = vsel %vm1788_vm14, %v6740_v54, %v6754_v30  ;;  %v1792_v38 = vsel %vm1788_vm14, %v6754_v30, %v6755_v27  ;;  %6108 = vmatprep.subr.msk.bf16.mxu0 %vm7540_vm9, %v6106_v36  ;;  %1893 = vmatprep.mubr.f32.mxu0 %v7170_v62  ;;  %v1800_v32 = vsel %vm1788_vm14, %v6760_v63, %v6769_v0 }
 0x1b1   : > { %v6773_v40 = vpop.permute.xlu1 %6772  ;;  %v6763_v10 = vpop.permute.xlu0 %6762  ;;  %v6115_v11 = vpack.c.bf16 %v1798_v45, %v1791_v37  ;;  %6111 = vmatpush1.bf16.msk.msra.mxu0 %vm7540_vm9, %v6109_v61  ;;  %v6112_v17 = vpack.c.bf16 %v1799_v34, %v1792_v38  ;;  %1964 = vmatprep.mubr.f32.mxu1 %v7170_v62  ;;  %v1801_v26 = vsel %vm1788_vm14, %v6769_v0, %v6770_v31 }
 0x1b2   : > { %v6775_v13 = vunpack.i.h.bf16 %v6773_v40  ;;  %v6774_v18 = vunpack.i.l.bf16 %v6773_v40  ;;  %v6765_v14 = vunpack.i.h.bf16 %v6763_v10  ;;  %v6764_v15 = vunpack.i.l.bf16 %v6763_v10 }
 0x1b3   : > { %6114 = vmatprep.subr.msk.bf16.mxu1 %vm7540_vm9, %v6112_v17 }
 0x1b4   : > { %v1802_v20 = vsel %vm1788_vm14, %v6770_v31, %v6775_v13  ;;  %v6124_v19 = vpack.c.bf16 %v6775_v13, %v6774_v18  ;;  %v1795_v24 = vsel %vm1788_vm14, %v6765_v14, %v6774_v18  ;;  %v1793_v28 = vsel %vm1788_vm14, %v6755_v27, %v6764_v15  ;;  %6117 = vmatpush1.bf16.msk.msra.mxu1 %vm7540_vm9, %v6115_v11 }
 0x1b5   : > { %v1794_v51 = vsel %vm1788_vm14, %v6764_v15, %v6765_v14  ;;  %v1755_v52 = vpop.permute.xlu0 %1754  ;;  %v6127_v57 = vpack.c.bf16 %v1802_v20, %v1795_v24  ;;  %v6121_v22 = vpack.c.bf16 %v1800_v32, %v1793_v28 }
 0x1b6   : > { %5659 = vmatmul.mubr.msk.f32.vlgmr.msra.gmra.mrb[0].mxu0 %vm414_vm11, %v1755_v52  ;;  %v6118_v48 = vpack.c.bf16 %v1801_v26, %v1794_v51  ;;  %6126 = vmatprep.subr.msk.bf16.mxu1 %vm7540_vm9, %v6124_v19 }
 0x1b7   : > { %2035 = vmatprep.mubr.f32.mxu0 %v7170_v62  ;;  %5662 = vmatmul.mubr.msk.f32.vlgmr.msra.gmra.mrb[2].mxu1 %vm414_vm11, %v1755_v52 }
 0x1b8   : > { %6120 = vmatprep.subr.msk.bf16.mxu0 %vm7540_vm9, %v6118_v48  ;;  %6129 = vmatpush1.bf16.msk.msra.mxu1 %vm7540_vm9, %v6127_v57 }
 0x1b9   : > { %6123 = vmatpush1.bf16.msk.msra.mxu0 %vm7540_vm9, %v6121_v22  ;;  %2106 = vmatprep.mubr.f32.mxu1 %v7170_v62  ;;  %vm8069_vm9 = vmpackc.low %vm2503_vm7, %vm7174_vm8  ;;  %vm2498_vm8 = vcmask 244736  }
 0x1bb   : > { %5668 = vmatmul.mubr.msk.f32.vlgmr.msra.gmra.mrb[0].mxu1 %vm414_vm11, %v1755_v52 }
 0x1bc   : > { %5665 = vmatmul.mubr.msk.f32.vlgmr.msra.gmra.mrb[4].mxu0 %vm414_vm11, %v1755_v52  ;;  %3228 = vmatprep.mubr.f32.mxu1 %v7170_v62  ;;  %vm3728_vm11 = vcmask 982016  }
 0x1bd   : > { %2578 = vmatprep.mubr.f32.mxu0 %v7170_v62 }
 0x1c6   : > { %v2124_v56 = vpop.permute.xlu0 %2123 }
 0x262   : > { %v571_v49 = vpop.f32.mrb[2].mxu0 }
 0x263   : > { %v573_v21 = vpop.f32.mrb[3].mxu0 }
 0x289   : > { %v1895_v50 = vpop.f32.mrb[0].mxu0 }
 0x28a   : > { %v1897_v53 = vpop.f32.mrb[1].mxu0  ;;  %v1966_v54 = vpop.f32.mrb[2].mxu1  ;;  %v2126_v35 = vadd.f32 %v2124_v56, %v1895_v50 }
 0x28b   : > { %v6472_v59 = vadd.f32 %v1966_v54, %v571_v49  ;;  %v1968_v55 = vpop.f32.mrb[3].mxu1  ;;  %v2127_v46 = vadd.f32 %v2124_v56, %v1897_v53 }
 0x28c   : > { %v6473_v29 = vadd.f32 %v1968_v55, %v573_v21  ;;  %v2134_v27 = vmax.f32 %v2126_v35, 0.0 }
 0x28d   : > { %v2128_v58 = vadd.f32 %v6472_v59, %v2124_v56  ;;  %v2135_v12 = vmax.f32 %v2127_v46, 0.0 }
 0x28e   : > { %v2129_v9 = vadd.f32 %v6473_v29, %v2124_v56  ;;  %v2108_v42 = vpop.f32.mrb[0].mxu1 }
 0x28f   : > { %v2037_v60 = vpop.f32.mrb[4].mxu0  ;;  %v2136_v47 = vmax.f32 %v2128_v58, 0.0  ;;  %v2110_v33 = vpop.f32.mrb[1].mxu1  ;;  %v2132_v23 = vadd.f32 %v2124_v56, %v2108_v42 }
 0x290   : > { %v2039_v44 = vpop.f32.mrb[5].mxu0  ;;  %v2137_v39 = vmax.f32 %v2129_v9, 0.0  ;;  %v2130_v16 = vadd.f32 %v2124_v56, %v2037_v60  ;;  %v2133_v61 = vadd.f32 %v2124_v56, %v2110_v33 }
 0x291   : > { %v2131_v63 = vadd.f32 %v2124_v56, %v2039_v44  ;;  %2154 = vrot.lane.b32.xlu1 %v2136_v47, %s7168_s28  ;;  %v2140_v25 = vmax.f32 %v2132_v23, 0.0 }
 0x292   : > { %2156 = vrot.lane.b32.xlu0 %v2137_v39, %s7168_s28  ;;  %v2138_v41 = vmax.f32 %v2130_v16, 0.0  ;;  %v2141_v30 = vmax.f32 %v2133_v61, 0.0 }
 0x293   : > { %v2139_v43 = vmax.f32 %v2131_v63, 0.0 }
 0x295   : > { %2152 = vrot.lane.b32.xlu1 %v2135_v12, %s7168_s28 }
 0x296   : > { %2160 = vrot.lane.b32.xlu0 %v2139_v43, %s7168_s28 }
 0x299   : > { %2158 = vrot.lane.b32.xlu1 %v2138_v41, %s7168_s28 }
 0x29a   : > { %2162 = vrot.lane.b32.xlu0 %v2140_v25, %s7168_s28 }
 0x29d   : > { %2150 = vrot.lane.b32.xlu1 %v2134_v27, %s7168_s28 }
 0x2a1   : > { %2164 = vrot.lane.b32.xlu1 %v2141_v30, %s7168_s28 }
 0x303   : > { %v2155_v36 = vpop.permute.xlu1 %2154 }
 0x304   : > { %v2157_v34 = vpop.permute.xlu0 %2156 }
 0x305   : > { %v2168_v45 = vsel %vm391_vm10, %v2155_v36, %v2157_v34 }
 0x306   : > { %v2183_v31 = vmax.f32 %v2136_v47, %v2168_v45 }
 0x307   : > { %v2153_v0 = vpop.permute.xlu1 %2152 }
 0x308   : > { %v2167_v37 = vsel %vm391_vm10, %v2153_v0, %v2155_v36  ;;  %2201 = vrot.lane.b32.xlu1 %v2183_v31, %s7161_s4  ;;  %v2161_v38 = vpop.permute.xlu0 %2160 }
 0x309   : > { %v2182_v40 = vmax.f32 %v2135_v12, %v2167_v37 }
 0x30b   : > { %v2159_v10 = vpop.permute.xlu1 %2158  ;;  %2199 = vrot.lane.b32.xlu0 %v2182_v40, %s7161_s4 }
 0x30c   : > { %v2169_v11 = vsel %vm391_vm10, %v2157_v34, %v2159_v10  ;;  %v2170_v13 = vsel %vm391_vm10, %v2159_v10, %v2161_v38  ;;  %v2163_v18 = vpop.permute.xlu0 %2162 }
 0x30d   : > { %v2184_v14 = vmax.f32 %v2137_v39, %v2169_v11  ;;  %v2185_v15 = vmax.f32 %v2138_v41, %v2170_v13  ;;  %v2171_v17 = vsel %vm391_vm10, %v2161_v38, %v2163_v18 }
 0x30e   : > { %v2186_v32 = vmax.f32 %v2139_v43, %v2171_v17 }
 0x30f   : > { %v2151_v20 = vpop.permute.xlu1 %2150  ;;  %2203 = vrot.lane.b32.xlu0 %v2184_v14, %s7161_s4  ;;  %2205 = vrot.lane.b32.xlu1 %v2185_v15, %s7161_s4 }
 0x310   : > { %v2166_v19 = vsel %vm391_vm10, %v2151_v20, %v2153_v0 }
 0x311   : > { %v2181_v24 = vmax.f32 %v2134_v27, %v2166_v19 }
 0x313   : > { %v2165_v26 = vpop.permute.xlu1 %2164  ;;  %2197 = vrot.lane.b32.xlu0 %v2181_v24, %s7161_s4  ;;  %2207 = vrot.lane.b32.xlu1 %v2186_v32, %s7161_s4 }
 0x314   : > { %v2172_v28 = vsel %vm391_vm10, %v2163_v18, %v2165_v26  ;;  %v2188_v51 = vmax.f32 %v2141_v30, %v2165_v26  ;;  %vm3378_vm10 = vcmask 998400  }
 0x315   : > { %v2187_v52 = vmax.f32 %v2140_v25, %v2172_v28 }
 0x317   : > { %2209 = vrot.lane.b32.xlu0 %v2187_v52, %s7161_s4  ;;  %2211 = vrot.lane.b32.xlu1 %v2188_v51, %s7161_s4 }
 0x37a   : > { %v2202_v57 = vpop.permute.xlu1 %2201 }
 0x37d   : > { %v2200_v22 = vpop.permute.xlu0 %2199 }
 0x37e   : > { %v2214_v48 = vsel %vm179_vm0, %v2200_v22, %v2202_v57 }
 0x37f   : > { %v2229_v49 = vmax.f32 %v2182_v40, %v2214_v48 }
 0x381   : > { %2237 = vst [vmem:[#allocation3 + $0x8] sm:$0x3f] %v2229_v49  ;;  %v2293_v21 = vrot.slane %v2229_v49, 4  ;;  %v2206_v50 = vpop.permute.xlu1 %2205  ;;  %v2204_v53 = vpop.permute.xlu0 %2203  ;;  %v2250_v54 = vrot.slane %v2229_v49, 2  ;;  %v2319_v45 = vrot.slane %v2229_v49, 6 }
 0x382   : > { %v2215_v59 = vsel %vm179_vm0, %v2202_v57, %v2204_v53  ;;  %v2216_v55 = vsel %vm179_vm0, %v2204_v53, %v2206_v50 }
 0x383   : > { %2305 = vst [vmem:[#allocation3 + $0x60] ss:$-44 sps:$4 sm:$0xf3] %v2293_v21   ;;  %v2230_v56 = vmax.f32 %v2183_v31, %v2215_v59  ;;  %v2231_v29 = vmax.f32 %v2184_v14, %v2216_v55  ;;  %2257 = vrot.lane.b32.xlu0 %v2250_v54, %s7162_s6 }
 0x385   : > { %2238 = vst [vmem:[#allocation3 + $0x10] sm:$0x3f] %v2230_v56  ;;  %2239 = vst [vmem:[#allocation3 + $0x18] sm:$0x3f] %v2231_v29  ;;  %v2294_v58 = vrot.slane %v2230_v56, 4  ;;  %v2295_v60 = vrot.slane %v2231_v29, 4  ;;  %v2208_v9 = vpop.permute.xlu1 %2207  ;;  %v2198_v42 = vpop.permute.xlu0 %2197 }
 0x386   : > { %2355 = vst [vmem:[#allocation3 + $0x90] sm:$0x3f] %v2230_v56  ;;  %2356 = vst [vmem:[#allocation3 + $0x98] sm:$0x3f] %v2231_v29  ;;  %v2320_v44 = vrot.slane %v2230_v56, 6  ;;  %v2217_v46 = vsel %vm179_vm0, %v2206_v50, %v2208_v9  ;;  %v2213_v47 = vsel %vm179_vm0, %v2198_v42, %v2200_v22  ;;  %v2252_v23 = vrot.slane %v2231_v29, 2 }
 0x387   : > { %2306 = vst [vmem:[#allocation3 + $0x68] ss:$-44 sps:$4 sm:$0xf3] %v2294_v58   ;;  %2307 = vst [vmem:[#allocation3 + $0x70] ss:$-44 sps:$4 sm:$0xf3] %v2295_v60   ;;  %v2232_v33 = vmax.f32 %v2185_v15, %v2217_v46  ;;  %v2228_v39 = vmax.f32 %v2181_v24, %v2213_v47 }
 0x388   : > { %2327 = vrot.lane.b32.xlu0 %v2320_v44, %s7162_s6  ;;  %v2251_v0 = vrot.slane %v2230_v56, 2  ;;  %v2321_v37 = vrot.slane %v2231_v29, 6 }
 0x389   : > { %2240 = vst [vmem:[#allocation3 + $0x20] sm:$0x3f] %v2232_v33  ;;  %v2296_v63 = vrot.slane %v2232_v33, 4  ;;  %2357 = vst [vmem:[#allocation3 + $0xa0] sm:$0x3f] %v2232_v33  ;;  %v2212_v12 = vpop.permute.xlu1 %2211  ;;  %v2210_v16 = vpop.permute.xlu0 %2209  ;;  %v2249_v43 = vrot.slane %v2228_v39, 2 }
 0x38a   : > { %2236 = vst [vmem:[#allocation3] sm:$0x3f] %v2228_v39  ;;  %v2235_v35 = vmax.f32 %v2188_v51, %v2212_v12  ;;  %v2218_v41 = vsel %vm179_vm0, %v2208_v9, %v2210_v16  ;;  %v2219_v25 = vsel %vm179_vm0, %v2210_v16, %v2212_v12  ;;  %v2322_v34 = vrot.slane %v2232_v33, 6 }
 0x38b   : > { %2308 = vst [vmem:[#allocation3 + $0x78] ss:$-44 sps:$4 sm:$0xf3] %v2296_v63   ;;  %v2233_v27 = vmax.f32 %v2186_v32, %v2218_v41  ;;  %v2234_v61 = vmax.f32 %v2187_v52, %v2219_v25  ;;  %2255 = vrot.lane.b32.xlu1 %v2249_v43, %s7162_s6  ;;  %v2253_v31 = vrot.slane %v2232_v33, 2  ;;  %vm2283_vm0 = vcmask 64518  }
 0x38c   : > { %2261 = vrot.lane.b32.xlu0 %v2252_v23, %s7162_s6  ;;  %2360 = vst.msk [vmem:[#allocation3 + $0xb8] sm:$0x3f] %vm2241_vm15, %v2235_v35 }
 0x38d   : > { %2242 = vst.msk [vmem:[#allocation3 + $0x28] sm:$0x3f] %vm2241_vm15, %v2233_v27  ;;  %v2297_v30 = vrot.slane %v2233_v27, 4  ;;  %v2298_v36 = vrot.slane %v2234_v61, 4  ;;  %2358 = vst [vmem:[#allocation3 + $0xa8] sm:$0x3f] %v2233_v27 }
 0x38e   : > { %2359 = vst [vmem:[#allocation3 + $0xb0] sm:$0x3f] %v2234_v61  ;;  %v2323_v38 = vrot.slane %v2233_v27, 6  ;;  %v2254_v40 = vrot.slane %v2233_v27, 2  ;;  %v7849_v11 = vld [vmem:[#allocation3 + $0x98] sm:$0x3f] }
 0x38f   : > { %2309 = vst [vmem:[#allocation3 + $0x80] ss:$-44 sps:$4 sm:$0xf3] %v2297_v30   ;;  %2311 = vst.msk [vmem:[#allocation3 + $0x58] sm:$0xf0] %vm2310_vm3, %v2298_v36  ;;  %2325 = vrot.lane.b32.xlu1 %v2319_v45, %s7162_s6  ;;  %v2324_v18 = vrot.slane %v2234_v61, 6 }
 0x390   : > { %2318 = vst.msk [vmem:[#allocation3 + $0x88] sm:$0x3] %vm2317_vm4, %v2298_v36  ;;  %2331 = vrot.lane.b32.xlu0 %v2322_v34, %s7162_s6  ;;  %v7844_v10 = vld [vmem:[#allocation3 + $0xa0] sm:$0x3f]  ;;  %v7892_v42 = vld [vmem:[#allocation3 + $0x90] sm:$0x3f] }
 0x391   : > { %v7853_v13 = vpack.i.bf16 %v7844_v10, %v7849_v11 }
 0x393   : > { %2259 = vrot.lane.b32.xlu1 %v2251_v0, %s7162_s6 }
 0x394   : > { %2263 = vrot.lane.b32.xlu0 %v2253_v31, %s7162_s6  ;;  %v7855_v14 = vld [vmem:[#allocation3 + $0xa8] sm:$0x3f] }
 0x395   : > { %v7857_v15 = vld [vmem:[#allocation3 + $0xb0] sm:$0x3f] }
 0x396   : > { %v7864_v17 = vpack.i.bf16 %v7857_v15, %v7855_v14 }
 0x397   : > { %2329 = vrot.lane.b32.xlu1 %v2321_v37, %s7162_s6 }
 0x398   : > { %2333 = vrot.lane.b32.xlu0 %v2323_v38, %s7162_s6 }
 0x39b   : > { %2265 = vrot.lane.b32.xlu1 %v2254_v40, %s7162_s6  ;;  %v2384_v40 = vld [vmem:[#allocation3 + $0xb8] sm:$0x3f] }
 0x39c   : > { %2387 = vrot.lane.b32.xlu0 %v7334_v3, %s7164_s19 }
 0x39f   : > { %2335 = vrot.lane.b32.xlu1 %v2324_v18, %s7162_s6 }
 0x3a0   : > { %6778 = vrot.lane.b32.xlu0 %v7853_v13, %s7167_s27 }
 0x3a3   : > { %2389 = vrot.lane.b32.xlu1 %v7344_v5, %s7164_s19 }
 0x3a4   : > { %6783 = vrot.lane.b32.xlu0 %v7864_v17, %s7167_s27 }
 0x3f5   : > { %v2258_v20 = vpop.permute.xlu0 %2257 }
 0x3fa   : > { %v2328_v19 = vpop.permute.xlu0 %2327 }
 0x3fd   : > { %v2256_v24 = vpop.permute.xlu1 %2255 }
 0x3fe   : > { %v2262_v32 = vpop.permute.xlu0 %2261  ;;  %v2267_v26 = vsel %vm228_vm1, %v2256_v24, %v2258_v20 }
 0x3ff   : > { %2278 = vst [vmem:[#allocation3 + $0x30] ss:$-44 sps:$4 sm:$0xcf] %v2267_v26  }
 0x401   : > { %v2326_v28 = vpop.permute.xlu1 %2325 }
 0x402   : > { %v2332_v51 = vpop.permute.xlu0 %2331  ;;  %v2337_v52 = vsel %vm228_vm1, %v2326_v28, %v2328_v19 }
 0x403   : > { %2348 = vst [vmem:[#allocation3 + $0x60] sm:$0xfc] %v2337_v52 }
 0x405   : > { %v2260_v57 = vpop.permute.xlu1 %2259 }
 0x406   : > { %v2264_v22 = vpop.permute.xlu0 %2263  ;;  %v2268_v48 = vsel %vm228_vm1, %v2258_v20, %v2260_v57  ;;  %v2269_v49 = vsel %vm228_vm1, %v2260_v57, %v2262_v32  ;;  %v7875_v50 = vld [vmem:[#allocation3] sm:$0xff]  ;;  %v7877_v53 = vld [vmem:[#allocation3 + $0x30] sm:$0xff] }
 0x407   : > { %v2270_v21 = vsel %vm228_vm1, %v2262_v32, %v2264_v22  ;;  %2279 = vst [vmem:[#allocation3 + $0x38] ss:$-44 sps:$4 sm:$0xcf] %v2268_v48   ;;  %2280 = vst [vmem:[#allocation3 + $0x40] ss:$-44 sps:$4 sm:$0xcf] %v2269_v49   ;;  %v7881_v54 = vpack.i.bf16 %v7877_v53, %v7875_v50  ;;  %v6162_v59 = vpack.c.bf16 %v7877_v53, %v7875_v50 }
 0x408   : > { %2281 = vst [vmem:[#allocation3 + $0x48] ss:$-44 sps:$4 sm:$0xcf] %v2270_v21   ;;  %v6842_v48 = vpack.i.bf16 %v2384_v40, %v7857_v15 }
 0x409   : > { %v2330_v55 = vpop.permute.xlu1 %2329  ;;  %6788 = vrot.lane.b32.xlu0 %v7881_v54, %s7167_s27 }
 0x40a   : > { %v2334_v56 = vpop.permute.xlu0 %2333  ;;  %v2338_v29 = vsel %vm228_vm1, %v2328_v19, %v2330_v55  ;;  %v2339_v58 = vsel %vm228_vm1, %v2330_v55, %v2332_v51  ;;  %v7890_v9 = vld [vmem:[#allocation3 + $0x60] sm:$0xff] }
 0x40b   : > { %v2340_v60 = vsel %vm228_vm1, %v2332_v51, %v2334_v56  ;;  %2349 = vst [vmem:[#allocation3 + $0x68] sm:$0xfc] %v2338_v29  ;;  %2350 = vst [vmem:[#allocation3 + $0x70] sm:$0xfc] %v2339_v58  ;;  %v7896_v44 = vpack.i.bf16 %v7892_v42, %v7890_v9  ;;  %v6167_v46 = vpack.c.bf16 %v7892_v42, %v7890_v9 }
 0x40c   : > { %2351 = vst [vmem:[#allocation3 + $0x78] sm:$0xfc] %v2340_v60 }
 0x40d   : > { %v2266_v47 = vpop.permute.xlu1 %2265  ;;  %6793 = vrot.lane.b32.xlu1 %v7896_v44, %s7167_s27 }
 0x40e   : > { %v2271_v33 = vsel %vm228_vm1, %v2264_v22, %v2266_v47  ;;  %2284 = vst.msk [vmem:[#allocation3 + $0x28] sm:$0xc0] %vm2283_vm0, %v2266_v47  ;;  %v7903_v39 = vld [vmem:[#allocation3 + $0x8] sm:$0xff]  ;;  %v7905_v63 = vld [vmem:[#allocation3 + $0x10] sm:$0xff]  ;;  %v7913_v23 = vld [vmem:[#allocation3 + $0x38] sm:$0xff] }
 0x40f   : > { %2291 = vst.msk [vmem:[#allocation3 + $0x58] sm:$0xf] %vm2290_vm5, %v2266_v47  ;;  %v7907_v12 = vld [vmem:[#allocation3 + $0x18] sm:$0xff]  ;;  %2282 = vst [vmem:[#allocation3 + $0x50] ss:$-44 sps:$4 sm:$0xcf] %v2271_v33   ;;  %v7911_v16 = vpack.i.bf16 %v7905_v63, %v7903_v39  ;;  %v6160_v27 = vpack.c.bf16 %v7913_v23, %v7903_v39  ;;  %v6892_v49 = vpack.i.bf16 %v7913_v23, %v7903_v39 }
 0x410   : > { %v7915_v43 = vld [vmem:[#allocation3 + $0x40] sm:$0xff]  ;;  %v7917_v35 = vld [vmem:[#allocation3 + $0x48] sm:$0xff] }
 0x411   : > { %v2336_v41 = vpop.permute.xlu1 %2335  ;;  %6798 = vrot.lane.b32.xlu0 %v7911_v16, %s7167_s27  ;;  %v6982_v25 = vpack.i.bf16 %v7915_v43, %v7905_v63  ;;  %v6170_v61 = vpack.c.bf16 %v7917_v35, %v7907_v12  ;;  %v6812_v28 = vpack.i.bf16 %v7915_v43, %v7913_v23  ;;  %v6922_v29 = vpack.i.bf16 %v7917_v35, %v7907_v12 }
 0x412   : > { %v2341_v30 = vsel %vm228_vm1, %v2334_v56, %v2336_v41  ;;  %2354 = vst.msk [vmem:[#allocation3 + $0x88] sm:$0xfc] %vm2353_vm6, %v2336_v41  ;;  %v7950_v51 = vld [vmem:[#allocation3 + $0x68] sm:$0xff]  ;;  %v7952_v52 = vld [vmem:[#allocation3 + $0x70] sm:$0xff]  ;;  %v8776_v53 = vpack.c.bf16 %v7915_v43, %v7905_v63 }
 0x413   : > { %2352 = vst [vmem:[#allocation3 + $0x80] sm:$0xfc] %v2341_v30  ;;  %v7939_v24 = vld [vmem:[#allocation3 + $0x78] sm:$0xff]  ;;  %v6817_v57 = vpack.i.bf16 %v7952_v52, %v7950_v51  ;;  %v7002_v58 = vpack.i.bf16 %v7849_v11, %v7950_v51  ;;  %v6177_v42 = vpack.c.bf16 %v7844_v10, %v7952_v52 }
 0x414   : > { %v6937_v56 = vpack.i.bf16 %v7855_v14, %v7939_v24  ;;  %v6174_v50 = vpack.c.bf16 %v7855_v14, %v7939_v24 }
 0x415   : > { %v2381_v34 = vld [vmem:[#allocation3 + $0x28] sm:$0xff] }
 0x416   : > { %v2382_v45 = vld [vmem:[#allocation3 + $0x58] sm:$0xff]  ;;  %v2365_v0 = vld [vmem:[#allocation3 + $0x20] sm:$0xff]  ;;  %v2370_v37 = vld [vmem:[#allocation3 + $0x50] sm:$0xff] }
 0x417   : > { %v7930_v31 = vpack.i.bf16 %v2382_v45, %v2381_v34  ;;  %v6967_v18 = vpack.i.bf16 %v2365_v0, %v7907_v12  ;;  %v7935_v20 = vpack.c.bf16 %v2370_v37, %v2365_v0  ;;  %v6847_v22 = vpack.i.bf16 %v2370_v37, %v7917_v35 }
 0x418   : > { %v6912_v21 = vpack.i.bf16 %v2382_v45, %v2370_v37 }
 0x419   : > { %6803 = vrot.lane.b32.xlu0 %v7930_v31, %s7167_s27  ;;  %v2383_v38 = vld [vmem:[#allocation3 + $0x88] sm:$0xff] }
 0x41a   : > { %v7937_v19 = vpack.i.bf16 %v2384_v40, %v2383_v38  ;;  %v7941_v32 = vld [vmem:[#allocation3 + $0x80] sm:$0xff] }
 0x41b   : > { %v6987_v26 = vpack.i.bf16 %v7941_v32, %v7939_v24  ;;  %v6917_v55 = vpack.i.bf16 %v2383_v38, %v7941_v32 }
 0x41c   : > { %6808 = vrot.lane.b32.xlu1 %v7937_v19, %s7167_s27 }
 0x41d   : > { %6823 = vrot.lane.b32.xlu0 %v6967_v18, %s7167_s27 }
 0x420   : > { %6813 = vrot.lane.b32.xlu1 %v6812_v28, %s7167_s27 }
 0x421   : > { %6828 = vrot.lane.b32.xlu0 %v7881_v54, %s7171_s30 }
 0x424   : > { %6818 = vrot.lane.b32.xlu1 %v6817_v57, %s7167_s27 }
 0x425   : > { %6833 = vrot.lane.b32.xlu0 %v7853_v13, %s7171_s30 }
 0x428   : > { %6838 = vrot.lane.b32.xlu1 %v7896_v44, %s7171_s30 }
 0x429   : > { %2986 = vrot.lane.b32.xlu0 %v7334_v3, %s7173_s1 }
 0x42c   : > { %6848 = vrot.lane.b32.xlu1 %v6847_v22, %s7167_s27 }
 0x42d   : > { %6843 = vrot.lane.b32.xlu0 %v6842_v48, %s7171_s30 }
 0x430   : > { %6853 = vrot.lane.b32.xlu1 %v6987_v26, %s7167_s27 }
 0x431   : > { %2988 = vrot.lane.b32.xlu0 %v7344_v5, %s7173_s1 }
 0x434   : > { %6858 = vrot.lane.b32.xlu1 %v7881_v54, %s7175_s23 }
 0x435   : > { %6863 = vrot.lane.b32.xlu0 %v7853_v13, %s7175_s23  ;;  %v6907_v13 = vpack.i.bf16 %v2381_v34, %v2365_v0 }
 0x438   : > { %6868 = vrot.lane.b32.xlu1 %v7896_v44, %s7175_s23 }
 0x439   : > { %6873 = vrot.lane.b32.xlu0 %v7930_v31, %s7175_s23 }
 0x43c   : > { %3326 = vrot.lane.b32.xlu1 %v7334_v3, %s7176_s14 }
 0x43d   : > { %6878 = vrot.lane.b32.xlu0 %v7864_v17, %s7175_s23 }
 0x440   : > { %6893 = vrot.lane.b32.xlu1 %v6892_v49, %s7177_s15 }
 0x441   : > { %6883 = vrot.lane.b32.xlu0 %v7937_v19, %s7175_s23 }
 0x444   : > { %6898 = vrot.lane.b32.xlu1 %v6812_v28, %s7171_s30 }
 0x445   : > { %6888 = vrot.lane.b32.xlu0 %v7911_v16, %s7171_s30 }
 0x448   : > { %6903 = vrot.lane.b32.xlu1 %v6817_v57, %s7171_s30 }
 0x449   : > { %3328 = vrot.lane.b32.xlu0 %v7344_v5, %s7176_s14  ;;  %s7183_s14 = smov (%p124_p4), [#allocation13]  }
 0x44c   : > { %6913 = vrot.lane.b32.xlu1 %v6912_v21, %s7171_s30 }
 0x44d   : > { %6908 = vrot.lane.b32.xlu0 %v6907_v13, %s7171_s30 }
 0x450   : > { %6918 = vrot.lane.b32.xlu1 %v6917_v55, %s7171_s30 }
 0x451   : > { %6933 = vrot.lane.b32.xlu0 %v6812_v28, %s7175_s23 }
 0x454   : > { %6923 = vrot.lane.b32.xlu1 %v6922_v29, %s7171_s30 }
 0x455   : > { %6938 = vrot.lane.b32.xlu0 %v6937_v56, %s7171_s30 }
 0x458   : > { %6928 = vrot.lane.b32.xlu1 %v7911_v16, %s7175_s23  ;;  %v8043_v16 = vpop.permute.xlu1 %2389 }
 0x459   : > { %6948 = vrot.lane.b32.xlu0 %v6967_v18, %s7175_s23 }
 0x45c   : > { %6943 = vrot.lane.b32.xlu1 %v6817_v57, %s7175_s23 }
 0x45d   : > { %6953 = vrot.lane.b32.xlu0 %v7881_v54, %s7177_s15  ;;  %v6992_v54 = vpack.i.bf16 %v7844_v10, %v7952_v52  ;;  %v6184_v52 = vpack.c.bf16 %v7857_v15, %v7941_v32 }
 0x460   : > { %6958 = vrot.lane.b32.xlu1 %v6847_v22, %s7175_s23 }
 0x461   : > { %6973 = vrot.lane.b32.xlu0 %v6847_v22, %s7177_s15 }
 0x464   : > { %6963 = vrot.lane.b32.xlu1 %v6987_v26, %s7175_s23 }
 0x465   : > { %6978 = vrot.lane.b32.xlu0 %v7864_v17, %s7177_s15  ;;  %v8027_v17 = vpop.permute.xlu0 %2387 }
 0x468   : > { %6968 = vrot.lane.b32.xlu1 %v6967_v18, %s7177_s15 }
 0x469   : > { %7003 = vrot.lane.b32.xlu0 %v7002_v58, %s7177_s15  ;;  %v8034_v60 = vpop.permute.xlu0 %6778 }
 0x46a   : > { %v6780_v28 = vunpack.i.l.bf16 %v8034_v60 }
 0x46c   : > { %6983 = vrot.lane.b32.xlu1 %v6982_v25, %s7177_s15 }
 0x46d   : > { %3669 = vrot.lane.b32.xlu0 %v7334_v3, %s7178_s16  ;;  %v8040_v47 = vpop.permute.xlu0 %6783 }
 0x470   : > { %6988 = vrot.lane.b32.xlu1 %v6987_v26, %s7177_s15 }
 0x471   : > { %3673 = vrot.lane.b32.xlu0 %v7344_v5, %s7178_s16 }
 0x474   : > { %6993 = vrot.lane.b32.xlu1 %v6992_v54, %s7177_s15 }
 0x475   : > { %7008 = vrot.lane.b32.xlu0 %v7930_v31, %s7177_s15 }
 0x478   : > { %6998 = vrot.lane.b32.xlu1 %v7896_v44, %s7177_s15 }
 0x479   : > { %4019 = vperm.xlu0 %6776, %v7354_v7   ;;  %v5178_v7 = vld [vmem:[#allocation11 + $0xa0] sm:$0xff] (%p124_p4) }
 0x47b   : > { %v6789_v33 = vpop.permute.xlu0 %6788 }
 0x47c   : > { %3671 = vrot.lane.b32.xlu1 %v7339_v4, %s7178_s16  ;;  %v6791_v38 = vunpack.i.h.bf16 %v6789_v33  ;;  %v6790_v40 = vunpack.i.l.bf16 %v6789_v33  ;;  %v5192_v4 = vld [vmem:[#allocation11 + $0x110] sm:$0xff] (%p124_p4) }
 0x47f   : > { %v6794_v25 = vpop.permute.xlu1 %6793 }
 0x480   : > { %3675 = vrot.lane.b32.xlu1 %v7349_v6, %s7178_s16  ;;  %v6796_v57 = vunpack.i.h.bf16 %v6794_v25  ;;  %v6795_v58 = vunpack.i.l.bf16 %v6794_v25  ;;  %v5193_v6 = vld [vmem:[#allocation11 + $0x118] sm:$0xff] (%p124_p4) }
 0x483   : > { %v6799_v41 = vpop.permute.xlu0 %6798 }
 0x484   : > { %7013 = vrot.lane.b32.xlu1 %v7937_v19, %s7177_s15  ;;  %v6801_v45 = vunpack.i.h.bf16 %v6799_v41  ;;  %v6800_v31 = vunpack.i.l.bf16 %v6799_v41  ;;  %v6781_v19 = vunpack.i.h.bf16 %v8034_v60  ;;  %v2478_v41 = vsel %vm1054_vm12, %v6796_v57, %v6780_v28  ;;  %s5586_s15 = sshll.u32 (%p124_p4), %s7183_s14, 4  ;;  %s5587_s15 = int_to_ptr.vmem [resolvable:$true] %s5586_s15 }
 0x485   :  { %p7119_p6 = scmp.lt.s32.totalorder (%p124_p4), %s5587_s15, %s5587_s15 }
 0x486   : > { %v2463_v22 = vsel %vm1054_vm12, %v6790_v40, %v6800_v31  ;;  %v2464_v49 = vsel %vm1054_vm12, %v6800_v31, %v6801_v45  ;;  %v2479_v60 = vsel %vm1054_vm12, %v6780_v28, %v6781_v19 }
 0x488   : > { %4024 = vperm.xlu1 %7017, %v7359_v8   ;;  %v5179_v8 = vld [vmem:[#allocation11 + $0xa8] sm:$0xff] (%p124_p4) }
 0x48b   : > { %v8048_v30 = vpop.permute.xlu0 %6803 }
 0x48e   : > { %v8050_v34 = vpop.permute.xlu1 %6808 }
 0x48f   : > { %v8052_v44 = vpop.permute.xlu0 %6823 }
 0x490   : > { %v6826_v28 = vunpack.i.h.bf16 %v8052_v44  ;;  %v6825_v57 = vunpack.i.l.bf16 %v8052_v44 }
 0x492   : > { %v6814_v0 = vpop.permute.xlu1 %6813 }
 0x493   : > { %v8054_v37 = vpop.permute.xlu0 %6828  ;;  %v6816_v18 = vunpack.i.h.bf16 %v6814_v0  ;;  %v6815_v26 = vunpack.i.l.bf16 %v6814_v0 }
 0x494   : > { %v6831_v24 = vunpack.i.h.bf16 %v8054_v37 }
 0x495   : > { %v2468_v48 = vsel %vm1054_vm12, %v6791_v38, %v6815_v26  ;;  %v2469_v13 = vsel %vm1054_vm12, %v6815_v26, %v6816_v18 }
 0x496   : > { %v6132_v21 = vpack.c.bf16 %v2468_v48, %v2463_v22  ;;  %v6819_v55 = vpop.permute.xlu1 %6818  ;;  %v6130_v29 = vpack.c.bf16 %v2469_v13, %v2464_v49 }
 0x497   : > { %v8062_v56 = vpop.permute.xlu0 %6833  ;;  %v6821_v54 = vunpack.i.h.bf16 %v6819_v55  ;;  %v6820_v33 = vunpack.i.l.bf16 %v6819_v55  ;;  %v6786_v55 = vunpack.i.h.bf16 %v8040_v47 }
 0x498   : > { %6131 = vmatprep.subr.bf16.mxu0 %v6130_v29  ;;  %v6785_v29 = vunpack.i.l.bf16 %v8040_v47  ;;  %v6806_v47 = vunpack.i.h.bf16 %v8048_v30 }
 0x499   : > { %v2473_v0 = vsel %vm1054_vm12, %v6795_v58, %v6820_v33  ;;  %v2474_v31 = vsel %vm1054_vm12, %v6820_v33, %v6821_v54  ;;  %6133 = vmatpush1.bf16.msra.mxu0 %v6132_v21  ;;  %v2465_v58 = vsel %vm1054_vm12, %v6801_v45, %v6825_v57  ;;  %v2466_v33 = vsel %vm1054_vm12, %v6825_v57, %v6826_v28 }
 0x49a   : > { %v6134_v40 = vpack.c.bf16 %v2479_v60, %v2474_v31  ;;  %v6137_v26 = vpack.c.bf16 %v2478_v41, %v2473_v0  ;;  %v8073_v25 = vpop.permute.xlu1 %6838  ;;  %v2480_v36 = vsel %vm1054_vm12, %v6781_v19, %v6785_v29  ;;  %v2481_v45 = vsel %vm1054_vm12, %v6785_v29, %v6786_v55 }
 0x49b   : > { %v8075_v22 = vpop.permute.xlu0 %2986 }
 0x49c   : > { %6136 = vmatprep.subr.msk.bf16.mxu0 %vm8069_vm9, %v6134_v40 }
 0x49d   : > { %6139 = vmatpush1.bf16.msk.msra.mxu0 %vm8069_vm9, %v6137_v26 }
 0x49e   : > { %v6849_v48 = vpop.permute.xlu1 %6848 }
 0x49f   : > { %v8083_v49 = vpop.permute.xlu0 %6843  ;;  %v6851_v13 = vunpack.i.h.bf16 %v6849_v48  ;;  %v6850_v21 = vunpack.i.l.bf16 %v6849_v48 }
 0x4a0   : > { %5671 = vmatmul.mubr.msk.f32.vlgmr.msra.gmra.mrb[6].mxu0 %vm2498_vm8, %v8027_v17 }
 0x4a1   : > { %v2470_v44 = vsel %vm1054_vm12, %v6816_v18, %v6850_v21  ;;  %2584 = vmatprep.mubr.f32.mxu0 %v7170_v62  ;;  %v2471_v60 = vsel %vm1054_vm12, %v6850_v21, %v6851_v13  ;;  %v6805_v18 = vunpack.i.l.bf16 %v8048_v30 }
 0x4a2   : > { %v6142_v41 = vpack.c.bf16 %v2470_v44, %v2465_v58  ;;  %v6854_v0 = vpop.permute.xlu1 %6853  ;;  %v6140_v40 = vpack.c.bf16 %v2471_v60, %v2466_v33  ;;  %v2472_v58 = vsel %vm1054_vm12, %v6851_v13, %v6806_v47  ;;  %v6811_v60 = vunpack.i.h.bf16 %v8050_v34 }
 0x4a3   : > { %v8094_v31 = vpop.permute.xlu0 %2988  ;;  %v6856_v26 = vunpack.i.h.bf16 %v6854_v0  ;;  %v6855_v48 = vunpack.i.l.bf16 %v6854_v0  ;;  %v6810_v0 = vunpack.i.l.bf16 %v8050_v34  ;;  %v2467_v30 = vsel %vm1054_vm12, %v6826_v28, %v6805_v18 }
 0x4a4   : > { %5672 = vmatmul.mubr.msk.f32.gmra.mrb[8].mxu0 %vm2498_vm8, %v8043_v16  ;;  %6141 = vmatprep.subr.bf16.mxu0 %v6140_v40  ;;  %v2482_v40 = vsel %vm1054_vm12, %v6786_v55, %v6811_v60  ;;  %v6835_v18 = vunpack.i.l.bf16 %v8062_v56 }
 0x4a5   : > { %v2475_v57 = vsel %vm1054_vm12, %v6821_v54, %v6855_v48  ;;  %v2476_v21 = vsel %vm1054_vm12, %v6855_v48, %v6856_v26  ;;  %6143 = vmatpush1.bf16.msra.mxu0 %v6142_v41  ;;  %2655 = vmatprep.mubr.f32.mxu0 %v7170_v62  ;;  %v6150_v54 = vpack.c.bf16 %v2472_v58, %v2467_v30 }
 0x4a6   : > { %v6144_v44 = vpack.c.bf16 %v2481_v45, %v2476_v21  ;;  %v6147_v33 = vpack.c.bf16 %v2480_v36, %v2475_v57  ;;  %v8106_v19 = vpop.permute.xlu1 %6858  ;;  %v2477_v13 = vsel %vm1054_vm12, %v6856_v26, %v6810_v0  ;;  %v6164_v48 = vpack.c.bf16 %v7849_v11, %v7950_v51 }
 0x4a7   : > { %v8108_v29 = vpop.permute.xlu0 %6863  ;;  %v6154_v47 = vpack.c.bf16 %v2482_v40, %v2477_v13  ;;  %v6830_v51 = vunpack.i.l.bf16 %v8054_v37  ;;  %v6840_v57 = vunpack.i.l.bf16 %v8073_v25 }
 0x4a8   : > { %6146 = vmatprep.subr.msk.bf16.mxu0 %vm8069_vm9, %v6144_v44 }
 0x4a9   : > { %6149 = vmatpush1.bf16.msk.msra.mxu0 %vm8069_vm9, %v6147_v33 }
 0x4aa   : > { %v8118_v36 = vpop.permute.xlu1 %6868  ;;  %6151 = vmatprep.subr.bf16.mxu0 %v6150_v54 }
 0x4ab   : > { %v8120_v41 = vpop.permute.xlu0 %6873 }
 0x4ac   : > { %5675 = vmatmul.mubr.msk.f32.vlgmr.msra.gmra.mrb[10].mxu0 %vm2498_vm8, %v8027_v17 }
 0x4ad   : > { %6153 = vmatpush3.bf16.msra.mxu0 %v6150_v54  ;;  %2661 = vmatprep.mubr.f32.mxu0 %v7170_v62 }
 0x4ae   : > { %v8126_v34 = vpop.permute.xlu1 %3326  ;;  %6156 = vmatprep.subr.msk.bf16.mxu0 %vm8069_vm9, %v6154_v47 }
 0x4af   : > { %v8128_v28 = vpop.permute.xlu0 %6878 }
 0x4b0   : > { %5676 = vmatmul.mubr.msk.f32.gmra.mrb[12].mxu0 %vm2498_vm8, %v8043_v16 }
 0x4b1   : > { %6159 = vmatpush3.bf16.msk.msra.mxu0 %vm8069_vm9, %v6154_v47  ;;  %5893 = vmatprep.mubr.msk.f32.mxu0 %vm2498_vm8, %v8027_v17 }
 0x4b2   : > { %v8138_v55 = vpop.permute.xlu1 %6893  ;;  %6161 = vmatprep.subr.bf16.mxu0 %v6160_v27 }
 0x4b3   : > { %v8140_v26 = vpop.permute.xlu0 %6883 }
 0x4b4   : > { %5894 = vmatmul.mubr.msk.f32.vlgmr.msra.gmra.mrb[14].mxu0 %vm2498_vm8, %v8043_v16  ;;  %v6836_v16 = vunpack.i.h.bf16 %v8062_v56 }
 0x4b5   : > { %6163 = vmatpush1.bf16.msra.mxu0 %v6162_v59  ;;  %2821 = vmatprep.mubr.f32.mxu0 %v7170_v62 }
 0x4b6   : > { %v6899_v17 = vpop.permute.xlu1 %6898  ;;  %6166 = vmatprep.subr.msk.bf16.mxu0 %vm8069_vm9, %v6164_v48 }
 0x4b7   : > { %v6889_v45 = vpop.permute.xlu0 %6888  ;;  %v6900_v12 = vunpack.i.l.bf16 %v6899_v17 }
 0x4b8   : > { %v6891_v23 = vunpack.i.h.bf16 %v6889_v45  ;;  %v6890_v14 = vunpack.i.l.bf16 %v6889_v45  ;;  %v6841_v45 = vunpack.i.h.bf16 %v8073_v25 }
 0x4b9   : > { %6169 = vmatpush1.bf16.msk.msra.mxu0 %vm8069_vm9, %v6167_v46  ;;  %v6901_v46 = vunpack.i.h.bf16 %v6899_v17  ;;  %v3043_v21 = vsel %vm1788_vm14, %v6831_v24, %v6900_v12  ;;  %v3054_v17 = vsel %vm1788_vm14, %v6835_v18, %v6836_v16 }
 0x4ba   : > { %v8160_v39 = vpop.permute.xlu1 %6903  ;;  %6171 = vmatprep.subr.bf16.mxu0 %v6170_v61  ;;  %v3039_v27 = vsel %vm1788_vm14, %v6890_v14, %v6891_v23  ;;  %v3038_v37 = vsel %vm1788_vm14, %v6830_v51, %v6890_v14 }
 0x4bb   : > { %v8162_v11 = vpop.permute.xlu0 %3328  ;;  %v6906_v10 = vunpack.i.h.bf16 %v8160_v39  ;;  %v6905_v35 = vunpack.i.l.bf16 %v8160_v39  ;;  %v3044_v61 = vsel %vm1788_vm14, %v6900_v12, %v6901_v46 }
 0x4bc   : > { %5682 = vmatmul.mubr.msk.f32.vlgmr.msra.gmra.mrb[6].mxu0 %vm2498_vm8, %v7334_v3  ;;  %v6190_v15 = vpack.c.bf16 %v3044_v61, %v3039_v27 }
 0x4bd   : > { %6173 = vmatpush1.bf16.msra.mxu0 %v8776_v53  ;;  %2827 = vmatprep.mubr.f32.mxu0 %v7170_v62  ;;  %v3049_v32 = vsel %vm1788_vm14, %v6905_v35, %v6906_v10  ;;  %v6192_v53 = vpack.c.bf16 %v3043_v21, %v3038_v37 }
 0x4be   : > { %v8175_v59 = vpop.permute.xlu1 %6913  ;;  %6176 = vmatprep.subr.msk.bf16.mxu0 %vm8069_vm9, %v6174_v50  ;;  %v6845_v50 = vunpack.i.l.bf16 %v8083_v49 }
 0x4bf   : > { %v8177_v9 = vpop.permute.xlu0 %6908  ;;  %v6916_v60 = vunpack.i.h.bf16 %v8175_v59  ;;  %v6915_v0 = vunpack.i.l.bf16 %v8175_v59 }
 0x4c0   : > { %5683 = vmatmul.mubr.msk.f32.gmra.mrb[8].mxu0 %vm2498_vm8, %v7344_v5  ;;  %v6911_v30 = vunpack.i.h.bf16 %v8177_v9  ;;  %v6910_v13 = vunpack.i.l.bf16 %v8177_v9  ;;  %v3048_v9 = vsel %vm1788_vm14, %v6840_v57, %v6905_v35  ;;  %v6866_v57 = vunpack.i.h.bf16 %v8108_v29 }
 0x4c1   : > { %6179 = vmatpush1.bf16.msk.msra.mxu0 %vm8069_vm9, %v6177_v42  ;;  %2898 = vmatprep.mubr.f32.mxu0 %v7170_v62  ;;  %v3047_v35 = vsel %vm1788_vm14, %v6915_v0, %v6916_v60 }
 0x4c2   : > { %v8188_v63 = vpop.permute.xlu1 %6918  ;;  %6181 = vmatprep.subr.bf16.mxu0 %v7935_v20  ;;  %v3042_v51 = vsel %vm1788_vm14, %v6910_v13, %v6911_v30 }
 0x4c3   : > { %v8190_v43 = vpop.permute.xlu0 %6933  ;;  %v6920_v40 = vunpack.i.l.bf16 %v8188_v63  ;;  %v6921_v12 = vunpack.i.h.bf16 %v8188_v63  ;;  %v3053_v63 = vsel %vm1788_vm14, %v6841_v45, %v6835_v18 }
 0x4c4   : > { %5686 = vmatmul.mubr.msk.f32.vlgmr.msra.gmra.mrb[10].mxu0 %vm2498_vm8, %v7334_v3 }
 0x4c5   : > { %6183 = vmatpush3.bf16.msra.mxu0 %v7935_v20  ;;  %2904 = vmatprep.mubr.f32.mxu0 %v7170_v62 }
 0x4c6   : > { %v6924_v58 = vpop.permute.xlu1 %6923  ;;  %6186 = vmatprep.subr.msk.bf16.mxu0 %vm8069_vm9, %v6184_v52 }
 0x4c7   : > { %v6939_v44 = vpop.permute.xlu0 %6938  ;;  %v6926_v56 = vunpack.i.h.bf16 %v6924_v58  ;;  %v6925_v20 = vunpack.i.l.bf16 %v6924_v58  ;;  %v6865_v58 = vunpack.i.l.bf16 %v8108_v29 }
 0x4c8   : > { %v6940_v33 = vunpack.i.l.bf16 %v6939_v44  ;;  %v6941_v54 = vunpack.i.h.bf16 %v6939_v44  ;;  %5687 = vmatmul.mubr.msk.f32.gmra.mrb[12].mxu0 %vm2498_vm8, %v7344_v5 }
 0x4c9   : > { %v3040_v47 = vsel %vm1788_vm14, %v6891_v23, %v6925_v20  ;;  %v3045_v48 = vsel %vm1788_vm14, %v6901_v46, %v6926_v56  ;;  %6189 = vmatpush3.bf16.msk.msra.mxu0 %vm8069_vm9, %v6184_v52  ;;  %5904 = vmatprep.mubr.msk.f32.mxu0 %vm2498_vm8, %v7334_v3  ;;  %v6194_v46 = vpack.c.bf16 %v3054_v17, %v3049_v32  ;;  %v6846_v52 = vunpack.i.h.bf16 %v8083_v49  ;;  %v5209_v3 = vld [vmem:[#allocation11 + $0x198] sm:$0xff] (%p124_p4) }
 0x4ca   : > { %v8229_v59 = vpop.permute.xlu1 %6928  ;;  %6191 = vmatprep.subr.bf16.mxu0 %v6190_v15  ;;  %v3051_v23 = vsel %vm1788_vm14, %v6940_v33, %v6920_v40  ;;  %v6202_v14 = vpack.c.bf16 %v3045_v48, %v3040_v47  ;;  %v3056_v25 = vsel %vm1788_vm14, %v6941_v54, %v6845_v50  ;;  %v3041_v27 = vsel %vm1788_vm14, %v6925_v20, %v6910_v13 }
 0x4cb   : > { %v8231_v42 = vpop.permute.xlu0 %6948  ;;  %v3046_v61 = vsel %vm1788_vm14, %v6926_v56, %v6915_v0  ;;  %v3050_v44 = vsel %vm1788_vm14, %v6906_v10, %v6940_v33  ;;  %v3055_v18 = vsel %vm1788_vm14, %v6836_v16, %v6941_v54  ;;  %v6204_v15 = vpack.c.bf16 %v3056_v25, %v3051_v23 }
 0x4cc   : > { %5905 = vmatmul.mubr.msk.f32.vlgmr.msra.gmra.mrb[14].mxu0 %vm2498_vm8, %v7344_v5  ;;  %v6200_v24 = vpack.c.bf16 %v3046_v61, %v3041_v27  ;;  %v6881_v49 = vunpack.i.h.bf16 %v8128_v28  ;;  %v6197_v32 = vpack.c.bf16 %v3053_v63, %v3048_v9  ;;  %v3052_v56 = vsel %vm1788_vm14, %v6920_v40, %v6921_v12 }
 0x4cd   : > { %6193 = vmatpush1.bf16.msra.mxu0 %v6192_v53  ;;  %3151 = vmatprep.mubr.f32.mxu0 %v7170_v62  ;;  %v6210_v20 = vpack.c.bf16 %v3047_v35, %v3042_v51  ;;  %v6931_v60 = vunpack.i.h.bf16 %v8229_v59  ;;  %v6930_v0 = vunpack.i.l.bf16 %v8229_v59  ;;  %v6951_v30 = vunpack.i.h.bf16 %v8231_v42 }
 0x4ce   : > { %v8249_v21 = vpop.permute.xlu1 %6943  ;;  %6196 = vmatprep.subr.msk.bf16.mxu0 %vm8069_vm9, %v6194_v46  ;;  %6201 = vmatprep.subr.bf16.mxu1 %v6200_v24  ;;  %v6950_v39 = vunpack.i.l.bf16 %v8231_v42  ;;  %v6880_v10 = vunpack.i.l.bf16 %v8128_v28  ;;  %v6936_v16 = vunpack.i.h.bf16 %v8190_v43  ;;  %v6935_v33 = vunpack.i.l.bf16 %v8190_v43 }
 0x4cf   : > { %v8251_v37 = vpop.permute.xlu0 %6953  ;;  %6203 = vmatpush1.bf16.msra.mxu1 %v6202_v14  ;;  %v6207_v54 = vpack.c.bf16 %v3055_v18, %v3050_v44  ;;  %v3057_v47 = vsel %vm1788_vm14, %v6845_v50, %v6846_v52  ;;  %v6860_v48 = vunpack.i.l.bf16 %v8106_v19  ;;  %v8286_v43 = vsel %vm3378_vm10, %v6865_v58, %v6866_v57 }
 0x4d0   : > { %6206 = vmatprep.subr.msk.bf16.mxu1 %vm8069_vm9, %v6204_v15  ;;  %v6214_v53 = vpack.c.bf16 %v3057_v47, %v3052_v56  ;;  %v6946_v59 = vunpack.i.h.bf16 %v8249_v21  ;;  %v6945_v9 = vunpack.i.l.bf16 %v8249_v21  ;;  %v3382_v46 = vsel %vm3378_vm10, %v6950_v39, %v6951_v30 }
 0x4d1   : > { %6199 = vmatpush1.bf16.msk.msra.mxu0 %vm8069_vm9, %v6197_v32  ;;  %v3380_v23 = vsel %vm3378_vm10, %v6930_v0, %v6931_v60  ;;  %v6861_v14 = vunpack.i.h.bf16 %v8106_v19  ;;  %v3397_v25 = vsel %vm3378_vm10, %v6880_v10, %v6881_v49  ;;  %v3385_v51 = vsel %vm3378_vm10, %v6935_v33, %v6936_v16 }
 0x4d2   : > { %v8273_v13 = vpop.permute.xlu1 %6958  ;;  %6211 = vmatprep.subr.bf16.mxu0 %v6210_v20  ;;  %v3379_v35 = vsel %vm3378_vm10, %v6860_v48, %v6930_v0  ;;  %v3381_v63 = vsel %vm3378_vm10, %v6931_v60, %v6950_v39  ;;  %v6871_v21 = vunpack.i.h.bf16 %v8118_v36  ;;  %v3390_v44 = vsel %vm3378_vm10, %v6945_v9, %v6946_v59 }
 0x4d3   : > { %v8275_v40 = vpop.permute.xlu0 %6973  ;;  %v6961_v17 = vunpack.i.h.bf16 %v8273_v13  ;;  %v6960_v45 = vunpack.i.l.bf16 %v8273_v13  ;;  %6209 = vmatpush1.bf16.msk.msra.mxu1 %vm8069_vm9, %v6207_v54  ;;  %v6220_v15 = vpack.c.bf16 %v3385_v51, %v3380_v23  ;;  %v6870_v0 = vunpack.i.l.bf16 %v8118_v36 }
 0x4d4   : > { %5693 = vmatmul.mubr.msk.f32.vlgmr.msra.gmra.mrb[6].mxu0 %vm2498_vm8, %v8075_v22  ;;  %v6976_v32 = vunpack.i.h.bf16 %v8275_v40  ;;  %v6975_v56 = vunpack.i.l.bf16 %v8275_v40  ;;  %v6876_v39 = vunpack.i.h.bf16 %v8120_v41  ;;  %v6396_v5 = vpack.c.bf16 (%p124_p4), %v5209_v3, %v5208_v2  ;;  %v5171_v3 = vld [vmem:[#allocation11 + $0x68] sm:$0xff] (%p124_p4) }
 0x4d5   : > { %v3386_v50 = vsel %vm3378_vm10, %v6936_v16, %v6960_v45  ;;  %v3387_v12 = vsel %vm3378_vm10, %v6960_v45, %v6961_v17  ;;  %6213 = vmatpush3.bf16.msra.mxu0 %v6210_v20  ;;  %3157 = vmatprep.mubr.f32.mxu0 %v7170_v62  ;;  %v3384_v16 = vsel %vm3378_vm10, %v6861_v14, %v6935_v33 }
 0x4d6   : > { %v8306_v27 = vpop.permute.xlu1 %6963  ;;  %v6230_v24 = vpack.c.bf16 %v3387_v12, %v3382_v46  ;;  %5697 = vmatmul.mubr.msk.f32.vlgmr.msra.gmra.mrb[4].mxu1 %vm2498_vm8, %v8075_v22  ;;  %6216 = vmatprep.subr.msk.bf16.mxu0 %vm8069_vm9, %v6214_v53  ;;  %v6232_v18 = vpack.c.bf16 %v3386_v50, %v3381_v63  ;;  %v3396_v45 = vsel %vm3378_vm10, %v6866_v57, %v6880_v10  ;;  %v6875_v57 = vunpack.i.l.bf16 %v8120_v41 }
 0x4d7   : > { %v8308_v61 = vpop.permute.xlu0 %6978  ;;  %v6966_v19 = vunpack.i.h.bf16 %v8306_v27  ;;  %v6965_v52 = vunpack.i.l.bf16 %v8306_v27  ;;  %3234 = vmatprep.mubr.f32.mxu1 %v7170_v62  ;;  %v6222_v36 = vpack.c.bf16 %v3384_v16, %v3379_v35  ;;  %v3394_v12 = vsel %vm3378_vm10, %v6871_v21, %v6865_v58 }
 0x4d8   : > { %6231 = vmatprep.subr.bf16.mxu1 %v6230_v24  ;;  %5694 = vmatmul.mubr.msk.f32.gmra.mrb[8].mxu0 %vm2498_vm8, %v8094_v31  ;;  %v3383_v13 = vsel %vm3378_vm10, %v6951_v30, %v6875_v57  ;;  %v6981_v58 = vunpack.i.h.bf16 %v8308_v61  ;;  %v6980_v24 = vunpack.i.l.bf16 %v8308_v61 }
 0x4d9   : > { %v3391_v20 = vsel %vm3378_vm10, %v6946_v59, %v6965_v52  ;;  %v3392_v60 = vsel %vm3378_vm10, %v6965_v52, %v6966_v19  ;;  %6219 = vmatpush3.bf16.msk.msra.mxu0 %vm8069_vm9, %v6214_v53  ;;  %5915 = vmatprep.mubr.msk.f32.mxu0 %vm2498_vm8, %v8075_v22  ;;  %v3389_v53 = vsel %vm3378_vm10, %v6870_v0, %v6945_v9  ;;  %v6896_v52 = vunpack.i.h.bf16 %v8138_v55 }
 0x4da   : > { %v6234_v54 = vpack.c.bf16 %v3397_v25, %v3392_v60  ;;  %v8336_v47 = vpop.permute.xlu1 %6968  ;;  %5698 = vmatmul.mubr.msk.f32.gmra.mrb[6].mxu1 %vm2498_vm8, %v8094_v31  ;;  %6221 = vmatprep.subr.bf16.mxu0 %v6220_v15  ;;  %v6224_v22 = vpack.c.bf16 %v8286_v43, %v3390_v44  ;;  %v6237_v50 = vpack.c.bf16 %v3396_v45, %v3391_v20  ;;  %v6885_v25 = vunpack.i.l.bf16 %v8140_v26 }
 0x4db   : > { %v8338_v48 = vpop.permute.xlu0 %7003  ;;  %v6971_v33 = vunpack.i.h.bf16 %v8336_v47  ;;  %v6970_v59 = vunpack.i.l.bf16 %v8336_v47  ;;  %6233 = vmatpush1.bf16.msra.mxu1 %v6232_v18  ;;  %3569 = vmatprep.mubr.f32.mxu1 %v7170_v62  ;;  %v3737_v43 = vsel %vm3728_vm11, %v6975_v56, %v6976_v32  ;;  %v3388_v9 = vsel %vm3378_vm10, %v6961_v17, %v6876_v39 }
 0x4dc   : > { %5916 = vmatmul.mubr.msk.f32.vlgmr.msra.gmra.mrb[14].mxu0 %vm2498_vm8, %v8094_v31  ;;  %6236 = vmatprep.subr.msk.bf16.mxu1 %vm8069_vm9, %v6234_v54  ;;  %v6886_v17 = vunpack.i.h.bf16 %v8140_v26  ;;  %v6227_v27 = vpack.c.bf16 %v3394_v12, %v3389_v53  ;;  %v6240_v29 = vpack.c.bf16 %v3388_v9, %v3383_v13  ;;  %v3393_v42 = vsel %vm3378_vm10, %v6966_v19, %v6885_v25 }
 0x4dd   : > { %v3732_v10 = vsel %vm3728_vm11, %v6970_v59, %v6971_v33  ;;  %6223 = vmatpush1.bf16.msra.mxu0 %v6222_v36  ;;  %3492 = vmatprep.mubr.f32.mxu0 %v7170_v62  ;;  %v6895_v19 = vunpack.i.l.bf16 %v8138_v55  ;;  %v6956_v15 = vunpack.i.h.bf16 %v8251_v37  ;;  %v3747_v60 = vsel %vm3728_vm11, %v6980_v24, %v6981_v58 }
 0x4de   : > { %v6984_v41 = vpop.permute.xlu1 %6983  ;;  %v6260_v31 = vpack.c.bf16 %v3737_v43, %v3732_v10  ;;  %6226 = vmatprep.subr.msk.bf16.mxu0 %vm8069_vm9, %v6224_v22  ;;  %v3398_v18 = vsel %vm3378_vm10, %v6881_v49, %v6886_v17  ;;  %v7005_v53 = vunpack.i.l.bf16 %v8338_v48 }
 0x4df   : > { %v8364_v46 = vpop.permute.xlu0 %3669  ;;  %v6986_v23 = vunpack.i.h.bf16 %v6984_v41  ;;  %v6985_v14 = vunpack.i.l.bf16 %v6984_v41  ;;  %6239 = vmatpush1.bf16.msk.msra.mxu1 %vm8069_vm9, %v6237_v50  ;;  %v6244_v20 = vpack.c.bf16 %v3398_v18, %v3393_v42  ;;  %v3734_v45 = vsel %vm3728_vm11, %v6956_v15, %v6896_v52 }
 0x4e0   : > { %6261 = vmatprep.subr.bf16.mxu1 %v6260_v31 }
 0x4e1   : > { %v3731_v51 = vsel %vm3728_vm11, %v6985_v14, %v6970_v59  ;;  %v3736_v35 = vsel %vm3728_vm11, %v6986_v23, %v6975_v56  ;;  %6229 = vmatpush1.bf16.msk.msra.mxu0 %vm8069_vm9, %v6227_v27  ;;  %v6955_v56 = vunpack.i.l.bf16 %v8251_v37  ;;  %v3730_v37 = vsel %vm3728_vm11, %v6895_v19, %v6985_v14 }
 0x4e2   : > { %v6262_v30 = vpack.c.bf16 %v3736_v35, %v3731_v51  ;;  %v8386_v26 = vpop.permute.xlu1 %6988  ;;  %5708 = vmatmul.mubr.msk.f32.vlgmr.msra.gmra.mrb[4].mxu1 %vm2498_vm8, %v8126_v34  ;;  %6241 = vmatprep.subr.bf16.mxu0 %v6240_v29  ;;  %v3735_v39 = vsel %vm3728_vm11, %v6896_v52, %v6986_v23  ;;  %v7006_v59 = vunpack.i.h.bf16 %v8338_v48 }
 0x4e3   : > { %v8388_v63 = vpop.permute.xlu0 %3673  ;;  %v6991_v21 = vunpack.i.h.bf16 %v8386_v26  ;;  %v6990_v44 = vunpack.i.l.bf16 %v8386_v26  ;;  %3575 = vmatprep.mubr.f32.mxu1 %v7170_v62  ;;  %v3729_v36 = vsel %vm3728_vm11, %v6955_v56, %v6895_v19  ;;  %v6250_v10 = vpack.c.bf16 %v3735_v39, %v3730_v37 }
 0x4e4   : > { %6263 = vmatpush1.bf16.msra.mxu1 %v6262_v30  ;;  %5704 = vmatmul.mubr.msk.f32.vlgmr.msra.gmra.mrb[6].mxu0 %vm2498_vm8, %v8126_v34  ;;  %v6252_v14 = vpack.c.bf16 %v3734_v45, %v3729_v36 }
 0x4e5   : > { %v3742_v55 = vsel %vm3728_vm11, %v6990_v44, %v6991_v21  ;;  %6243 = vmatpush3.bf16.msra.mxu0 %v6240_v29  ;;  %3498 = vmatprep.mubr.f32.mxu0 %v7170_v62 }
 0x4e6   : > { %v6264_v28 = vpack.c.bf16 %v3747_v60, %v3742_v55  ;;  %v6994_v49 = vpop.permute.xlu1 %6993  ;;  %5709 = vmatmul.mubr.msk.f32.gmra.mrb[6].mxu1 %vm2498_vm8, %v8162_v11  ;;  %6246 = vmatprep.subr.msk.bf16.mxu0 %vm8069_vm9, %v6244_v20 }
 0x4e7   : > { %v7009_v0 = vpop.permute.xlu0 %7008  ;;  %v6996_v16 = vunpack.i.h.bf16 %v6994_v49  ;;  %v6995_v54 = vunpack.i.l.bf16 %v6994_v49  ;;  %3919 = vmatprep.mubr.f32.mxu1 %v7170_v62 }
 0x4e8   : > { %6266 = vmatprep.subr.msk.bf16.mxu1 %vm8069_vm9, %v6264_v28  ;;  %v7011_v57 = vunpack.i.h.bf16 %v7009_v0  ;;  %5705 = vmatmul.mubr.msk.f32.gmra.mrb[8].mxu0 %vm2498_vm8, %v8162_v11  ;;  %v7010_v48 = vunpack.i.l.bf16 %v7009_v0 }
 0x4e9   : > { %v3741_v22 = vsel %vm3728_vm11, %v6995_v54, %v6990_v44  ;;  %v3746_v50 = vsel %vm3728_vm11, %v6996_v16, %v6980_v24  ;;  %v3740_v43 = vsel %vm3728_vm11, %v7005_v53, %v6995_v54  ;;  %v3745_v9 = vsel %vm3728_vm11, %v7006_v59, %v6996_v16  ;;  %6249 = vmatpush3.bf16.msk.msra.mxu0 %vm8069_vm9, %v6244_v20 }
 0x4ea   : > { %v6267_v41 = vpack.c.bf16 %v3746_v50, %v3741_v22  ;;  %5926 = vmatprep.mubr.msk.f32.mxu0 %vm2498_vm8, %v8126_v34  ;;  %v6999_v31 = vpop.permute.xlu1 %6998  ;;  %6251 = vmatprep.subr.bf16.mxu0 %v6250_v10  ;;  %v6254_v13 = vpack.c.bf16 %v3745_v9, %v3740_v43  ;;  %v3733_v29 = vsel %vm3728_vm11, %v6971_v33, %v7010_v48 }
 0x4eb   : > { %v7001_v12 = vunpack.i.h.bf16 %v6999_v31  ;;  %v7000_v23 = vunpack.i.l.bf16 %v6999_v31  ;;  %v3738_v24 = vsel %vm3728_vm11, %v6976_v32, %v7011_v57 }
 0x4ec   : > { %6269 = vmatpush1.bf16.msk.msra.mxu1 %vm8069_vm9, %v6267_v41  ;;  %5927 = vmatmul.mubr.msk.f32.vlgmr.msra.gmra.mrb[14].mxu0 %vm2498_vm8, %v8162_v11  ;;  %v6270_v11 = vpack.c.bf16 %v3738_v24, %v3733_v29  ;;  %v4180_v29 = vld [vmem:[#allocation8 + $0x80] sm:$0xff] }
 0x4ed   : > { %v3739_v17 = vsel %vm3728_vm11, %v7000_v23, %v7005_v53  ;;  %v3744_v25 = vsel %vm3728_vm11, %v7001_v12, %v7006_v59  ;;  %6253 = vmatpush1.bf16.msra.mxu0 %v6252_v14  ;;  %3842 = vmatprep.mubr.f32.mxu0 %v7170_v62  ;;  %v4184_v24 = vld [vmem:[#allocation8 + $0xa0] sm:$0xff] }
 0x4ee   : > { %v6257_v27 = vpack.c.bf16 %v3744_v25, %v3739_v17  ;;  %v3672_v34 = vpop.permute.xlu1 %3671  ;;  %6256 = vmatprep.subr.msk.bf16.mxu0 %vm8069_vm9, %v6254_v13  ;;  %v4181_v13 = vld [vmem:[#allocation8 + $0x88] sm:$0xff] }
 0x4ef   : > { %v3678_v51 = vsel %vm3677_vm13, %v8364_v46, %v3672_v34  ;;  %v4185_v17 = vld [vmem:[#allocation8 + $0xa8] sm:$0xff] }
 0x4f0   : > { %5719 = vmatmul.mubr.msk.f32.vlgmr.msra.gmra.mrb[4].mxu1 %vm2498_vm8, %v3678_v51 }
 0x4f1   : > { %3925 = vmatprep.mubr.f32.mxu1 %v7170_v62  ;;  %6259 = vmatpush1.bf16.msk.msra.mxu0 %vm8069_vm9, %v6257_v27  ;;  %v6280_v27 = vpack.c.bf16 %v4185_v17, %v4181_v13  ;;  %v4190_v13 = vld [vmem:[#allocation8 + $0xd0] sm:$0xff] }
 0x4f2   : > { %v3676_v47 = vpop.permute.xlu1 %3675  ;;  %6271 = vmatprep.subr.bf16.mxu0 %v6270_v11  ;;  %v4194_v17 = vld [vmem:[#allocation8 + $0xf0] sm:$0xff] }
 0x4f3   : > { %v3679_v40 = vsel %vm3677_vm13, %v8388_v63, %v3676_v47  ;;  %6281 = vmatprep.subr.bf16.mxu1 %v6280_v27  ;;  %v4193_v47 = vld [vmem:[#allocation8 + $0xe8] sm:$0xff] }
 0x4f4   : > { %5720 = vmatmul.mubr.msk.f32.gmra.mrb[6].mxu1 %vm2498_vm8, %v3679_v40  ;;  %5715 = vmatmul.mubr.msk.f32.vlgmr.msra.gmra.mrb[6].mxu0 %vm2498_vm8, %v3678_v51  ;;  %v4168_v27 = vld [vmem:[#allocation8 + $0x28] sm:$0xff] }
 0x4f5   : > { %4266 = vmatprep.mubr.f32.mxu1 %v7170_v62  ;;  %6273 = vmatpush3.bf16.msra.mxu0 %v6270_v11  ;;  %v6282_v11 = vpack.c.bf16 %v4184_v24, %v4180_v29 }
 0x4f6   : > { %v7014_v32 = vpop.permute.xlu1 %7013  ;;  %3848 = vmatprep.mubr.f32.mxu0 %v7170_v62 }
 0x4f7   : > { %v7016_v33 = vunpack.i.h.bf16 %v7014_v32  ;;  %v7015_v46 = vunpack.i.l.bf16 %v7014_v32  ;;  %6283 = vmatpush1.bf16.msra.mxu1 %v6282_v11  ;;  %v4188_v32 = vld [vmem:[#allocation8 + $0xc0] sm:$0xff] }
 0x4f8   : > { %5716 = vmatmul.mubr.msk.f32.gmra.mrb[8].mxu0 %vm2498_vm8, %v3679_v40  ;;  %v4020_v19 = vpop.permute.xlu0 %4019 }
 0x4f9   : > { %v3743_v35 = vsel %vm3728_vm11, %v6991_v21, %v7015_v46  ;;  %v3748_v42 = vsel %vm3728_vm11, %v6981_v58, %v7016_v33  ;;  %5937 = vmatprep.mubr.msk.f32.mxu0 %vm2498_vm8, %v3678_v51  ;;  %v4189_v51 = vld [vmem:[#allocation8 + $0xc8] sm:$0xff]  ;;  %v4192_v33 = vld [vmem:[#allocation8 + $0xe0] sm:$0xff] }
 0x4fa   : > { %v6274_v30 = vpack.c.bf16 %v3748_v42, %v3743_v35  ;;  %v6286_v46 = vpack.c.bf16 %v4192_v33, %v4188_v32  ;;  %v4183_v35 = vld [vmem:[#allocation8 + $0x98] sm:$0xff]  ;;  %v4167_v32 = vld [vmem:[#allocation8 + $0x20] sm:$0xff]  ;;  %v4172_v33 = vld [vmem:[#allocation8 + $0x48] sm:$0xff] }
 0x4fb   : > { %v4187_v42 = vld [vmem:[#allocation8 + $0xb8] sm:$0xff] }
 0x4fc   : > { %6276 = vmatprep.subr.msk.bf16.mxu0 %vm8069_vm9, %v6274_v30 }
 0x4fd   : > { %6279 = vmatpush3.bf16.msk.msra.mxu0 %vm8069_vm9, %v6274_v30 }
 0x500   : > { %5938 = vmatmul.mubr.msk.f32.vlgmr.msra.gmra.mrb[14].mxu0 %vm2498_vm8, %v3679_v40  ;;  %v6284_v40 = vpack.c.bf16 %v4193_v47, %v4189_v51 }
 0x502   : > { %6285 = vmatprep.subr.bf16.mxu1 %v6284_v40  ;;  %v4163_v40 = vld [vmem:[#allocation8] sm:$0xff] }
 0x503   : > { %6287 = vmatpush1.bf16.msra.mxu1 %v6286_v46  ;;  %v4176_v46 = vld [vmem:[#allocation8 + $0x68] sm:$0xff] }
 0x507   : > { %v4025_v16 = vpop.permute.xlu1 %4024 }
 0x597   : > { %v2900_v26 = vpop.f32.mrb[10].mxu0 }
 0x598   : > { %v2902_v63 = vpop.f32.mrb[11].mxu0 }
 0x59b   : > { %v2906_v52 = vpop.f32.mrb[12].mxu0 }
 0x59c   : > { %v2908_v21 = vpop.f32.mrb[13].mxu0 }
 0x5c3   : > { %v3921_v61 = vpop.f32.mrb[4].mxu1 }
 0x5c4   : > { %v6474_v44 = vadd.f32 %v3921_v61, %v2900_v26  ;;  %v3923_v58 = vpop.f32.mrb[5].mxu1  ;;  %v6288_v26 = vpack.c.bf16 %v4187_v42, %v4183_v35  ;;  %v6298_v35 = vpack.c.bf16 %v4167_v32, %v4163_v40  ;;  %v6300_v42 = vpack.c.bf16 %v4176_v46, %v4172_v33  ;;  %v4532_v40 = vld [vmem:[#allocation8 + $0x178] sm:$0xff] }
 0x5c5   : > { %v6475_v18 = vadd.f32 %v3923_v58, %v2902_v63 }
 0x5c6   : > { %v8474_v15 = vadd.f32 %v6474_v44, %v4020_v19  ;;  %6289 = vmatprep.subr.bf16.mxu1 %v6288_v26  ;;  %v4175_v26 = vld [vmem:[#allocation8 + $0x60] sm:$0xff] }
 0x5c7   : > { %v8476_v56 = vadd.f32 %v6475_v18, %v4020_v19  ;;  %v3927_v20 = vpop.f32.mrb[6].mxu1  ;;  %v3844_v38 = vpop.f32.mrb[6].mxu0 }
 0x5c8   : > { %v4039_v60 = vmax.f32 %v8474_v15, 0.0  ;;  %v6476_v55 = vadd.f32 %v3927_v20, %v2906_v52  ;;  %v3929_v28 = vpop.f32.mrb[7].mxu1  ;;  %v3846_v0 = vpop.f32.mrb[7].mxu0  ;;  %v4027_v57 = vadd.f32 %v4020_v19, %v3844_v38 }
 0x5c9   : > { %v4040_v49 = vmax.f32 %v8476_v56, 0.0  ;;  %v6477_v37 = vadd.f32 %v3929_v28, %v2908_v21  ;;  %v4028_v39 = vadd.f32 %v4020_v19, %v3846_v0 }
 0x5ca   : > { %4061 = vrot.lane.b32.xlu1 %v4039_v60, %s7167_s27  ;;  %v4034_v59 = vadd.f32 %v6476_v55, %v4025_v16  ;;  %v4037_v31 = vmax.f32 %v4027_v57, 0.0 }
 0x5cb   : > { %4063 = vrot.lane.b32.xlu0 %v4040_v49, %s7167_s27  ;;  %v3850_v54 = vpop.f32.mrb[8].mxu0  ;;  %v4038_v45 = vmax.f32 %v4028_v39, 0.0  ;;  %v8485_v50 = vadd.f32 %v6477_v37, %v4025_v16 }
 0x5cc   : > { %v3852_v36 = vpop.f32.mrb[9].mxu0  ;;  %v4044_v10 = vmax.f32 %v4034_v59, 0.0  ;;  %v4032_v9 = vadd.f32 %v4025_v16, %v3850_v54 }
 0x5cd   : > { %v4033_v53 = vadd.f32 %v4025_v16, %v3852_v36  ;;  %v4045_v48 = vmax.f32 %v8485_v50, 0.0 }
 0x5ce   : > { %v4042_v23 = vmax.f32 %v4032_v9, 0.0  ;;  %v4191_v9 = vld [vmem:[#allocation8 + $0xd8] sm:$0xff] }
 0x5cf   : > { %4059 = vrot.lane.b32.xlu0 %v4038_v45, %s7167_s27  ;;  %v4043_v22 = vmax.f32 %v4033_v53, 0.0 }
 0x5d1   : > { %4069 = vrot.lane.b32.xlu1 %v4043_v22, %s7167_s27 }
 0x5d3   : > { %4071 = vrot.lane.b32.xlu0 %v4044_v10, %s7167_s27  ;;  %v5939_v43 = vpop.f32.mrb[14].mxu0 }
 0x5d4   : > { %v3998_v41 = vpop.f32.mrb[15].mxu0  ;;  %v8496_v14 = vadd.f32 %v5939_v43, %v4025_v16  ;;  %v4186_v43 = vld [vmem:[#allocation8 + $0xb0] sm:$0xff] }
 0x5d5   : > { %v8490_v12 = vadd.f32 %v4020_v19, %v3998_v41  ;;  %4073 = vrot.lane.b32.xlu1 %v4045_v48, %s7167_s27  ;;  %v4195_v41 = vld [vmem:[#allocation8 + $0xf8] sm:$0xff] }
 0x5d6   : > { %v4046_v34 = vmax.f32 %v8496_v14, 0.0  ;;  %v6292_v14 = vpack.c.bf16 %v4195_v41, %v4191_v9  ;;  %v4517_v41 = vld [vmem:[#allocation8 + $0x100] sm:$0xff] }
 0x5d7   : > { %4057 = vrot.lane.b32.xlu0 %v4037_v31, %s7167_s27  ;;  %v4041_v25 = vmax.f32 %v8490_v12, 0.0 }
 0x5d9   : > { %4067 = vrot.lane.b32.xlu1 %v4042_v23, %s7167_s27 }
 0x5db   : > { %4065 = vrot.lane.b32.xlu0 %v4041_v25, %s7167_s27 }
 0x5dd   : > { %4075 = vrot.lane.b32.xlu1 %v4046_v34, %s7167_s27 }
 0x63c   : > { %v4062_v30 = vpop.permute.xlu1 %4061 }
 0x63d   : > { %v4064_v63 = vpop.permute.xlu0 %4063 }
 0x63e   : > { %v4079_v52 = vsel %vm1054_vm12, %v4062_v30, %v4064_v63 }
 0x63f   : > { %v8504_v21 = vmax.f32 %v4039_v60, %v4079_v52  ;;  %v4170_v52 = vld [vmem:[#allocation8 + $0x38] sm:$0xff] }
 0x641   : > { %v4060_v61 = vpop.permute.xlu0 %4059  ;;  %4119 = vrot.lane.b32.xlu1 %v8504_v21, %s7162_s6 }
 0x642   : > { %v4078_v44 = vsel %vm1054_vm12, %v4060_v61, %v4062_v30  ;;  %v4171_v30 = vld [vmem:[#allocation8 + $0x40] sm:$0xff] }
 0x643   : > { %v4096_v58 = vmax.f32 %v4038_v45, %v4078_v44  ;;  %v4070_v19 = vpop.permute.xlu1 %4069  ;;  %v6302_v44 = vpack.c.bf16 %v4175_v26, %v4171_v30  ;;  %v4531_v30 = vld [vmem:[#allocation8 + $0x170] sm:$0xff] }
 0x645   : > { %v4072_v18 = vpop.permute.xlu0 %4071  ;;  %4117 = vrot.lane.b32.xlu0 %v4096_v58, %s7162_s6 }
 0x646   : > { %v4082_v15 = vsel %vm1054_vm12, %v4070_v19, %v4072_v18 }
 0x647   : > { %v4101_v20 = vmax.f32 %v4043_v22, %v4082_v15  ;;  %v4074_v38 = vpop.permute.xlu1 %4073 }
 0x648   : > { %v4083_v55 = vsel %vm1054_vm12, %v4072_v18, %v4074_v38  ;;  %v4169_v18 = vld [vmem:[#allocation8 + $0x30] sm:$0xff] }
 0x649   : > { %v4058_v28 = vpop.permute.xlu0 %4057  ;;  %4127 = vrot.lane.b32.xlu0 %v4101_v20, %s7162_s6  ;;  %v8513_v60 = vmax.f32 %v4044_v10, %v4083_v55 }
 0x64a   : > { %v4077_v0 = vsel %vm1054_vm12, %v4058_v28, %v4060_v61 }
 0x64b   : > { %v8516_v37 = vmax.f32 %v4037_v31, %v4077_v0  ;;  %v4068_v39 = vpop.permute.xlu1 %4067  ;;  %4129 = vrot.lane.b32.xlu1 %v8513_v60, %s7162_s6 }
 0x64c   : > { %v4081_v16 = vsel %vm1054_vm12, %v4068_v39, %v4070_v19  ;;  %v4165_v19 = vld [vmem:[#allocation8 + $0x10] sm:$0xff] }
 0x64d   : > { %4115 = vrot.lane.b32.xlu0 %v8516_v37, %s7162_s6  ;;  %v4066_v54 = vpop.permute.xlu0 %4065  ;;  %v8523_v45 = vmax.f32 %v4042_v23, %v4081_v16  ;;  %v6306_v28 = vpack.c.bf16 %v4169_v18, %v4165_v19  ;;  %v4173_v16 = vld [vmem:[#allocation8 + $0x50] sm:$0xff]  ;;  %v4711_v19 = vld [vmem:[#allocation8 + $0x1c8] sm:$0xff] }
 0x64e   : > { %v4080_v36 = vsel %vm1054_vm12, %v4064_v63, %v4066_v54  ;;  %v8539_v10 = vmax.f32 %v4041_v25, %v4066_v54  ;;  %v4164_v25 = vld [vmem:[#allocation8 + $0x8] sm:$0xff]  ;;  %v4166_v63 = vld [vmem:[#allocation8 + $0x18] sm:$0xff]  ;;  %v4177_v54 = vld [vmem:[#allocation8 + $0x70] sm:$0xff] }
 0x64f   : > { %v8528_v59 = vmax.f32 %v4040_v49, %v4080_v36  ;;  %4125 = vrot.lane.b32.xlu1 %v8523_v45, %s7162_s6  ;;  %v4076_v53 = vpop.permute.xlu1 %4075  ;;  %v4182_v49 = vld [vmem:[#allocation8 + $0x90] sm:$0xff]  ;;  %v6296_v29 = vpack.c.bf16 %v4168_v27, %v4164_v25  ;;  %v4524_v25 = vld [vmem:[#allocation8 + $0x138] sm:$0xff]  ;;  %v4715_v18 = vld [vmem:[#allocation8 + $0x1e8] sm:$0xff] }
 0x650   : > { %v4084_v22 = vsel %vm1054_vm12, %v4074_v38, %v4076_v53  ;;  %v8545_v56 = vmax.f32 %v4046_v34, %v4076_v53  ;;  %v6290_v12 = vpack.c.bf16 %v4186_v43, %v4182_v49  ;;  %v6294_v34 = vpack.c.bf16 %v4194_v17, %v4190_v13  ;;  %v4178_v38 = vld [vmem:[#allocation8 + $0x78] sm:$0xff]  ;;  %v4518_v53 = vld [vmem:[#allocation8 + $0x108] sm:$0xff]  ;;  %v4529_v13 = vld [vmem:[#allocation8 + $0x160] sm:$0xff] }
 0x651   : > { %4121 = vrot.lane.b32.xlu0 %v8528_v59, %s7162_s6  ;;  %v8537_v57 = vmax.f32 %v4045_v48, %v4084_v22  ;;  %v4522_v22 = vld [vmem:[#allocation8 + $0x128] sm:$0xff]  ;;  %v6310_v49 = vpack.c.bf16 %v4177_v54, %v4173_v16  ;;  %v4520_v17 = vld [vmem:[#allocation8 + $0x118] sm:$0xff]  ;;  %v4704_v16 = vld [vmem:[#allocation8 + $0x190] sm:$0xff] }
 0x652   : > { %v6312_v9 = vpack.c.bf16 %v4522_v22, %v4518_v53  ;;  %v4708_v54 = vld [vmem:[#allocation8 + $0x1b0] sm:$0xff]  ;;  %v4713_v53 = vld [vmem:[#allocation8 + $0x1d8] sm:$0xff] }
 0x653   : > { %4131 = vrot.lane.b32.xlu1 %v8537_v57, %s7162_s6  ;;  %v4717_v22 = vld [vmem:[#allocation8 + $0x1f8] sm:$0xff] }
 0x655   : > { %4123 = vrot.lane.b32.xlu0 %v8539_v10, %s7162_s6 }
 0x657   : > { %4133 = vrot.lane.b32.xlu1 %v8545_v56, %s7162_s6 }
 0x6b3   : > { %v8549_v50 = vpop.permute.xlu1 %4119 }
 0x6b7   : > { %v4118_v48 = vpop.permute.xlu0 %4117 }
 0x6b8   : > { %v4136_v31 = vsel %vm228_vm1, %v4118_v48, %v8549_v50 }
 0x6b9   : > { %v4154_v23 = vmax.f32 %v4096_v58, %v4136_v31  ;;  %v6304_v58 = vpack.c.bf16 %v4170_v52, %v4166_v63  ;;  %v4530_v31 = vld [vmem:[#allocation8 + $0x168] sm:$0xff] }
 0x6ba   : > { %v4703_v63 = vld [vmem:[#allocation8 + $0x188] sm:$0xff] }
 0x6bb   : > { %5724 = vmatmul.mubr.msk.f32.vlgmr.msra.gmra.mrb[8].mxu1 %vm286_vm2, %v4154_v23  ;;  %v4128_v24 = vpop.permute.xlu0 %4127 }
 0x6bc   : > { %6291 = vmatpush1.bf16.msra.mxu1 %v6290_v12  ;;  %4272 = vmatprep.mubr.f32.mxu1 %v7170_v62 }
 0x6bd   : > { %6293 = vmatprep.subr.bf16.mxu1 %v6292_v14  ;;  %v8555_v51 = vpop.permute.xlu1 %4129  ;;  %v4525_v14 = vld [vmem:[#allocation8 + $0x140] sm:$0xff] }
 0x6be   : > { %v4140_v11 = vsel %vm228_vm1, %v4128_v24, %v8555_v51 }
 0x6bf   : > { %v4159_v47 = vmax.f32 %v4101_v20, %v4140_v11  ;;  %v4116_v61 = vpop.permute.xlu0 %4115  ;;  %v4174_v20 = vld [vmem:[#allocation8 + $0x58] sm:$0xff] }
 0x6c0   : > { %6295 = vmatpush1.bf16.msra.mxu1 %v6294_v34  ;;  %v4135_v15 = vsel %vm228_vm1, %v4116_v61, %v4118_v48  ;;  %v6308_v39 = vpack.c.bf16 %v4178_v38, %v4174_v20  ;;  %v4526_v48 = vld [vmem:[#allocation8 + $0x148] sm:$0xff]  ;;  %v6320_v34 = vpack.c.bf16 %v4524_v25, %v4520_v17  ;;  %v4710_v20 = vld [vmem:[#allocation8 + $0x1c0] sm:$0xff] }
 0x6c1   : > { %6297 = vmatprep.subr.bf16.mxu1 %v6296_v29  ;;  %5725 = vmatmul.mubr.msk.f32.gmra.mrb[10].mxu1 %vm286_vm2, %v4159_v47  ;;  %v4126_v55 = vpop.permute.xlu1 %4125  ;;  %v4153_v0 = vmax.f32 %v8516_v37, %v4135_v15  ;;  %v4521_v37 = vld [vmem:[#allocation8 + $0x120] sm:$0xff]  ;;  %v4519_v29 = vld [vmem:[#allocation8 + $0x110] sm:$0xff]  ;;  %v6332_v15 = vpack.c.bf16 %v4715_v18, %v4711_v19  ;;  %v5072_v18 = vld [vmem:[#allocation10 + $0x8] sm:$0xff] }
 0x6c2   : > { %4343 = vmatprep.mubr.f32.mxu1 %v7170_v62  ;;  %v4139_v36 = vsel %vm228_vm1, %v4126_v55, %v4128_v24  ;;  %v6314_v12 = vpack.c.bf16 %v4521_v37, %v4517_v41  ;;  %v4523_v24 = vld [vmem:[#allocation8 + $0x130] sm:$0xff]  ;;  %v4714_v38 = vld [vmem:[#allocation8 + $0x1e0] sm:$0xff]  ;;  %v4705_v55 = vld [vmem:[#allocation8 + $0x198] sm:$0xff]  ;;  %v6340_v41 = vpack.c.bf16 %v4717_v22, %v4713_v53 }
 0x6c3   : > { %v4158_v43 = vmax.f32 %v8523_v45, %v4139_v36  ;;  %v4122_v27 = vpop.permute.xlu0 %4121  ;;  %v6318_v45 = vpack.c.bf16 %v4529_v13, %v4525_v14  ;;  %v6322_v33 = vpack.c.bf16 %v4523_v24, %v4519_v29  ;;  %v4712_v37 = vld [vmem:[#allocation8 + $0x1d0] sm:$0xff]  ;;  %v4887_v25 = vld [vmem:[#allocation8 + $0x200] sm:$0xff] }
 0x6c4   : > { %v4137_v11 = vsel %vm228_vm1, %v8549_v50, %v4122_v27  ;;  %v4707_v50 = vld [vmem:[#allocation8 + $0x1a8] sm:$0xff]  ;;  %v4895_v24 = vld [vmem:[#allocation8 + $0x240] sm:$0xff]  ;;  %v5077_v53 = vld [vmem:[#allocation10 + $0x30] sm:$0xff] }
 0x6c5   : > { %5726 = vmatmul.mubr.msk.f32.vlgmr.msra.gmra.mrb[12].mxu1 %vm286_vm2, %v4154_v23  ;;  %v6316_v23 = vpack.c.bf16 %v4530_v31, %v4526_v48  ;;  %v4132_v32 = vpop.permute.xlu1 %4131  ;;  %v4155_v46 = vmax.f32 %v8504_v21, %v4137_v11  ;;  %v4702_v21 = vld [vmem:[#allocation8 + $0x180] sm:$0xff]  ;;  %v4716_v48 = vld [vmem:[#allocation8 + $0x1f0] sm:$0xff] }
 0x6c6   : > { %6299 = vmatpush1.bf16.msra.mxu1 %v6298_v35  ;;  %4349 = vmatprep.mubr.f32.mxu1 %v7170_v62  ;;  %v4141_v26 = vsel %vm228_vm1, %v8555_v51, %v4132_v32  ;;  %v6342_v14 = vpack.c.bf16 %v4716_v48, %v4712_v37  ;;  %v4899_v11 = vld [vmem:[#allocation8 + $0x260] sm:$0xff] }
 0x6c7   : > { %6301 = vmatprep.subr.bf16.mxu1 %v6300_v42  ;;  %v4527_v42 = vld [vmem:[#allocation8 + $0x150] sm:$0xff]  ;;  %v4160_v61 = vmax.f32 %v8513_v60, %v4141_v26  ;;  %v6334_v60 = vpack.c.bf16 %v4714_v38, %v4710_v20  ;;  %v5075_v19 = vld [vmem:[#allocation10 + $0x20] sm:$0xff] }
 0x6c8   : > { %v6326_v52 = vpack.c.bf16 %v4531_v30, %v4527_v42  ;;  %v4902_v42 = vld [vmem:[#allocation8 + $0x278] sm:$0xff] }
 0x6c9   : > { %5727 = vmatmul.mubr.msk.f32.gmra.mrb[14].mxu1 %vm286_vm2, %v4159_v47  ;;  %v4528_v47 = vld [vmem:[#allocation8 + $0x158] sm:$0xff] }
 0x6ca   : > { %6303 = vmatpush1.bf16.msra.mxu1 %v6302_v44  ;;  %4426 = vmatprep.mubr.f32.mxu1 %v7170_v62  ;;  %v6324_v35 = vpack.c.bf16 %v4532_v40, %v4528_v47  ;;  %v6328_v44 = vpack.c.bf16 %v4707_v50, %v4703_v63  ;;  %v4890_v47 = vld [vmem:[#allocation8 + $0x218] sm:$0xff]  ;;  %v4897_v50 = vld [vmem:[#allocation8 + $0x250] sm:$0xff] }
 0x6cb   : > { %6305 = vmatprep.subr.bf16.mxu1 %v6304_v58  ;;  %v4706_v58 = vld [vmem:[#allocation8 + $0x1a0] sm:$0xff]  ;;  %v4894_v40 = vld [vmem:[#allocation8 + $0x238] sm:$0xff] }
 0x6cc   : > { %v6330_v51 = vpack.c.bf16 %v4706_v58, %v4702_v21  ;;  %v5071_v58 = vld [vmem:[#allocation10] sm:$0xff] }
 0x6cd   : > { %5728 = vmatmul.mubr.msk.f32.vlgmr.msra.gmra.mrb[8].mxu1 %vm286_vm2, %v4153_v0 }
 0x6ce   : > { %6307 = vmatpush1.bf16.msra.mxu1 %v6306_v28  ;;  %4432 = vmatprep.mubr.f32.mxu1 %v7170_v62  ;;  %v4709_v28 = vld [vmem:[#allocation8 + $0x1b8] sm:$0xff] }
 0x6cf   : > { %6309 = vmatprep.subr.bf16.mxu1 %v6308_v39  ;;  %v6336_v39 = vpack.c.bf16 %v4709_v28, %v4705_v55 }
 0x6d1   : > { %5729 = vmatmul.mubr.msk.f32.gmra.mrb[10].mxu1 %vm286_vm2, %v4158_v43 }
 0x6d2   : > { %6311 = vmatpush1.bf16.msra.mxu1 %v6310_v49  ;;  %4503 = vmatprep.mubr.f32.mxu1 %v7170_v62  ;;  %v4134_v49 = vpop.permute.xlu1 %4133 }
 0x6d3   : > { %6313 = vmatprep.subr.bf16.mxu1 %v6312_v9  ;;  %v4142_v31 = vsel %vm228_vm1, %v4132_v32, %v4134_v49  ;;  %v6352_v32 = vpack.c.bf16 %v4894_v40, %v4890_v47 }
 0x6d4   : > { %v4161_v13 = vmax.f32 %v8537_v57, %v4142_v31  ;;  %v6350_v57 = vpack.c.bf16 %v4899_v11, %v4895_v24 }
 0x6d5   : > { %5730 = vmatmul.mubr.msk.f32.vlgmr.msra.gmra.mrb[12].mxu1 %vm286_vm2, %v4153_v0  ;;  %v4124_v0 = vpop.permute.xlu0 %4123 }
 0x6d6   : > { %6315 = vmatpush1.bf16.msra.mxu1 %v6314_v12  ;;  %4509 = vmatprep.mubr.f32.mxu1 %v7170_v62  ;;  %v4138_v36 = vsel %vm228_vm1, %v4122_v27, %v4124_v0  ;;  %v4888_v12 = vld [vmem:[#allocation8 + $0x208] sm:$0xff]  ;;  %v4157_v26 = vmax.f32 %v8539_v10, %v4124_v0 }
 0x6d7   : > { %6317 = vmatprep.subr.bf16.mxu1 %v6316_v23  ;;  %v4156_v9 = vmax.f32 %v8528_v59, %v4138_v36  ;;  %v4892_v23 = vld [vmem:[#allocation8 + $0x228] sm:$0xff]  ;;  %v4891_v59 = vld [vmem:[#allocation8 + $0x220] sm:$0xff]  ;;  %v5073_v36 = vld [vmem:[#allocation10 + $0x10] sm:$0xff] }
 0x6d8   : > { %v6344_v17 = vpack.c.bf16 %v4892_v23, %v4888_v12  ;;  %v4896_v27 = vld [vmem:[#allocation8 + $0x248] sm:$0xff] }
 0x6d9   : > { %5731 = vmatmul.mubr.msk.f32.gmra.mrb[14].mxu1 %vm286_vm2, %v4158_v43  ;;  %v6338_v43 = vpack.c.bf16 %v4708_v54, %v4704_v16 }
 0x6da   : > { %6319 = vmatpush1.bf16.msra.mxu1 %v6318_v45  ;;  %4603 = vmatprep.mubr.f32.mxu1 %v7170_v62  ;;  %v4900_v45 = vld [vmem:[#allocation8 + $0x268] sm:$0xff] }
 0x6db   : > { %6321 = vmatprep.subr.bf16.mxu1 %v6320_v34  ;;  %v6346_v34 = vpack.c.bf16 %v4891_v59, %v4887_v25  ;;  %v6348_v29 = vpack.c.bf16 %v4900_v45, %v4896_v27 }
 0x6dd   : > { %5732 = vmatmul.mubr.msk.f32.vlgmr.msra.gmra.mrb[8].mxu1 %vm286_vm2, %v4155_v46 }
 0x6de   : > { %6323 = vmatpush1.bf16.msra.mxu1 %v6322_v33  ;;  %4609 = vmatprep.mubr.f32.mxu1 %v7170_v62  ;;  %v4889_v33 = vld [vmem:[#allocation8 + $0x210] sm:$0xff] }
 0x6df   : > { %6325 = vmatprep.subr.bf16.mxu1 %v6324_v35  ;;  %v4898_v35 = vld [vmem:[#allocation8 + $0x258] sm:$0xff] }
 0x6e0   : > { %v6356_v63 = vpack.c.bf16 %v4902_v42, %v4898_v35 }
 0x6e1   : > { %5733 = vmatmul.mubr.msk.f32.gmra.mrb[10].mxu1 %vm286_vm2, %v4160_v61 }
 0x6e2   : > { %6327 = vmatpush1.bf16.msra.mxu1 %v6326_v52  ;;  %4680 = vmatprep.mubr.f32.mxu1 %v7170_v62  ;;  %v4901_v52 = vld [vmem:[#allocation8 + $0x270] sm:$0xff] }
 0x6e3   : > { %6329 = vmatprep.subr.bf16.mxu1 %v6328_v44  ;;  %v4162_v44 = vmax.f32 %v8545_v56, %v4134_v49  ;;  %v5074_v49 = vld [vmem:[#allocation10 + $0x18] sm:$0xff] }
 0x6e5   : > { %5734 = vmatmul.mubr.msk.f32.vlgmr.msra.gmra.mrb[12].mxu1 %vm286_vm2, %v4155_v46  ;;  %v4893_v46 = vld [vmem:[#allocation8 + $0x230] sm:$0xff] }
 0x6e6   : > { %6331 = vmatpush1.bf16.msra.mxu1 %v6330_v51  ;;  %4686 = vmatprep.mubr.f32.mxu1 %v7170_v62  ;;  %v6354_v30 = vpack.c.bf16 %v4893_v46, %v4889_v33  ;;  %v5076_v51 = vld [vmem:[#allocation10 + $0x28] sm:$0xff]  ;;  %v5124_v33 = vlaneseq }
 0x6e7   : > { %6333 = vmatprep.subr.bf16.mxu1 %v6332_v15 }
 0x6e8   : > { %vm5146_vm1 = vcmp.lt.s32.totalorder %v5124_v33, 512 }
 0x6e9   : > { %5735 = vmatmul.mubr.msk.f32.gmra.mrb[14].mxu1 %vm286_vm2, %v4160_v61  ;;  %v6358_v61 = vpack.c.bf16 %v4901_v52, %v4897_v50  ;;  %v8612_v50 = vshrl.u32 %v5124_v33, 7  ;;  %v5197_v33 = vld [vmem:[#allocation11 + $0x138] sm:$0xff] (%p124_p4) }
 0x6ea   : > { %6335 = vmatpush1.bf16.msra.mxu1 %v6334_v60  ;;  %4788 = vmatprep.mubr.f32.mxu1 %v7170_v62 }
 0x6eb   : > { %6337 = vmatprep.subr.bf16.mxu1 %v6336_v39 }
 0x6ed   : > { %5736 = vmatmul.mubr.msk.f32.vlgmr.msra.gmra.mrb[8].mxu1 %vm286_vm2, %v4156_v9 }
 0x6ee   : > { %6339 = vmatpush1.bf16.msra.mxu1 %v6338_v43  ;;  %4794 = vmatprep.mubr.f32.mxu1 %v7170_v62  ;;  %v5078_v43 = vld [vmem:[#allocation10 + $0x38] sm:$0xff] }
 0x6ef   : > { %6341 = vmatprep.subr.bf16.mxu1 %v6340_v41 }
 0x6f1   : > { %5737 = vmatmul.mubr.msk.f32.gmra.mrb[10].mxu1 %vm286_vm2, %v4161_v13 }
 0x6f2   : > { %6343 = vmatpush1.bf16.msra.mxu1 %v6342_v14  ;;  %4865 = vmatprep.mubr.f32.mxu1 %v7170_v62 }
 0x6f3   : > { %6345 = vmatprep.subr.bf16.mxu1 %v6344_v17 }
 0x6f5   : > { %5738 = vmatmul.mubr.msk.f32.vlgmr.msra.gmra.mrb[12].mxu1 %vm286_vm2, %v4156_v9 }
 0x6f6   : > { %6347 = vmatpush1.bf16.msra.mxu1 %v6346_v34  ;;  %4871 = vmatprep.mubr.f32.mxu1 %v7170_v62 }
 0x6f7   : > { %6349 = vmatprep.subr.bf16.mxu1 %v6348_v29 }
 0x6f9   : > { %5739 = vmatmul.mubr.msk.f32.gmra.mrb[14].mxu1 %vm286_vm2, %v4161_v13 }
 0x6fa   : > { %6351 = vmatpush1.bf16.msra.mxu1 %v6350_v57  ;;  %4973 = vmatprep.mubr.f32.mxu1 %v7170_v62  ;;  %v7179_v57 = vmov 1966171168  }
 0x6fb   : > { %6353 = vmatprep.subr.bf16.mxu1 %v6352_v32  ;;  %v5122_v32 = vunpack.c.l.s4 %v7179_v57 }
 0x6fd   : > { %5740 = vmatmul.mubr.msk.f32.vlgmr.msra.gmra.mrb[8].mxu1 %vm286_vm2, %v4157_v26 }
 0x6fe   : > { %6355 = vmatpush1.bf16.msra.mxu1 %v6354_v30  ;;  %4979 = vmatprep.mubr.f32.mxu1 %v7170_v62 }
 0x6ff   : > { %6357 = vmatprep.subr.bf16.mxu1 %v6356_v63  ;;  %v5123_v63 = vunpack.c.0.s8 %v5122_v32  ;;  %v5196_v32 = vld [vmem:[#allocation11 + $0x130] sm:$0xff] (%p124_p4) }
 0x701   : > { %5741 = vmatmul.mubr.msk.f32.gmra.mrb[10].mxu1 %vm286_vm2, %v4162_v44 }
 0x702   : > { %6359 = vmatpush1.bf16.msra.mxu1 %v6358_v61  ;;  %5050 = vmatprep.mubr.f32.mxu1 %v7170_v62 }
 0x705   : > { %5742 = vmatmul.mubr.msk.f32.vlgmr.msra.gmra.mrb[12].mxu1 %vm286_vm2, %v4157_v26 }
 0x706   : > { %5056 = vmatprep.mubr.f32.mxu1 %v7170_v62 }
 0x709   : > { %5743 = vmatmul.mubr.msk.f32.gmra.mrb[14].mxu1 %vm286_vm2, %v4162_v44  ;;  %vm7182_vm2 = vmmov (%p124_p4), 0  }
 0x7d0   : > { %v4975_v10 = vpop.f32.mrb[8].mxu1 }
 0x7d1   : > { %v4977_v21 = vpop.f32.mrb[9].mxu1  ;;  %v5079_v56 = vmul.f32 %v5071_v58, %v4975_v10 }
 0x7d2   : > { %v5080_v55 = vmul.f32 %v5072_v18, %v4977_v21  ;;  %v5126_v21 = vsub.s32 %v5123_v63, %v8612_v50  ;;  %v5214_v63 = vld [vmem:[#allocation11 + $0x1c0] sm:$0xff] (%p124_p4) }
 0x7d4   : > { %v4981_v15 = vpop.f32.mrb[10].mxu1 }
 0x7d5   : > { %v5083_v20 = vmul.f32 %v5075_v19, %v4981_v15  ;;  %v4983_v38 = vpop.f32.mrb[11].mxu1 }
 0x7d6   : > { %v5084_v28 = vmul.f32 %v5076_v51, %v4983_v38  ;;  %v5175_v38 = vld [vmem:[#allocation11 + $0x88] sm:$0xff] (%p124_p4) }
 0x7d7   : > { %v5087_v0 = vadd.f32 %v5083_v20, %v5079_v56  ;;  %v5174_v20 = vld [vmem:[#allocation11 + $0x80] sm:$0xff] (%p124_p4) }
 0x7d8   : > { %v5094_v60 = vadd.f32 %v5084_v28, %v5080_v55  ;;  %v5052_v39 = vpop.f32.mrb[12].mxu1  ;;  %v5158_v55 = vld [vmem:[#allocation11] sm:$0xff] (%p124_p4)  ;;  %v6360_v28 = vpack.c.bf16 (%p124_p4), %v5175_v38, %v5174_v20  ;;  %v5216_v20 = vld [vmem:[#allocation11 + $0x1d0] sm:$0xff] (%p124_p4)  ;;  %v5217_v38 = vld [vmem:[#allocation11 + $0x1d8] sm:$0xff] (%p124_p4) }
 0x7d9   : > { %v5088_v16 = vrot.slane %v5087_v0, 4  ;;  %v5054_v54 = vpop.f32.mrb[13].mxu1  ;;  %v5081_v48 = vmul.f32 %v5073_v36, %v5052_v39  ;;  %v5207_v39 = vld [vmem:[#allocation11 + $0x188] sm:$0xff] (%p124_p4) }
 0x7da   : > { %v5095_v62 = vrot.slane %v5094_v60, 4  ;;  %v5082_v14 = vmul.f32 %v5074_v49, %v5054_v54  ;;  %v5191_v36 = vld [vmem:[#allocation11 + $0x108] sm:$0xff] (%p124_p4)  ;;  %6361 = vmatprep.subr.bf16.mxu0 (%p124_p4), %v6360_v28  ;;  %v5177_v49 = vld [vmem:[#allocation11 + $0x98] sm:$0xff] (%p124_p4) }
 0x7db   : > { %v5089_v22 = vadd.f32 %v5088_v16, %v5087_v0  ;;  %v5159_v0 = vld [vmem:[#allocation11 + $0x8] sm:$0xff] (%p124_p4) }
 0x7dc   : > { %v5096_v9 = vadd.f32 %v5095_v62, %v5094_v60  ;;  %v5058_v41 = vpop.f32.mrb[14].mxu1  ;;  %v5206_v60 = vld [vmem:[#allocation11 + $0x180] sm:$0xff] (%p124_p4)  ;;  %v6362_v16 = vpack.c.bf16 (%p124_p4), %v5159_v0, %v5158_v55 }
 0x7dd   : > { %v5090_v37 = vrot.slane %v5089_v22, 2  ;;  %v5085_v31 = vmul.f32 %v5077_v53, %v5058_v41  ;;  %v5060_v12 = vpop.f32.mrb[15].mxu1  ;;  %v6392_v54 = vpack.c.bf16 (%p124_p4), %v5207_v39, %v5206_v60  ;;  %v5190_v62 = vld [vmem:[#allocation11 + $0x100] sm:$0xff] (%p124_p4)  ;;  %v5176_v53 = vld [vmem:[#allocation11 + $0x90] sm:$0xff] (%p124_p4)  ;;  %v5169_v39 = vld [vmem:[#allocation11 + $0x58] sm:$0xff] (%p124_p4) }
 0x7de   : > { %v5097_v23 = vrot.slane %v5096_v9, 2  ;;  %v5086_v13 = vmul.f32 %v5078_v43, %v5060_v12  ;;  %v5160_v43 = vld [vmem:[#allocation11 + $0x10] sm:$0xff] (%p124_p4)  ;;  %6363 = vmatpush3.bf16.msra.mxu0 (%p124_p4), %v6362_v16  ;;  %v6364_v41 = vpack.c.bf16 (%p124_p4), %v5177_v49, %v5176_v53  ;;  %v5163_v12 = vld [vmem:[#allocation11 + $0x28] sm:$0xff] (%p124_p4)  ;;  %v5218_v49 = vld [vmem:[#allocation11 + $0x1e0] sm:$0xff] (%p124_p4) }
 0x7df   : > { %v5091_v17 = vadd.f32 %v5090_v37, %v5089_v22  ;;  %v5101_v25 = vadd.f32 %v5085_v31, %v5081_v48  ;;  %v6394_v22 = vpack.c.bf16 (%p124_p4), %v5191_v36, %v5190_v62  ;;  %6393 = vmatprep.subr.bf16.mxu1 (%p124_p4), %v6392_v54  ;;  %v6398_v37 = vpack.c.bf16 (%p124_p4), %v5193_v6, %v5192_v4  ;;  %v5162_v31 = vld [vmem:[#allocation11 + $0x20] sm:$0xff] (%p124_p4)  ;;  %v5168_v60 = vld [vmem:[#allocation11 + $0x50] sm:$0xff] (%p124_p4)  ;;  %v5201_v62 = vld [vmem:[#allocation11 + $0x158] sm:$0xff] (%p124_p4) }
 0x7e0   : > { %v5098_v59 = vadd.f32 %v5097_v23, %v5096_v9  ;;  %v5108_v27 = vadd.f32 %v5086_v13, %v5082_v14  ;;  %v5161_v9 = vld [vmem:[#allocation11 + $0x18] sm:$0xff] (%p124_p4)  ;;  %6365 = vmatprep.subr.bf16.mxu0 (%p124_p4), %v6364_v41  ;;  %v6368_v48 = vpack.c.bf16 (%p124_p4), %v5179_v8, %v5178_v7  ;;  %v5210_v23 = vld [vmem:[#allocation11 + $0x1a0] sm:$0xff] (%p124_p4)  ;;  %v5211_v14 = vld [vmem:[#allocation11 + $0x1a8] sm:$0xff] (%p124_p4)  ;;  %v6412_v54 = vpack.c.bf16 (%p124_p4), %v5217_v38, %v5216_v20 }
 0x7e1   : > { %v5092_v45 = vrot.slane %v5091_v17, 1  ;;  %v5102_v34 = vrot.slane %v5101_v25, 4  ;;  %v6366_v1 = vpack.c.bf16 (%p124_p4), %v5161_v9, %v5160_v43  ;;  %6395 = vmatpush3.bf16.msra.mxu1 (%p124_p4), %v6394_v22  ;;  %v5194_v13 = vld [vmem:[#allocation11 + $0x120] sm:$0xff] (%p124_p4)  ;;  %v5200_v16 = vld [vmem:[#allocation11 + $0x150] sm:$0xff] (%p124_p4)  ;;  %v5187_v53 = vld [vmem:[#allocation11 + $0xe8] sm:$0xff] (%p124_p4)  ;;  %v6382_v9 = vpack.c.bf16 (%p124_p4), %v5169_v39, %v5168_v60 }
 0x7e2   : > { %v5099_v29 = vrot.slane %v5098_v59, 1  ;;  %v5109_v24 = vrot.slane %v5108_v27, 4  ;;  %6397 = vmatprep.subr.bf16.mxu1 (%p124_p4), %v6396_v5  ;;  %v5186_v36 = vld [vmem:[#allocation11 + $0xe0] sm:$0xff] (%p124_p4)  ;;  %v5219_v43 = vld [vmem:[#allocation11 + $0x1e8] sm:$0xff] (%p124_p4)  ;;  %v5188_v8 = vld [vmem:[#allocation11 + $0xf0] sm:$0xff] (%p124_p4) }
 0x7e3   : > { %v5093_v11 = vadd.f32 %v5092_v45, %v5091_v17  ;;  %v5103_v47 = vadd.f32 %v5102_v34, %v5101_v25  ;;  %v5195_v17 = vld [vmem:[#allocation11 + $0x128] sm:$0xff] (%p124_p4)  ;;  %6367 = vmatpush3.bf16.msra.mxu0 (%p124_p4), %v6366_v1  ;;  %v6370_v25 = vpack.c.bf16 (%p124_p4), %v5163_v12, %v5162_v31  ;;  %v5181_v45 = vld [vmem:[#allocation11 + $0xb8] sm:$0xff] (%p124_p4)  ;;  %v5164_v34 = vld [vmem:[#allocation11 + $0x30] sm:$0xff] (%p124_p4)  ;;  %v6414_v1 = vpack.c.bf16 (%p124_p4), %v5201_v62, %v5200_v16 }
 0x7e4   : > { %v5100_v40 = vadd.f32 %v5099_v29, %v5098_v59  ;;  %v5110_v46 = vadd.f32 %v5109_v24, %v5108_v27  ;;  %v6400_v59 = vpack.c.bf16 (%p124_p4), %v5211_v14, %v5210_v23  ;;  %v5180_v27 = vld [vmem:[#allocation11 + $0xb0] sm:$0xff] (%p124_p4)  ;;  %6369 = vmatprep.subr.bf16.mxu0 (%p124_p4), %v6368_v48  ;;  %v6402_v29 = vpack.c.bf16 (%p124_p4), %v5195_v17, %v5194_v13  ;;  %v5170_v41 = vld [vmem:[#allocation11 + $0x60] sm:$0xff] (%p124_p4)  ;;  %v5203_v7 = vld [vmem:[#allocation11 + $0x168] sm:$0xff] (%p124_p4) }
 0x7e5   : > { %v5104_v35 = vrot.slane %v5103_v47, 2  ;;  %6399 = vmatpush3.bf16.msra.mxu1 (%p124_p4), %v6398_v37  ;;  %v6372_v24 = vpack.c.bf16 (%p124_p4), %v5181_v45, %v5180_v27  ;;  %v6384_v2 = vpack.c.bf16 (%p124_p4), %v5187_v53, %v5186_v36  ;;  %v5202_v4 = vld [vmem:[#allocation11 + $0x160] sm:$0xff] (%p124_p4)  ;;  %v6416_v6 = vpack.c.bf16 (%p124_p4), %v5219_v43, %v5218_v49  ;;  %v5189_v37 = vld [vmem:[#allocation11 + $0xf8] sm:$0xff] (%p124_p4)  ;;  %v5486_v60 = vld [vmem:[%s8767_s11] sm:$0xff] (%p124_p4) }
 0x7e6   : > { %v5119_v42 = vcombine.low %v5093_v11, %v5100_v40  ;;  %v5111_v30 = vrot.slane %v5110_v46, 2  ;;  %v5165_v11 = vld [vmem:[#allocation11 + $0x38] sm:$0xff] (%p124_p4)  ;;  %6401 = vmatprep.subr.bf16.mxu1 (%p124_p4), %v6400_v59  ;;  %v6386_v23 = vpack.c.bf16 (%p124_p4), %v5171_v3, %v5170_v41  ;;  %v6418_v17 = vpack.c.bf16 (%p124_p4), %v5203_v7, %v5202_v4  ;;  %v5172_v59 = vld [vmem:[#allocation11 + $0x70] sm:$0xff] (%p124_p4)  ;;  %v5406_v38 = vld [vmem:[%s8765_s9 + $0x70] sm:$0xff] (%p124_p4) }
 0x7e7   : > { %v5105_v26 = vadd.f32 %v5104_v35, %v5103_v47  ;;  %v5212_v47 = vld [vmem:[#allocation11 + $0x1b0] sm:$0xff] (%p124_p4)  ;;  %v5213_v40 = vld [vmem:[#allocation11 + $0x1b8] sm:$0xff] (%p124_p4)  ;;  %v7180_v35 = vmov (%p124_p4), 1983009808   ;;  %6371 = vmatpush3.bf16.msra.mxu0 (%p124_p4), %v6370_v25  ;;  %v6388_v25 = vpack.c.bf16 (%p124_p4), %v5189_v37, %v5188_v8  ;;  %v5488_v16 = vld [vmem:[%s8767_s11 + $0x10] sm:$0xff] (%p124_p4) }
 0x7e8   : > { %v5112_v52 = vadd.f32 %v5111_v30, %v5110_v46  ;;  %v5127_v18 = vrot.slane %v5119_v42, %v5126_v21  ;;  %v6404_v57 = vpack.c.bf16 (%p124_p4), %v5213_v40, %v5212_v47  ;;  %v5182_v46 = vld [vmem:[#allocation11 + $0xc0] sm:$0xff] (%p124_p4)  ;;  %v5232_v42 = vunpack.c.l.s4 (%p124_p4), %v7180_v35  ;;  %v5183_v30 = vld [vmem:[#allocation11 + $0xc8] sm:$0xff] (%p124_p4)  ;;  %6373 = vmatprep.subr.bf16.mxu0 (%p124_p4), %v6372_v24  ;;  %v5221_v12 = vld [vmem:[#allocation11 + $0x1f8] sm:$0xff] (%p124_p4) }
 0x7e9   : > { %v5106_v61 = vrot.slane %v5105_v26, 1  ;;  %6403 = vmatpush3.bf16.msra.mxu1 (%p124_p4), %v6402_v29  ;;  %v5173_v27 = vld [vmem:[#allocation11 + $0x78] sm:$0xff] (%p124_p4)  ;;  %v5392_v40 = vld [vmem:[%s8765_s9] sm:$0xff] (%p124_p4)  ;;  %v5395_v35 = vld [vmem:[%s8765_s9 + $0x18] sm:$0xff] (%p124_p4) }
 0x7ea   : > { %v5113_v44 = vrot.slane %v5112_v52, 1  ;;  %6405 = vmatprep.subr.bf16.mxu1 (%p124_p4), %v6404_v57  ;;  %v5205_v29 = vld [vmem:[#allocation11 + $0x178] sm:$0xff] (%p124_p4)  ;;  %v5489_v62 = vld [vmem:[%s8767_s11 + $0x18] sm:$0xff] (%p124_p4)  ;;  %v5490_v53 = vld [vmem:[%s8767_s11 + $0x20] sm:$0xff] (%p124_p4) }
 0x7eb   : > { %v5107_v10 = vadd.f32 %v5106_v61, %v5105_v26  ;;  %v6374_v26 = vpack.c.bf16 (%p124_p4), %v5165_v11, %v5164_v34  ;;  %v6406_v61 = vpack.c.bf16 (%p124_p4), %v5197_v33, %v5196_v32  ;;  %v5204_v34 = vld [vmem:[#allocation11 + $0x170] sm:$0xff] (%p124_p4)  ;;  %v6390_v11 = vpack.c.bf16 (%p124_p4), %v5173_v27, %v5172_v59  ;;  %v5393_v57 = vld [vmem:[%s8765_s9 + $0x8] sm:$0xff] (%p124_p4)  ;;  %v5492_v43 = vld [vmem:[%s8767_s11 + $0x30] sm:$0xff] (%p124_p4) }
 0x7ec   : > { %v5114_v58 = vadd.f32 %v5113_v44, %v5112_v52  ;;  %v5215_v52 = vld [vmem:[#allocation11 + $0x1c8] sm:$0xff] (%p124_p4)  ;;  %v6376_v44 = vpack.c.bf16 (%p124_p4), %v5183_v30, %v5182_v46  ;;  %v6422_v47 = vpack.c.bf16 (%p124_p4), %v5205_v29, %v5204_v34  ;;  %v6425_v32 = vpack.c.bf16 (%p124_p4), %v5393_v57, %v5392_v40  ;;  %v5394_v46 = vld [vmem:[%s8765_s9 + $0x10] sm:$0xff] (%p124_p4)  ;;  %v5396_v30 = vld [vmem:[%s8765_s9 + $0x20] sm:$0xff] (%p124_p4) }
 0x7ed   :  { %6375 = vmatpush3.bf16.msra.mxu0 (%p124_p4), %v6374_v26  ;;  %6407 = vmatpush3.bf16.msra.mxu1 (%p124_p4), %v6406_v61  ;;  %v7181_v33 = vmov (%p124_p4), 0.0|0.0   ;;  %v5397_v26 = vld [vmem:[%s8765_s9 + $0x28] sm:$0xff] (%p124_p4)  ;;  %v5399_v61 = vld [vmem:[%s8765_s9 + $0x38] sm:$0xff] (%p124_p4)  ;;  %v6452_v36 = vpack.c.bf16 (%p124_p4), %v5489_v62, %v5488_v16  ;;  %v5496_v4 = vld [vmem:[%s8767_s11 + $0x50] sm:$0xff] (%p124_p4) }
 0x7ee   : > { %v5120_v19 = vcombine.low %v5107_v10, %v5114_v58  ;;  %v5166_v10 = vld [vmem:[#allocation11 + $0x40] sm:$0xff] (%p124_p4)  ;;  %6377 = vmatprep.subr.bf16.mxu0 (%p124_p4), %v6376_v44  ;;  %v5487_v39 = vld [vmem:[%s8767_s11 + $0x8] sm:$0xff] (%p124_p4)  ;;  %v5498_v7 = vld [vmem:[%s8767_s11 + $0x60] sm:$0xff] (%p124_p4) }
 0x7ef   :  { %v5198_v58 = vld [vmem:[#allocation11 + $0x140] sm:$0xff] (%p124_p4)  ;;  %v5499_v8 = vld [vmem:[%s8767_s11 + $0x68] sm:$0xff] (%p124_p4)  ;;  %v5747_v29 = vld [vmem:[%s8766_s10] ss:$0 sm:$0xff] (%p124_p4) }
 0x7f0   : > { %v5134_v51 = vrot.slane %v5120_v19, %v5126_v21  ;;  %126 = sbr.rel (!%p124_p4) target bundleno = 83 (0x53), region = 101  ;;  %v6408_v19 = vpack.c.bf16 (%p124_p4), %v5215_v52, %v5214_v63  ;;  %v6431_v63 = vpack.c.bf16 (%p124_p4), %v5397_v26, %v5396_v30  ;;  %v5398_v52 = vld [vmem:[%s8765_s9 + $0x30] sm:$0xff] (%p124_p4)  ;;  %v6467_v37 = vpack.c.bf16 (%p124_p4), %v5499_v8, %v5498_v7  ;;  %v5748_v57 = vld [vmem:[%s8768_s12] ss:$0 sm:$0xff] (%p124_p4) }
 0x7f1   :  { %v6434_v44 = vpack.c.bf16 (%p124_p4), %v5399_v61, %v5398_v52  ;;  %v5500_v27 = vld [vmem:[%s8767_s11 + $0x70] sm:$0xff] (%p124_p4) }
 0x7f2   : > { %v5135_v15 = vcombine.low %v5127_v18, %v5134_v51  ;;  %v5199_v18 = vld [vmem:[#allocation11 + $0x148] sm:$0xff] (%p124_p4)  ;;  %v5184_v51 = vld [vmem:[#allocation11 + $0xd0] sm:$0xff] (%p124_p4)  ;;  %6409 = vmatprep.subr.bf16.mxu1 (%p124_p4), %v6408_v19  ;;  %v5402_v19 = vld [vmem:[%s8765_s9 + $0x50] sm:$0xff] (%p124_p4) }
 0x7f3   :  { %v6410_v28 = vpack.c.bf16 (%p124_p4), %v5199_v18, %v5198_v58  ;;  %v5403_v18 = vld [vmem:[%s8765_s9 + $0x58] sm:$0xff] (%p124_p4) }
 0x7f4   : > { %v5142_v56 = vrot.slane %v5135_v15, %v5126_v21  ;;  %v5167_v21 = vld [vmem:[#allocation11 + $0x48] sm:$0xff] (%p124_p4)  ;;  %v5185_v15 = vld [vmem:[#allocation11 + $0xd8] sm:$0xff] (%p124_p4) }
 0x7f5   :  { %v6378_v55 = vpack.c.bf16 (%p124_p4), %v5167_v21, %v5166_v10  ;;  %v6380_v0 = vpack.c.bf16 (%p124_p4), %v5185_v15, %v5184_v51  ;;  %6411 = vmatpush3.bf16.msra.mxu1 (%p124_p4), %v6410_v28  ;;  %v5400_v10 = vld [vmem:[%s8765_s9 + $0x40] sm:$0xff] (%p124_p4)  ;;  %v5401_v21 = vld [vmem:[%s8765_s9 + $0x48] sm:$0xff] (%p124_p4)  ;;  %v6440_v51 = vpack.c.bf16 (%p124_p4), %v5403_v18, %v5402_v19 }
 0x7f6   : > { %5156 = vst.msk [vmem:[%s5155_s3] ss:$2 sm:$0xf] %vm5146_vm1, %v5142_v56  ;;  %v5233_v56 = vunpack.c.0.s8 (%p124_p4), %v5232_v42  ;;  %6413 = vmatprep.subr.bf16.mxu1 (%p124_p4), %v6412_v54  ;;  %v6428_v42 = vpack.c.bf16 (%p124_p4), %v5395_v35, %v5394_v46  ;;  %v6437_v58 = vpack.c.bf16 (%p124_p4), %v5401_v21, %v5400_v10  ;;  %v5404_v15 = vld [vmem:[%s8765_s9 + $0x60] sm:$0xff] (%p124_p4)  ;;  %v6449_v54 = vpack.c.bf16 (%p124_p4), %v5487_v39, %v5486_v60 }
 0x7f7   :  { %6379 = vmatpush3.bf16.msra.mxu0 %v6378_v55  ;;  %v5407_v55 = vld [vmem:[%s8765_s9 + $0x78] sm:$0xff] }
 0x7f8   :  { %v5236_v22 = vsub.s32 %v5233_v56, %v8612_v50  ;;  %6381 = vmatprep.subr.bf16.mxu0 %v6380_v0  ;;  %v5220_v50 = vld [vmem:[#allocation11 + $0x1f0] sm:$0xff]  ;;  %v5405_v56 = vld [vmem:[%s8765_s9 + $0x68] sm:$0xff]  ;;  %v6446_v28 = vpack.c.bf16 %v5407_v55, %v5406_v38  ;;  %v8777_v0 = vmov 0.0  }
 0x7f9   :  { %6415 = vmatpush3.bf16.msra.mxu1 %v6414_v1  ;;  %v6420_v45 = vpack.c.bf16 %v5221_v12, %v5220_v50  ;;  %v6443_v20 = vpack.c.bf16 %v5405_v56, %v5404_v15  ;;  %v5494_v1 = vld [vmem:[%s8767_s11 + $0x40] sm:$0xff] }
 0x7fa   :  { %6417 = vmatprep.subr.bf16.mxu1 %v6416_v6 }
 0x7fb   :  { %6383 = vmatpush3.bf16.msra.mxu0 %v6382_v9  ;;  %v5493_v9 = vld [vmem:[%s8767_s11 + $0x38] sm:$0xff] }
 0x7fc   :  { %6385 = vmatprep.subr.bf16.mxu0 %v6384_v2  ;;  %v6458_v41 = vpack.c.bf16 %v5493_v9, %v5492_v43  ;;  %v5495_v2 = vld [vmem:[%s8767_s11 + $0x48] sm:$0xff] }
 0x7fd   :  { %v5157_v5 = vld [vmem:[#allocation4] sm:$0xff]  ;;  %6419 = vmatpush3.bf16.msra.mxu1 %v6418_v17  ;;  %v6461_v3 = vpack.c.bf16 %v5495_v2, %v5494_v1 }
 0x7fe   :  { %v5237_v48 = vrot.slane %v5157_v5, %v5236_v22  ;;  %v5230_v31 = vcombine.high %v5157_v5, %v5157_v5  ;;  %6421 = vmatprep.subr.bf16.mxu1 %v6420_v45  ;;  %v5497_v5 = vld [vmem:[%s8767_s11 + $0x58] sm:$0xff] }
 0x7ff   :  { %6387 = vmatpush3.bf16.msra.mxu0 %v6386_v23  ;;  %v6464_v6 = vpack.c.bf16 %v5497_v5, %v5496_v4  ;;  %v5501_v45 = vld [vmem:[%s8767_s11 + $0x78] sm:$0xff] }
 0x800   :  { %v5245_v14 = vcombine.high %v5237_v48, %v5237_v48  ;;  %v5244_v13 = vrot.slane %v5230_v31, %v5236_v22  ;;  %6389 = vmatprep.subr.bf16.mxu0 %v6388_v25  ;;  %v5491_v22 = vld [vmem:[%s8767_s11 + $0x28] sm:$0xff]  ;;  %v5746_v31 = vld [vmem:[%s8764_s8] ss:$0 sm:$0xff]  ;;  %v6470_v34 = vpack.c.bf16 %v5501_v45, %v5500_v27  ;;  %s7114_s11 = scalar_lea.vmem %s5587_s15, 32 }
 0x801   :  { %6423 = vmatpush3.bf16.msra.mxu1 %v6422_v47  ;;  %v6455_v49 = vpack.c.bf16 %v5491_v22, %v5490_v53  ;;  %p7115_p5 = scmp.ne.s32.totalorder %s5587_s15, %s7114_s11  ;;  %p7120_p7 = scmp.lt.s32.totalorder %s7114_s11, %s7114_s11 }
 0x802   :  { %5315 = vmatprep.mubr.f32.mxu0 %v5245_v14  ;;  %v5246_v24 = vcombine.high %v5244_v13, %v5244_v13  ;;  %6448 = vmatprep.subr.bf16.mxu1 %v7181_v33 }
 0x803   :  { %6391 = vmatpush3.bf16.msra.mxu0 %v6390_v11  ;;  %p7121_p8 = por %p7120_p7, %p7119_p6 }
 0x804   :  { %5385 = vmatprep.mubr.f32.mxu1 %v5246_v24  ;;  %6424 = vmatprep.subr.bf16.mxu0 %v7181_v33 }
 0x805   :  { %5386 = vmatmul.mubr.f32.vlgmr.msra.gmra.mrb[0].mxu1 %v5244_v13  ;;  %p7122_p9 = pnand %p7121_p8, %p7115_p5 }
 0x806   :  { %5316 = vmatmul.mubr.f32.vlgmr.msra.gmra.mrb[0].mxu0 %v5237_v48  ;;  %6007 = vmatprep.mubr.msk.f32.mxu1 %vm7182_vm2, %v8777_v0 }
 0x807   :  { %6426 = vmatpush3.bf16.msra.mxu0 %v6425_v32  ;;  %5972 = vmatprep.mubr.msk.f32.mxu0 %vm7182_vm2, %v8777_v0 }
 0x808   :  { %6427 = vmatprep.subr.bf16.mxu0 %v7181_v33  ;;  %6450 = vmatpush3.bf16.msra.mxu1 %v6449_v54 }
 0x809   :  { %6451 = vmatprep.subr.bf16.mxu1 %v7181_v33 }
 0x80b   :  { %6429 = vmatpush3.bf16.msra.mxu0 %v6428_v42 }
 0x80c   :  { %6430 = vmatprep.subr.bf16.mxu0 %v7181_v33  ;;  %6453 = vmatpush3.bf16.msra.mxu1 %v6452_v36 }
 0x80d   :  { %6454 = vmatprep.subr.bf16.mxu1 %v7181_v33 }
 0x80f   :  { %6432 = vmatpush3.bf16.msra.mxu0 %v6431_v63 }
 0x810   :  { %6433 = vmatprep.subr.bf16.mxu0 %v7181_v33  ;;  %6456 = vmatpush3.bf16.msra.mxu1 %v6455_v49 }
 0x811   :  { %6457 = vmatprep.subr.bf16.mxu1 %v7181_v33 }
 0x813   :  { %6435 = vmatpush3.bf16.msra.mxu0 %v6434_v44 }
 0x814   :  { %6436 = vmatprep.subr.bf16.mxu0 %v7181_v33  ;;  %6459 = vmatpush3.bf16.msra.mxu1 %v6458_v41 }
 0x815   :  { %6460 = vmatprep.subr.bf16.mxu1 %v7181_v33 }
 0x817   :  { %6438 = vmatpush3.bf16.msra.mxu0 %v6437_v58 }
 0x818   :  { %6439 = vmatprep.subr.bf16.mxu0 %v7181_v33  ;;  %6462 = vmatpush3.bf16.msra.mxu1 %v6461_v3 }
 0x819   :  { %6463 = vmatprep.subr.bf16.mxu1 %v7181_v33 }
 0x81b   :  { %6441 = vmatpush3.bf16.msra.mxu0 %v6440_v51 }
 0x81c   :  { %6442 = vmatprep.subr.bf16.mxu0 %v7181_v33  ;;  %6465 = vmatpush3.bf16.msra.mxu1 %v6464_v6 }
 0x81d   :  { %6466 = vmatprep.subr.bf16.mxu1 %v7181_v33 }
 0x81f   :  { %6444 = vmatpush3.bf16.msra.mxu0 %v6443_v20 }
 0x820   :  { %6445 = vmatprep.subr.bf16.mxu0 %v7181_v33  ;;  %6468 = vmatpush3.bf16.msra.mxu1 %v6467_v37 }
 0x821   :  { %6469 = vmatprep.subr.bf16.mxu1 %v7181_v33 }
 0x823   :  { %6447 = vmatpush3.bf16.msra.mxu0 %v6446_v28 }
 0x824   :  { %6471 = vmatpush3.bf16.msra.mxu1 %v6470_v34 }
 0x8d8   :  { %v5848_v12 = vpop.f32.mrb[0].mxu1 }
 0x8d9   :  { %v5813_v48 = vpop.f32.mrb[0].mxu0  ;;  %v5849_v14 = vpop.f32.mrb[1].mxu1 }
 0x8da   :  { %v5814_v50 = vpop.f32.mrb[1].mxu0  ;;  %v5850_v13 = vadd.f32 %v5849_v14, %v5848_v12 }
 0x8db   :  { %v5815_v23 = vadd.f32 %v5814_v50, %v5813_v48 }
 0x8dd   :  { %v5318_v17 = vadd.f32 %v5815_v23, %v5746_v31 }
 0x8df   :  { %v5388_v25 = vadd.f32 %v5850_v13, %v5318_v17 }
 0x8e1   :  { %v5391_v59 = vmax.f32 %v5388_v25, 0.0 }
 0x8e3   :  { %5973 = vmatmul.mubr.f32.vlgmr.msra.gmra.mrb[2].mxu0 %v5391_v59 }
 0x9b6   :  { %v5481_v24 = vpop.f32.mrb[2].mxu0 }
 0x9b7   :  { %v5482_v11 = vadd.f32 %v5747_v29, %v5481_v24  ;;  %v5974_v47 = vpop.f32.mrb[3].mxu0 }
 0x9b9   :  { %v5485_v40 = vmax.f32 %v5482_v11, 0.0 }
 0x9bb   :  { %6008 = vmatmul.mubr.f32.vlgmr.msra.gmra.mrb[2].mxu1 %v5485_v40 }
 0xa8e   :  { %v5575_v32 = vpop.f32.mrb[2].mxu1 }
 0xa8f   :  { %v5576_v33 = vadd.f32 %v5748_v57, %v5575_v32  ;;  %v6009_v46 = vpop.f32.mrb[3].mxu1 }
 0xa91   :  { %5579 = vst [vmem:[#allocation13] sm:$0x3] %v5576_v33 }
 0xa92   :  { %7125 = shalt.err (!%p7122_p9)
}
 0xa93   :  { %s7126_s2 = scalar_lea.hbm %s8769_s13, 32 }
 0xa94   :  { %p7127_p10 = scmp.ne.s32.totalorder %s8769_s13, %s7126_s2  ;;  %p7130_p11 = scmp.lt.u32.totalorder %s7126_s2, %s8769_s13 }
 0xa96   :  { %p7132_p12 = pnand %p7130_p11, %p7127_p10 }
 0xa98   :  { %7135 = shalt.err (!%p7132_p12)
}
 0xa99   :  { %5589 = dma.vmem_to_hbm [thread:$0]  %s5587_s15, 32, %s8769_s13, [#allocation7]  }
 0xa9a   :  { %7146 = dma.done.wait [#allocation7], 32  }
 0xa9b   :  { %7147 = vsyncadd [#allocation7], 4294967264 }
 0xa9c   :  { %5593 = vsyncpa [#allocation6], 1 }
 0xa9d   :  { %5594 = vsyncpa [#allocation9], 1 }
 0xa9e   :  { %5595 = vsyncpa [#allocation12], 1 }
 0xa9f   :  { %5596 = vsyncpa [#allocation7], 1 }

</bundles_post_ra>
